<compile_context>
chip_gen: v5e
topology: v5e:2x2
jax: 0.10.0
libtpu: 0.0.40
codegen_flags: <defaults>
</compile_context>

<pallas_src>
import functools

import numpy as np
import jax
import jax.numpy as jnp
from jax import lax
from jax.experimental import pallas as pl
from jax.experimental.pallas import tpu as pltpu

# ---------------- synthetic configuration (stands in for the .yaml) ----------
T = 12                  # sequence length / dictionary rows
N_POLES = 8             # conjugate pole pairs (divisible by 4, cf. quadrants)
NP = 2 * N_POLES + 1    # dictionary atoms = 1 + cos-block + sin-block = 17
JOINTS = 16
BATCH = 2
NORMALIZE_DICT = True
FISTA_ITER = 30
FISTA_LAMBD = 0.1
FISTA_REWEIGHTED = False
FISTA_TOL = 1e-5
EPS = 1e-6
# TODO(synk): BaseConfig yaml parsing / pre-trained dictionary .pt loading have
# no Pallas equivalent; configuration values are fixed in-script instead.


def _fista_t_consts(n_iter):
    """Data-independent FISTA momentum constants (t_prev-1)/t_next per step."""
    t_prev = 1.0
    consts = []
    for _ in range(n_iter):
        t_next = (1.0 + (1.0 + 4.0 * t_prev * t_prev) ** 0.5) / 2.0
        consts.append((t_prev - 1.0) / t_next)
        t_prev = t_next
    return tuple(consts)


# ------------------------------- Pallas kernel -------------------------------
def _dyan_fista_kernel(dtd_ref, d_cfg_ref, norms_ref, y_ref,
                       ypred_ref, c_ref,
                       c_curr_ref, c_prev_ref, done_ref, *,
                       n_iter, t_consts, lambd, tol, eps, reweighted, n_p_real):
    dtd = dtd_ref[...]                       # (NpP, NpP) f32, precomputed
    d_cfg = d_cfg_ref[...]                   # (T, NpP)
    y = y_ref[...]                           # (T, Mt) -- this tile's columns
    npp = dtd_ref.shape[0]

    # L = 1 / ||DtD||_F.  Build the whole iteration matrix once per tile so the
    # 30-step serial chain is just: descent = A @ C_prev + L*DtY.
    L = lax.rsqrt(jnp.sum(dtd * dtd))
    row = lax.broadcasted_iota(jnp.int32, (npp, npp), 0)
    col = lax.broadcasted_iota(jnp.int32, (npp, npp), 1)
    eye = (row == col).astype(jnp.float32)
    a_mat = eye - L * dtd                                              # (NpP, NpP)
    ldty = L * lax.dot_general(d_cfg, y, (((0,), (0,)), ((), ())),
                               preferred_element_type=jnp.float32)     # (NpP, Mt)
    tol_sq = jnp.float32(tol * tol)

    # fresh FISTA state for this (independent) column tile
    c_curr_ref[...] = jnp.zeros_like(c_curr_ref)
    c_prev_ref[...] = jnp.zeros_like(c_prev_ref)

    def converge(tau):
        done_ref[0] = jnp.int32(0)
        for step in range(n_iter):                 # fully static unroll
            @pl.when(done_ref[0] == 0)             # torch `break`: skip rest
            def _(step=step):
                c_curr = c_curr_ref[...]
                c_prev = c_prev_ref[...]
                descent = jnp.dot(a_mat, c_prev,
                                  preferred_element_type=jnp.float32) + ldty
                # fused soft-threshold: sign(x)*max(|x|-tau,0) == x - clip(x,-tau,tau)
                c_next = descent - jnp.clip(descent, -tau, tau)
                diff = c_next - c_curr
                converged = jnp.sum(diff * diff) < tol_sq

                @pl.when(converged)                # freeze state (break before update)
                def _():
                    done_ref[0] = jnp.int32(1)

                @pl.when(jnp.logical_not(converged))
                def _():
                    c_prev_ref[...] = c_next + jnp.float32(t_consts[step]) * diff
                    c_curr_ref[...] = c_next

    if reweighted:
        n_p_pad, m_t = c_curr_ref.shape
        # only real (non-padded) atoms participate in the reweighting norm
        row_mask = (lax.broadcasted_iota(jnp.int32, (n_p_pad, 1), 0)
                    < n_p_real).astype(jnp.float32)
        lam = jnp.full((n_p_pad, m_t), lambd, jnp.float32)
        for _ in range(2):
            converge(L * lam)
            w = row_mask / (jnp.abs(c_curr_ref[...]) + eps)
            w = w * lax.rsqrt(jnp.sum(w * w, axis=0, keepdims=True))
            lam = lam * w * jnp.float32(n_p_real)
    else:
        converge(L * jnp.float32(lambd))

    c = c_curr_ref[...]
    c_ref[...] = c.astype(c_ref.dtype)
    # rebuild the un-normalized dictionary from D_cfg and the column norms
    d_raw = d_cfg * norms_ref[...]                                    # (T, NpP)
    ypred_ref[...] = jnp.dot(d_raw, c,
                             preferred_element_type=jnp.float32
                             ).astype(ypred_ref.dtype)


# ------------------------------- JAX glue ------------------------------------
def generate_dictionary(r, theta, t_len):
    i = jnp.arange(t_len, dtype=jnp.float32)[:, None]        # (T, 1)
    r_pow = r[None, :] ** i                                   # (T, N)
    ang = i * theta[None, :]
    ones = jnp.ones((t_len, 1), jnp.float32)
    return jnp.concatenate(
        [ones, r_pow * jnp.cos(ang), r_pow * jnp.sin(ang)], axis=1)  # (T, Np)


def dyan_forward(y, r, theta):
    b, t_len, joints = y.shape
    d_raw = generate_dictionary(r, theta, t_len)              # (T, Np)
    n_p = d_raw.shape[1]
    if NORMALIZE_DICT:
        norms = jnp.linalg.norm(d_raw, axis=0, keepdims=True)  # (1, Np)
        d_cfg = d_raw / norms
    else:
        norms = jnp.ones((1, n_p), jnp.float32)
        d_cfg = d_raw

    # pad Np to a multiple of 8 for clean (8,128) sublane tiling; zero atoms
    # contribute nothing (zero DtD rows/cols, zero DtY rows, zero C rows).
    n_p_pad = ((n_p + 7) // 8) * 8
    d_cfg_p = jnp.pad(d_cfg, ((0, 0), (0, n_p_pad - n_p)))
    norms_p = jnp.pad(norms, ((0, 0), (0, n_p_pad - n_p)), constant_values=1.0)

    # DtD is Y-independent: hoist it out of the kernel.
    dtd = lax.dot_general(d_cfg_p, d_cfg_p, (((0,), (0,)), ((), ())),
                          preferred_element_type=jnp.float32)   # (NpP, NpP)

    # fold batch into the column axis (FISTA is column-independent) and pad to
    # a lane-dense tile (multiple of 128) so every vreg/store is full width.
    m = b * joints
    m_tile = 256 if m > 128 else 128      # keep vreg pressure low (<= ~30 vregs)
    m_pad = ((m + m_tile - 1) // m_tile) * m_tile
    y2 = jnp.transpose(y, (1, 0, 2)).reshape(t_len, m)          # (T, M)
    y2 = jnp.pad(y2, ((0, 0), (0, m_pad - m)))
    n_tiles = m_pad // m_tile

    kernel = functools.partial(
        _dyan_fista_kernel, n_iter=FISTA_ITER, t_consts=_fista_t_consts(FISTA_ITER),
        lambd=FISTA_LAMBD, tol=FISTA_TOL, eps=EPS,
        reweighted=FISTA_REWEIGHTED, n_p_real=n_p)

    n_rounds = 2 if FISTA_REWEIGHTED else 1
    flops = n_tiles * (n_rounds * FISTA_ITER
                       * (2 * n_p_pad * n_p_pad * m_tile + 8 * n_p_pad * m_tile)
                       + 4 * t_len * n_p_pad * m_tile)
    bytes_accessed = 4 * (2 * t_len * m_pad + n_p_pad * m_pad
                          + n_p_pad * n_p_pad + (t_len + 1) * n_p_pad)
    cost = pl.CostEstimate(flops=int(flops),
                           transcendentals=int(n_tiles * (n_rounds + 2)),
                           bytes_accessed=int(bytes_accessed))

    y_pred2, c2 = pl.pallas_call(
        kernel,
        out_shape=(jax.ShapeDtypeStruct((t_len, m_pad), jnp.float32),
                   jax.ShapeDtypeStruct((n_p_pad, m_pad), jnp.float32)),
        grid_spec=pltpu.PrefetchScalarGridSpec(
            num_scalar_prefetch=0,
            grid=(n_tiles,),
            in_specs=[pl.BlockSpec((n_p_pad, n_p_pad), lambda i: (0, 0)),
                      pl.BlockSpec((t_len, n_p_pad), lambda i: (0, 0)),
                      pl.BlockSpec((1, n_p_pad), lambda i: (0, 0)),
                      pl.BlockSpec((t_len, m_tile), lambda i: (0, i))],
            out_specs=[pl.BlockSpec((t_len, m_tile), lambda i: (0, i)),
                       pl.BlockSpec((n_p_pad, m_tile), lambda i: (0, i))],
            scratch_shapes=[pltpu.VMEM((n_p_pad, m_tile), jnp.float32),
                            pltpu.VMEM((n_p_pad, m_tile), jnp.float32),
                            pltpu.SMEM((1,), jnp.int32)]),
        compiler_params=pltpu.CompilerParams(
            dimension_semantics=("parallel",)),
        cost_estimate=cost,
    )(dtd, d_cfg_p, norms_p, y2)

    y_pred = jnp.transpose(y_pred2[:, :m].reshape(t_len, b, joints), (1, 0, 2))
    c_pred = jnp.transpose(c2[:n_p, :m].reshape(n_p, b, joints), (1, 0, 2))
    return y_pred, c_pred


# ------------------------ pure numpy reference (torch semantics) -------------
def dyan_reference(y, d_raw, d_cfg):
    y = np.asarray(y, np.float32)
    d_raw = np.asarray(d_raw, np.float32)
    d_cfg = np.asarray(d_cfg, np.float32)
    DtD = d_cfg.T @ d_cfg
    DtY = np.einsum('pt,btj->bpj', d_cfg.T, y)
    L = 1.0 / np.linalg.norm(DtD)
    b, n_p, j = DtY.shape
    C_curr = np.zeros((b, n_p, j), np.float32)
    C_prev = np.zeros_like(C_curr)

    def converge(C_curr, C_prev, lam):
        t_prev = 1.0
        for _ in range(FISTA_ITER):
            grad = np.einsum('pq,bqj->bpj', DtD, C_prev) - DtY
            descent = C_prev - L * grad
            C_next = np.sign(descent) * np.maximum(np.abs(descent) - L * lam, 0.0)
            if np.linalg.norm(C_next - C_curr) < FISTA_TOL:
                break
            t_next = (1 + (1 + 4 * t_prev ** 2) ** 0.5) / 2
            t_const = (t_prev - 1) / t_next
            t_prev = t_next
            C_prev = C_next + t_const * (C_next - C_curr)
            C_curr = C_next
        return C_curr, C_prev

    lam = FISTA_LAMBD
    if FISTA_REWEIGHTED:
        for _ in range(2):
            C_curr, C_prev = converge(C_curr, C_prev, lam)
            w = 1.0 / (np.abs(C_curr) + EPS)
            w = w / np.linalg.norm(w, axis=1, keepdims=True)
            lam = lam * w * n_p
    else:
        C_curr, C_prev = converge(C_curr, C_prev, lam)

    Y_pred = np.einsum('tp,bpj->btj', d_raw, C_curr)
    return Y_pred, C_curr


# ------------------------------------ main ------------------------------------
if __name__ == "__main__":
    key = jax.random.PRNGKey(0)
    k_r, k_a, k_y = jax.random.split(key, 3)

    # deterministic pole initialisation (mirrors generate_random_poles)
    radius = jax.random.uniform(k_r, (N_POLES,), jnp.float32, 0.85, 1.15)
    per_q = N_POLES // 4
    quad_keys = jax.random.split(k_a, 4)
    angles = jnp.concatenate([
        jax.random.uniform(quad_keys[q], (per_q,), jnp.float32,
                           q * (float(np.pi) / 2), (q + 1) * (float(np.pi) / 2))
        for q in range(4)])

    y = jax.random.normal(k_y, (BATCH, T, JOINTS), jnp.float32)

    y_pred, c_pred = dyan_forward(y, radius, angles)
    jax.block_until_ready((y_pred, c_pred))

    # correctness check against a pure numpy re-implementation of the module
    d_raw = generate_dictionary(radius, angles, T)
    d_cfg = (d_raw / jnp.linalg.norm(d_raw, axis=0, keepdims=True)
             if NORMALIZE_DICT else d_raw)
    y_ref, c_ref = dyan_reference(np.asarray(y), np.asarray(d_raw),
                                  np.asarray(d_cfg))
    assert np.allclose(np.asarray(c_pred), c_ref, rtol=2e-3, atol=3e-4), "C mismatch"
    assert np.allclose(np.asarray(y_pred), y_ref, rtol=2e-3, atol=3e-4), "Y mismatch"

    print("KERNEL_OK")
</pallas_src>

<mosaic_0001>
module attributes {stable_mosaic.version = 11 : i64} {
  func.func @_dyan_fista_kernel(%arg0: i32, %arg1: memref<24x24xf32, #tpu.memory_space<vmem>>, %arg2: memref<12x24xf32, #tpu.memory_space<vmem>>, %arg3: memref<1x24xf32, #tpu.memory_space<vmem>>, %arg4: memref<12x128xf32, #tpu.memory_space<vmem>>, %arg5: memref<12x128xf32, #tpu.memory_space<vmem>>, %arg6: memref<24x128xf32, #tpu.memory_space<vmem>>, %arg7: memref<24x128xf32, #tpu.memory_space<vmem>>, %arg8: memref<24x128xf32, #tpu.memory_space<vmem>>, %arg9: memref<1xi32, #tpu.memory_space<smem>>) attributes {dimension_semantics = [#tpu.dimension_semantics<parallel>], iteration_bounds = array<i64: 1>, scalar_prefetch = 0 : i64, scratch_operands = 3 : i64, tpu.core_type = #tpu.core_type<tc>, window_params = [{pipeline_mode = #tpu.pipeline_mode<synchronous>, transform_indices = @transform_0, window_bounds = array<i64: 24, 24>}, {pipeline_mode = #tpu.pipeline_mode<synchronous>, transform_indices = @transform_1, window_bounds = array<i64: 12, 24>}, {pipeline_mode = #tpu.pipeline_mode<synchronous>, transform_indices = @transform_2, window_bounds = array<i64: 1, 24>}, {transform_indices = @transform_3, window_bounds = array<i64: 12, 128>}, {transform_indices = @transform_4, window_bounds = array<i64: 12, 128>}, {transform_indices = @transform_5, window_bounds = array<i64: 24, 128>}]} {
    %c0 = arith.constant 0 : index
    %c0_0 = arith.constant 0 : index
    %0 = vector.load %arg1[%c0, %c0_0] : memref<24x24xf32, #tpu.memory_space<vmem>>, vector<24x24xf32>
    %c0_1 = arith.constant 0 : index
    %c0_2 = arith.constant 0 : index
    %1 = vector.load %arg2[%c0_1, %c0_2] : memref<12x24xf32, #tpu.memory_space<vmem>>, vector<12x24xf32>
    %c0_3 = arith.constant 0 : index
    %c0_4 = arith.constant 0 : index
    %2 = vector.load %arg4[%c0_3, %c0_4] : memref<12x128xf32, #tpu.memory_space<vmem>>, vector<12x128xf32>
    %3 = arith.mulf %0, %0 : vector<24x24xf32>
    %4 = vector.shape_cast %3 : vector<24x24xf32> to vector<1x24x24xf32>
    %cst = arith.constant dense<0.000000e+00> : vector<1xf32>
    %5 = vector.multi_reduction <add>, %4, %cst [1, 2] : vector<1x24x24xf32> to vector<1xf32>
    %6 = vector.shape_cast %5 : vector<1xf32> to vector<1x1x1xf32>
    %7 = vector.extract %6[0, 0, 0] : f32 from vector<1x1x1xf32>
    %8 = math.rsqrt %7 : f32
    %9 = tpu.iota {dimensions = array<i32: 0>} : vector<24x24xi32>
    %10 = tpu.iota {dimensions = array<i32: 1>} : vector<24x24xi32>
    %11 = arith.cmpi eq, %9, %10 : vector<24x24xi32>
    %12 = arith.extui %11 : vector<24x24xi1> to vector<24x24xi32>
    %13 = arith.sitofp %12 : vector<24x24xi32> to vector<24x24xf32>
    %14 = vector.broadcast %8 : f32 to vector<24x24xf32>
    %15 = arith.mulf %14, %0 : vector<24x24xf32>
    %16 = arith.subf %13, %15 : vector<24x24xf32>
    %cst_5 = arith.constant dense<0.000000e+00> : vector<24x128xf32>
    %17 = tpu.matmul %1, %2, %cst_5 {dimension_numbers = #tpu.dot_dimension_numbers<[0], [0], [1], [1], [0, 1, 1, 1], [], []>} : vector<12x24xf32>, vector<12x128xf32>, vector<24x128xf32> -> vector<24x128xf32>
    %18 = vector.broadcast %8 : f32 to vector<24x128xf32>
    %19 = arith.mulf %18, %17 : vector<24x128xf32>
    %cst_6 = arith.constant 0.000000e+00 : f32
    %20 = vector.broadcast %cst_6 : f32 to vector<24x128xf32>
    %c0_7 = arith.constant 0 : index
    %c0_8 = arith.constant 0 : index
    %21 = vector.load %arg7[%c0_7, %c0_8] : memref<24x128xf32, #tpu.memory_space<vmem>>, vector<24x128xf32>
    tpu.vector_store %arg7[%c0_7, %c0_8], %20 {strides = array<i32>} : memref<24x128xf32, #tpu.memory_space<vmem>>, vector<24x128xf32>,
    %cst_9 = arith.constant 0.000000e+00 : f32
    %22 = vector.broadcast %cst_9 : f32 to vector<24x128xf32>
    %c0_10 = arith.constant 0 : index
    %c0_11 = arith.constant 0 : index
    %23 = vector.load %arg8[%c0_10, %c0_11] : memref<24x128xf32, #tpu.memory_space<vmem>>, vector<24x128xf32>
    tpu.vector_store %arg8[%c0_10, %c0_11], %22 {strides = array<i32>} : memref<24x128xf32, #tpu.memory_space<vmem>>, vector<24x128xf32>,
    %cst_12 = arith.constant 1.000000e-01 : f32
    %24 = arith.mulf %8, %cst_12 : f32
    %c0_i32 = arith.constant 0 : i32
    %c0_13 = arith.constant 0 : index
    %25 = memref.load %arg9[%c0_13] : memref<1xi32, #tpu.memory_space<smem>>
    memref.store %c0_i32, %arg9[%c0_13] : memref<1xi32, #tpu.memory_space<smem>>
    %c0_14 = arith.constant 0 : index
    %26 = memref.load %arg9[%c0_14] : memref<1xi32, #tpu.memory_space<smem>>
    %c0_i32_15 = arith.constant 0 : i32
    %27 = arith.cmpi eq, %26, %c0_i32_15 : i32
    %28 = arith.extui %27 : i1 to i32
    %cst_16 = arith.constant 1.000000e-10 : f32
    %c0_i32_17 = arith.constant 0 : i32
    %29 = arith.cmpi ne, %28, %c0_i32_17 : i32
    scf.if %29 {
      %c0_143 = arith.constant 0 : index
      %c0_144 = arith.constant 0 : index
      %153 = vector.load %arg7[%c0_143, %c0_144] : memref<24x128xf32, #tpu.memory_space<vmem>>, vector<24x128xf32>
      %c0_145 = arith.constant 0 : index
      %c0_146 = arith.constant 0 : index
      %154 = vector.load %arg8[%c0_145, %c0_146] : memref<24x128xf32, #tpu.memory_space<vmem>>, vector<24x128xf32>
      %cst_147 = arith.constant dense<0.000000e+00> : vector<24x128xf32>
      %155 = tpu.matmul %16, %154, %cst_147 {dimension_numbers = #tpu.dot_dimension_numbers<[1], [0], [0], [1], [0, 0, 1, 1], [], []>} : vector<24x24xf32>, vector<24x128xf32>, vector<24x128xf32> -> vector<24x128xf32>
      %156 = arith.addf %155, %19 : vector<24x128xf32>
      %cst_148 = arith.constant 0.000000e+00 : f32
      %157 = arith.subf %cst_148, %24 : f32
      %158 = vector.broadcast %157 : f32 to vector<24x128xf32>
      %159 = arith.maximumf %158, %156 : vector<24x128xf32>
      %160 = vector.broadcast %24 : f32 to vector<24x128xf32>
      %161 = arith.minimumf %160, %159 : vector<24x128xf32>
      %162 = arith.subf %156, %161 : vector<24x128xf32>
      %163 = arith.subf %162, %153 : vector<24x128xf32>
      %164 = arith.mulf %163, %163 : vector<24x128xf32>
      %165 = vector.shape_cast %164 : vector<24x128xf32> to vector<1x24x128xf32>
      %cst_149 = arith.constant dense<0.000000e+00> : vector<1xf32>
      %166 = vector.multi_reduction <add>, %165, %cst_149 [1, 2] : vector<1x24x128xf32> to vector<1xf32>
      %167 = vector.shape_cast %166 : vector<1xf32> to vector<1x1x1xf32>
      %168 = vector.extract %167[0, 0, 0] : f32 from vector<1x1x1xf32>
      %169 = arith.cmpf olt, %168, %cst_16 : f32
      %170 = arith.extui %169 : i1 to i32
      %c0_i32_150 = arith.constant 0 : i32
      %171 = arith.cmpi ne, %170, %c0_i32_150 : i32
      scf.if %171 {
        %c1_i32 = arith.constant 1 : i32
        %c0_152 = arith.constant 0 : index
        %175 = memref.load %arg9[%c0_152] : memref<1xi32, #tpu.memory_space<smem>>
        memref.store %c1_i32, %arg9[%c0_152] : memref<1xi32, #tpu.memory_space<smem>>
      } else {
      }
      %true = arith.constant true
      %172 = arith.xori %169, %true : i1
      %173 = arith.extui %172 : i1 to i32
      %c0_i32_151 = arith.constant 0 : i32
      %174 = arith.cmpi ne, %173, %c0_i32_151 : i32
      scf.if %174 {
        %cst_152 = arith.constant 0.000000e+00 : f32
        %175 = vector.broadcast %cst_152 : f32 to vector<24x128xf32>
        %176 = arith.mulf %175, %163 : vector<24x128xf32>
        %177 = arith.addf %162, %176 : vector<24x128xf32>
        %c0_153 = arith.constant 0 : index
        %c0_154 = arith.constant 0 : index
        %178 = vector.load %arg8[%c0_153, %c0_154] : memref<24x128xf32, #tpu.memory_space<vmem>>, vector<24x128xf32>
        tpu.vector_store %arg8[%c0_153, %c0_154], %177 {strides = array<i32>} : memref<24x128xf32, #tpu.memory_space<vmem>>, vector<24x128xf32>,
        %c0_155 = arith.constant 0 : index
        %c0_156 = arith.constant 0 : index
        %179 = vector.load %arg7[%c0_155, %c0_156] : memref<24x128xf32, #tpu.memory_space<vmem>>, vector<24x128xf32>
        tpu.vector_store %arg7[%c0_155, %c0_156], %162 {strides = array<i32>} : memref<24x128xf32, #tpu.memory_space<vmem>>, vector<24x128xf32>,
      } else {
      }
    } else {
    }
    %c0_18 = arith.constant 0 : index
    %30 = memref.load %arg9[%c0_18] : memref<1xi32, #tpu.memory_space<smem>>
    %c0_i32_19 = arith.constant 0 : i32
    %31 = arith.cmpi eq, %30, %c0_i32_19 : i32
    %32 = arith.extui %31 : i1 to i32
    %cst_20 = arith.constant 1.000000e-10 : f32
    %c0_i32_21 = arith.constant 0 : i32
    %33 = arith.cmpi ne, %32, %c0_i32_21 : i32
    scf.if %33 {
      %c0_143 = arith.constant 0 : index
      %c0_144 = arith.constant 0 : index
      %153 = vector.load %arg7[%c0_143, %c0_144] : memref<24x128xf32, #tpu.memory_space<vmem>>, vector<24x128xf32>
      %c0_145 = arith.constant 0 : index
      %c0_146 = arith.constant 0 : index
      %154 = vector.load %arg8[%c0_145, %c0_146] : memref<24x128xf32, #tpu.memory_space<vmem>>, vector<24x128xf32>
      %cst_147 = arith.constant dense<0.000000e+00> : vector<24x128xf32>
      %155 = tpu.matmul %16, %154, %cst_147 {dimension_numbers = #tpu.dot_dimension_numbers<[1], [0], [0], [1], [0, 0, 1, 1], [], []>} : vector<24x24xf32>, vector<24x128xf32>, vector<24x128xf32> -> vector<24x128xf32>
      %156 = arith.addf %155, %19 : vector<24x128xf32>
      %cst_148 = arith.constant 0.000000e+00 : f32
      %157 = arith.subf %cst_148, %24 : f32
      %158 = vector.broadcast %157 : f32 to vector<24x128xf32>
      %159 = arith.maximumf %158, %156 : vector<24x128xf32>
      %160 = vector.broadcast %24 : f32 to vector<24x128xf32>
      %161 = arith.minimumf %160, %159 : vector<24x128xf32>
      %162 = arith.subf %156, %161 : vector<24x128xf32>
      %163 = arith.subf %162, %153 : vector<24x128xf32>
      %164 = arith.mulf %163, %163 : vector<24x128xf32>
      %165 = vector.shape_cast %164 : vector<24x128xf32> to vector<1x24x128xf32>
      %cst_149 = arith.constant dense<0.000000e+00> : vector<1xf32>
      %166 = vector.multi_reduction <add>, %165, %cst_149 [1, 2] : vector<1x24x128xf32> to vector<1xf32>
      %167 = vector.shape_cast %166 : vector<1xf32> to vector<1x1x1xf32>
      %168 = vector.extract %167[0, 0, 0] : f32 from vector<1x1x1xf32>
      %169 = arith.cmpf olt, %168, %cst_20 : f32
      %170 = arith.extui %169 : i1 to i32
      %c0_i32_150 = arith.constant 0 : i32
      %171 = arith.cmpi ne, %170, %c0_i32_150 : i32
      scf.if %171 {
        %c1_i32 = arith.constant 1 : i32
        %c0_152 = arith.constant 0 : index
        %175 = memref.load %arg9[%c0_152] : memref<1xi32, #tpu.memory_space<smem>>
        memref.store %c1_i32, %arg9[%c0_152] : memref<1xi32, #tpu.memory_space<smem>>
      } else {
      }
      %true = arith.constant true
      %172 = arith.xori %169, %true : i1
      %173 = arith.extui %172 : i1 to i32
      %c0_i32_151 = arith.constant 0 : i32
      %174 = arith.cmpi ne, %173, %c0_i32_151 : i32
      scf.if %174 {
        %cst_152 = arith.constant 0.28175351 : f32
        %175 = vector.broadcast %cst_152 : f32 to vector<24x128xf32>
        %176 = arith.mulf %175, %163 : vector<24x128xf32>
        %177 = arith.addf %162, %176 : vector<24x128xf32>
        %c0_153 = arith.constant 0 : index
        %c0_154 = arith.constant 0 : index
        %178 = vector.load %arg8[%c0_153, %c0_154] : memref<24x128xf32, #tpu.memory_space<vmem>>, vector<24x128xf32>
        tpu.vector_store %arg8[%c0_153, %c0_154], %177 {strides = array<i32>} : memref<24x128xf32, #tpu.memory_space<vmem>>, vector<24x128xf32>,
        %c0_155 = arith.constant 0 : index
        %c0_156 = arith.constant 0 : index
        %179 = vector.load %arg7[%c0_155, %c0_156] : memref<24x128xf32, #tpu.memory_space<vmem>>, vector<24x128xf32>
        tpu.vector_store %arg7[%c0_155, %c0_156], %162 {strides = array<i32>} : memref<24x128xf32, #tpu.memory_space<vmem>>, vector<24x128xf32>,
      } else {
      }
    } else {
    }
    %c0_22 = arith.constant 0 : index
    %34 = memref.load %arg9[%c0_22] : memref<1xi32, #tpu.memory_space<smem>>
    %c0_i32_23 = arith.constant 0 : i32
    %35 = arith.cmpi eq, %34, %c0_i32_23 : i32
    %36 = arith.extui %35 : i1 to i32
    %cst_24 = arith.constant 1.000000e-10 : f32
    %c0_i32_25 = arith.constant 0 : i32
    %37 = arith.cmpi ne, %36, %c0_i32_25 : i32
    scf.if %37 {
      %c0_143 = arith.constant 0 : index
      %c0_144 = arith.constant 0 : index
      %153 = vector.load %arg7[%c0_143, %c0_144] : memref<24x128xf32, #tpu.memory_space<vmem>>, vector<24x128xf32>
      %c0_145 = arith.constant 0 : index
      %c0_146 = arith.constant 0 : index
      %154 = vector.load %arg8[%c0_145, %c0_146] : memref<24x128xf32, #tpu.memory_space<vmem>>, vector<24x128xf32>
      %cst_147 = arith.constant dense<0.000000e+00> : vector<24x128xf32>
      %155 = tpu.matmul %16, %154, %cst_147 {dimension_numbers = #tpu.dot_dimension_numbers<[1], [0], [0], [1], [0, 0, 1, 1], [], []>} : vector<24x24xf32>, vector<24x128xf32>, vector<24x128xf32> -> vector<24x128xf32>
      %156 = arith.addf %155, %19 : vector<24x128xf32>
      %cst_148 = arith.constant 0.000000e+00 : f32
      %157 = arith.subf %cst_148, %24 : f32
      %158 = vector.broadcast %157 : f32 to vector<24x128xf32>
      %159 = arith.maximumf %158, %156 : vector<24x128xf32>
      %160 = vector.broadcast %24 : f32 to vector<24x128xf32>
      %161 = arith.minimumf %160, %159 : vector<24x128xf32>
      %162 = arith.subf %156, %161 : vector<24x128xf32>
      %163 = arith.subf %162, %153 : vector<24x128xf32>
      %164 = arith.mulf %163, %163 : vector<24x128xf32>
      %165 = vector.shape_cast %164 : vector<24x128xf32> to vector<1x24x128xf32>
      %cst_149 = arith.constant dense<0.000000e+00> : vector<1xf32>
      %166 = vector.multi_reduction <add>, %165, %cst_149 [1, 2] : vector<1x24x128xf32> to vector<1xf32>
      %167 = vector.shape_cast %166 : vector<1xf32> to vector<1x1x1xf32>
      %168 = vector.extract %167[0, 0, 0] : f32 from vector<1x1x1xf32>
      %169 = arith.cmpf olt, %168, %cst_24 : f32
      %170 = arith.extui %169 : i1 to i32
      %c0_i32_150 = arith.constant 0 : i32
      %171 = arith.cmpi ne, %170, %c0_i32_150 : i32
      scf.if %171 {
        %c1_i32 = arith.constant 1 : i32
        %c0_152 = arith.constant 0 : index
        %175 = memref.load %arg9[%c0_152] : memref<1xi32, #tpu.memory_space<smem>>
        memref.store %c1_i32, %arg9[%c0_152] : memref<1xi32, #tpu.memory_space<smem>>
      } else {
      }
      %true = arith.constant true
      %172 = arith.xori %169, %true : i1
      %173 = arith.extui %172 : i1 to i32
      %c0_i32_151 = arith.constant 0 : i32
      %174 = arith.cmpi ne, %173, %c0_i32_151 : i32
      scf.if %174 {
        %cst_152 = arith.constant 0.434042782 : f32
        %175 = vector.broadcast %cst_152 : f32 to vector<24x128xf32>
        %176 = arith.mulf %175, %163 : vector<24x128xf32>
        %177 = arith.addf %162, %176 : vector<24x128xf32>
        %c0_153 = arith.constant 0 : index
        %c0_154 = arith.constant 0 : index
        %178 = vector.load %arg8[%c0_153, %c0_154] : memref<24x128xf32, #tpu.memory_space<vmem>>, vector<24x128xf32>
        tpu.vector_store %arg8[%c0_153, %c0_154], %177 {strides = array<i32>} : memref<24x128xf32, #tpu.memory_space<vmem>>, vector<24x128xf32>,
        %c0_155 = arith.constant 0 : index
        %c0_156 = arith.constant 0 : index
        %179 = vector.load %arg7[%c0_155, %c0_156] : memref<24x128xf32, #tpu.memory_space<vmem>>, vector<24x128xf32>
        tpu.vector_store %arg7[%c0_155, %c0_156], %162 {strides = array<i32>} : memref<24x128xf32, #tpu.memory_space<vmem>>, vector<24x128xf32>,
      } else {
      }
    } else {
    }
    %c0_26 = arith.constant 0 : index
    %38 = memref.load %arg9[%c0_26] : memref<1xi32, #tpu.memory_space<smem>>
    %c0_i32_27 = arith.constant 0 : i32
    %39 = arith.cmpi eq, %38, %c0_i32_27 : i32
    %40 = arith.extui %39 : i1 to i32
    %cst_28 = arith.constant 1.000000e-10 : f32
    %c0_i32_29 = arith.constant 0 : i32
    %41 = arith.cmpi ne, %40, %c0_i32_29 : i32
    scf.if %41 {
      %c0_143 = arith.constant 0 : index
      %c0_144 = arith.constant 0 : index
      %153 = vector.load %arg7[%c0_143, %c0_144] : memref<24x128xf32, #tpu.memory_space<vmem>>, vector<24x128xf32>
      %c0_145 = arith.constant 0 : index
      %c0_146 = arith.constant 0 : index
      %154 = vector.load %arg8[%c0_145, %c0_146] : memref<24x128xf32, #tpu.memory_space<vmem>>, vector<24x128xf32>
      %cst_147 = arith.constant dense<0.000000e+00> : vector<24x128xf32>
      %155 = tpu.matmul %16, %154, %cst_147 {dimension_numbers = #tpu.dot_dimension_numbers<[1], [0], [0], [1], [0, 0, 1, 1], [], []>} : vector<24x24xf32>, vector<24x128xf32>, vector<24x128xf32> -> vector<24x128xf32>
      %156 = arith.addf %155, %19 : vector<24x128xf32>
      %cst_148 = arith.constant 0.000000e+00 : f32
      %157 = arith.subf %cst_148, %24 : f32
      %158 = vector.broadcast %157 : f32 to vector<24x128xf32>
      %159 = arith.maximumf %158, %156 : vector<24x128xf32>
      %160 = vector.broadcast %24 : f32 to vector<24x128xf32>
      %161 = arith.minimumf %160, %159 : vector<24x128xf32>
      %162 = arith.subf %156, %161 : vector<24x128xf32>
      %163 = arith.subf %162, %153 : vector<24x128xf32>
      %164 = arith.mulf %163, %163 : vector<24x128xf32>
      %165 = vector.shape_cast %164 : vector<24x128xf32> to vector<1x24x128xf32>
      %cst_149 = arith.constant dense<0.000000e+00> : vector<1xf32>
      %166 = vector.multi_reduction <add>, %165, %cst_149 [1, 2] : vector<1x24x128xf32> to vector<1xf32>
      %167 = vector.shape_cast %166 : vector<1xf32> to vector<1x1x1xf32>
      %168 = vector.extract %167[0, 0, 0] : f32 from vector<1x1x1xf32>
      %169 = arith.cmpf olt, %168, %cst_28 : f32
      %170 = arith.extui %169 : i1 to i32
      %c0_i32_150 = arith.constant 0 : i32
      %171 = arith.cmpi ne, %170, %c0_i32_150 : i32
      scf.if %171 {
        %c1_i32 = arith.constant 1 : i32
        %c0_152 = arith.constant 0 : index
        %175 = memref.load %arg9[%c0_152] : memref<1xi32, #tpu.memory_space<smem>>
        memref.store %c1_i32, %arg9[%c0_152] : memref<1xi32, #tpu.memory_space<smem>>
      } else {
      }
      %true = arith.constant true
      %172 = arith.xori %169, %true : i1
      %173 = arith.extui %172 : i1 to i32
      %c0_i32_151 = arith.constant 0 : i32
      %174 = arith.cmpi ne, %173, %c0_i32_151 : i32
      scf.if %174 {
        %cst_152 = arith.constant 0.531063795 : f32
        %175 = vector.broadcast %cst_152 : f32 to vector<24x128xf32>
        %176 = arith.mulf %175, %163 : vector<24x128xf32>
        %177 = arith.addf %162, %176 : vector<24x128xf32>
        %c0_153 = arith.constant 0 : index
        %c0_154 = arith.constant 0 : index
        %178 = vector.load %arg8[%c0_153, %c0_154] : memref<24x128xf32, #tpu.memory_space<vmem>>, vector<24x128xf32>
        tpu.vector_store %arg8[%c0_153, %c0_154], %177 {strides = array<i32>} : memref<24x128xf32, #tpu.memory_space<vmem>>, vector<24x128xf32>,
        %c0_155 = arith.constant 0 : index
        %c0_156 = arith.constant 0 : index
        %179 = vector.load %arg7[%c0_155, %c0_156] : memref<24x128xf32, #tpu.memory_space<vmem>>, vector<24x128xf32>
        tpu.vector_store %arg7[%c0_155, %c0_156], %162 {strides = array<i32>} : memref<24x128xf32, #tpu.memory_space<vmem>>, vector<24x128xf32>,
      } else {
      }
    } else {
    }
    %c0_30 = arith.constant 0 : index
    %42 = memref.load %arg9[%c0_30] : memref<1xi32, #tpu.memory_space<smem>>
    %c0_i32_31 = arith.constant 0 : i32
    %43 = arith.cmpi eq, %42, %c0_i32_31 : i32
    %44 = arith.extui %43 : i1 to i32
    %cst_32 = arith.constant 1.000000e-10 : f32
    %c0_i32_33 = arith.constant 0 : i32
    %45 = arith.cmpi ne, %44, %c0_i32_33 : i32
    scf.if %45 {
      %c0_143 = arith.constant 0 : index
      %c0_144 = arith.constant 0 : index
      %153 = vector.load %arg7[%c0_143, %c0_144] : memref<24x128xf32, #tpu.memory_space<vmem>>, vector<24x128xf32>
      %c0_145 = arith.constant 0 : index
      %c0_146 = arith.constant 0 : index
      %154 = vector.load %arg8[%c0_145, %c0_146] : memref<24x128xf32, #tpu.memory_space<vmem>>, vector<24x128xf32>
      %cst_147 = arith.constant dense<0.000000e+00> : vector<24x128xf32>
      %155 = tpu.matmul %16, %154, %cst_147 {dimension_numbers = #tpu.dot_dimension_numbers<[1], [0], [0], [1], [0, 0, 1, 1], [], []>} : vector<24x24xf32>, vector<24x128xf32>, vector<24x128xf32> -> vector<24x128xf32>
      %156 = arith.addf %155, %19 : vector<24x128xf32>
      %cst_148 = arith.constant 0.000000e+00 : f32
      %157 = arith.subf %cst_148, %24 : f32
      %158 = vector.broadcast %157 : f32 to vector<24x128xf32>
      %159 = arith.maximumf %158, %156 : vector<24x128xf32>
      %160 = vector.broadcast %24 : f32 to vector<24x128xf32>
      %161 = arith.minimumf %160, %159 : vector<24x128xf32>
      %162 = arith.subf %156, %161 : vector<24x128xf32>
      %163 = arith.subf %162, %153 : vector<24x128xf32>
      %164 = arith.mulf %163, %163 : vector<24x128xf32>
      %165 = vector.shape_cast %164 : vector<24x128xf32> to vector<1x24x128xf32>
      %cst_149 = arith.constant dense<0.000000e+00> : vector<1xf32>
      %166 = vector.multi_reduction <add>, %165, %cst_149 [1, 2] : vector<1x24x128xf32> to vector<1xf32>
      %167 = vector.shape_cast %166 : vector<1xf32> to vector<1x1x1xf32>
      %168 = vector.extract %167[0, 0, 0] : f32 from vector<1x1x1xf32>
      %169 = arith.cmpf olt, %168, %cst_32 : f32
      %170 = arith.extui %169 : i1 to i32
      %c0_i32_150 = arith.constant 0 : i32
      %171 = arith.cmpi ne, %170, %c0_i32_150 : i32
      scf.if %171 {
        %c1_i32 = arith.constant 1 : i32
        %c0_152 = arith.constant 0 : index
        %175 = memref.load %arg9[%c0_152] : memref<1xi32, #tpu.memory_space<smem>>
        memref.store %c1_i32, %arg9[%c0_152] : memref<1xi32, #tpu.memory_space<smem>>
      } else {
      }
      %true = arith.constant true
      %172 = arith.xori %169, %true : i1
      %173 = arith.extui %172 : i1 to i32
      %c0_i32_151 = arith.constant 0 : i32
      %174 = arith.cmpi ne, %173, %c0_i32_151 : i32
      scf.if %174 {
        %cst_152 = arith.constant 0.598778605 : f32
        %175 = vector.broadcast %cst_152 : f32 to vector<24x128xf32>
        %176 = arith.mulf %175, %163 : vector<24x128xf32>
        %177 = arith.addf %162, %176 : vector<24x128xf32>
        %c0_153 = arith.constant 0 : index
        %c0_154 = arith.constant 0 : index
        %178 = vector.load %arg8[%c0_153, %c0_154] : memref<24x128xf32, #tpu.memory_space<vmem>>, vector<24x128xf32>
        tpu.vector_store %arg8[%c0_153, %c0_154], %177 {strides = array<i32>} : memref<24x128xf32, #tpu.memory_space<vmem>>, vector<24x128xf32>,
        %c0_155 = arith.constant 0 : index
        %c0_156 = arith.constant 0 : index
        %179 = vector.load %arg7[%c0_155, %c0_156] : memref<24x128xf32, #tpu.memory_space<vmem>>, vector<24x128xf32>
        tpu.vector_store %arg7[%c0_155, %c0_156], %162 {strides = array<i32>} : memref<24x128xf32, #tpu.memory_space<vmem>>, vector<24x128xf32>,
      } else {
      }
    } else {
    }
    %c0_34 = arith.constant 0 : index
    %46 = memref.load %arg9[%c0_34] : memref<1xi32, #tpu.memory_space<smem>>
    %c0_i32_35 = arith.constant 0 : i32
    %47 = arith.cmpi eq, %46, %c0_i32_35 : i32
    %48 = arith.extui %47 : i1 to i32
    %cst_36 = arith.constant 1.000000e-10 : f32
    %c0_i32_37 = arith.constant 0 : i32
    %49 = arith.cmpi ne, %48, %c0_i32_37 : i32
    scf.if %49 {
      %c0_143 = arith.constant 0 : index
      %c0_144 = arith.constant 0 : index
      %153 = vector.load %arg7[%c0_143, %c0_144] : memref<24x128xf32, #tpu.memory_space<vmem>>, vector<24x128xf32>
      %c0_145 = arith.constant 0 : index
      %c0_146 = arith.constant 0 : index
      %154 = vector.load %arg8[%c0_145, %c0_146] : memref<24x128xf32, #tpu.memory_space<vmem>>, vector<24x128xf32>
      %cst_147 = arith.constant dense<0.000000e+00> : vector<24x128xf32>
      %155 = tpu.matmul %16, %154, %cst_147 {dimension_numbers = #tpu.dot_dimension_numbers<[1], [0], [0], [1], [0, 0, 1, 1], [], []>} : vector<24x24xf32>, vector<24x128xf32>, vector<24x128xf32> -> vector<24x128xf32>
      %156 = arith.addf %155, %19 : vector<24x128xf32>
      %cst_148 = arith.constant 0.000000e+00 : f32
      %157 = arith.subf %cst_148, %24 : f32
      %158 = vector.broadcast %157 : f32 to vector<24x128xf32>
      %159 = arith.maximumf %158, %156 : vector<24x128xf32>
      %160 = vector.broadcast %24 : f32 to vector<24x128xf32>
      %161 = arith.minimumf %160, %159 : vector<24x128xf32>
      %162 = arith.subf %156, %161 : vector<24x128xf32>
      %163 = arith.subf %162, %153 : vector<24x128xf32>
      %164 = arith.mulf %163, %163 : vector<24x128xf32>
      %165 = vector.shape_cast %164 : vector<24x128xf32> to vector<1x24x128xf32>
      %cst_149 = arith.constant dense<0.000000e+00> : vector<1xf32>
      %166 = vector.multi_reduction <add>, %165, %cst_149 [1, 2] : vector<1x24x128xf32> to vector<1xf32>
      %167 = vector.shape_cast %166 : vector<1xf32> to vector<1x1x1xf32>
      %168 = vector.extract %167[0, 0, 0] : f32 from vector<1x1x1xf32>
      %169 = arith.cmpf olt, %168, %cst_36 : f32
      %170 = arith.extui %169 : i1 to i32
      %c0_i32_150 = arith.constant 0 : i32
      %171 = arith.cmpi ne, %170, %c0_i32_150 : i32
      scf.if %171 {
        %c1_i32 = arith.constant 1 : i32
        %c0_152 = arith.constant 0 : index
        %175 = memref.load %arg9[%c0_152] : memref<1xi32, #tpu.memory_space<smem>>
        memref.store %c1_i32, %arg9[%c0_152] : memref<1xi32, #tpu.memory_space<smem>>
      } else {
      }
      %true = arith.constant true
      %172 = arith.xori %169, %true : i1
      %173 = arith.extui %172 : i1 to i32
      %c0_i32_151 = arith.constant 0 : i32
      %174 = arith.cmpi ne, %173, %c0_i32_151 : i32
      scf.if %174 {
        %cst_152 = arith.constant 0.648923337 : f32
        %175 = vector.broadcast %cst_152 : f32 to vector<24x128xf32>
        %176 = arith.mulf %175, %163 : vector<24x128xf32>
        %177 = arith.addf %162, %176 : vector<24x128xf32>
        %c0_153 = arith.constant 0 : index
        %c0_154 = arith.constant 0 : index
        %178 = vector.load %arg8[%c0_153, %c0_154] : memref<24x128xf32, #tpu.memory_space<vmem>>, vector<24x128xf32>
        tpu.vector_store %arg8[%c0_153, %c0_154], %177 {strides = array<i32>} : memref<24x128xf32, #tpu.memory_space<vmem>>, vector<24x128xf32>,
        %c0_155 = arith.constant 0 : index
        %c0_156 = arith.constant 0 : index
        %179 = vector.load %arg7[%c0_155, %c0_156] : memref<24x128xf32, #tpu.memory_space<vmem>>, vector<24x128xf32>
        tpu.vector_store %arg7[%c0_155, %c0_156], %162 {strides = array<i32>} : memref<24x128xf32, #tpu.memory_space<vmem>>, vector<24x128xf32>,
      } else {
      }
    } else {
    }
    %c0_38 = arith.constant 0 : index
    %50 = memref.load %arg9[%c0_38] : memref<1xi32, #tpu.memory_space<smem>>
    %c0_i32_39 = arith.constant 0 : i32
    %51 = arith.cmpi eq, %50, %c0_i32_39 : i32
    %52 = arith.extui %51 : i1 to i32
    %cst_40 = arith.constant 1.000000e-10 : f32
    %c0_i32_41 = arith.constant 0 : i32
    %53 = arith.cmpi ne, %52, %c0_i32_41 : i32
    scf.if %53 {
      %c0_143 = arith.constant 0 : index
      %c0_144 = arith.constant 0 : index
      %153 = vector.load %arg7[%c0_143, %c0_144] : memref<24x128xf32, #tpu.memory_space<vmem>>, vector<24x128xf32>
      %c0_145 = arith.constant 0 : index
      %c0_146 = arith.constant 0 : index
      %154 = vector.load %arg8[%c0_145, %c0_146] : memref<24x128xf32, #tpu.memory_space<vmem>>, vector<24x128xf32>
      %cst_147 = arith.constant dense<0.000000e+00> : vector<24x128xf32>
      %155 = tpu.matmul %16, %154, %cst_147 {dimension_numbers = #tpu.dot_dimension_numbers<[1], [0], [0], [1], [0, 0, 1, 1], [], []>} : vector<24x24xf32>, vector<24x128xf32>, vector<24x128xf32> -> vector<24x128xf32>
      %156 = arith.addf %155, %19 : vector<24x128xf32>
      %cst_148 = arith.constant 0.000000e+00 : f32
      %157 = arith.subf %cst_148, %24 : f32
      %158 = vector.broadcast %157 : f32 to vector<24x128xf32>
      %159 = arith.maximumf %158, %156 : vector<24x128xf32>
      %160 = vector.broadcast %24 : f32 to vector<24x128xf32>
      %161 = arith.minimumf %160, %159 : vector<24x128xf32>
      %162 = arith.subf %156, %161 : vector<24x128xf32>
      %163 = arith.subf %162, %153 : vector<24x128xf32>
      %164 = arith.mulf %163, %163 : vector<24x128xf32>
      %165 = vector.shape_cast %164 : vector<24x128xf32> to vector<1x24x128xf32>
      %cst_149 = arith.constant dense<0.000000e+00> : vector<1xf32>
      %166 = vector.multi_reduction <add>, %165, %cst_149 [1, 2] : vector<1x24x128xf32> to vector<1xf32>
      %167 = vector.shape_cast %166 : vector<1xf32> to vector<1x1x1xf32>
      %168 = vector.extract %167[0, 0, 0] : f32 from vector<1x1x1xf32>
      %169 = arith.cmpf olt, %168, %cst_40 : f32
      %170 = arith.extui %169 : i1 to i32
      %c0_i32_150 = arith.constant 0 : i32
      %171 = arith.cmpi ne, %170, %c0_i32_150 : i32
      scf.if %171 {
        %c1_i32 = arith.constant 1 : i32
        %c0_152 = arith.constant 0 : index
        %175 = memref.load %arg9[%c0_152] : memref<1xi32, #tpu.memory_space<smem>>
        memref.store %c1_i32, %arg9[%c0_152] : memref<1xi32, #tpu.memory_space<smem>>
      } else {
      }
      %true = arith.constant true
      %172 = arith.xori %169, %true : i1
      %173 = arith.extui %172 : i1 to i32
      %c0_i32_151 = arith.constant 0 : i32
      %174 = arith.cmpi ne, %173, %c0_i32_151 : i32
      scf.if %174 {
        %cst_152 = arith.constant 0.687645852 : f32
        %175 = vector.broadcast %cst_152 : f32 to vector<24x128xf32>
        %176 = arith.mulf %175, %163 : vector<24x128xf32>
        %177 = arith.addf %162, %176 : vector<24x128xf32>
        %c0_153 = arith.constant 0 : index
        %c0_154 = arith.constant 0 : index
        %178 = vector.load %arg8[%c0_153, %c0_154] : memref<24x128xf32, #tpu.memory_space<vmem>>, vector<24x128xf32>
        tpu.vector_store %arg8[%c0_153, %c0_154], %177 {strides = array<i32>} : memref<24x128xf32, #tpu.memory_space<vmem>>, vector<24x128xf32>,
        %c0_155 = arith.constant 0 : index
        %c0_156 = arith.constant 0 : index
        %179 = vector.load %arg7[%c0_155, %c0_156] : memref<24x128xf32, #tpu.memory_space<vmem>>, vector<24x128xf32>
        tpu.vector_store %arg7[%c0_155, %c0_156], %162 {strides = array<i32>} : memref<24x128xf32, #tpu.memory_space<vmem>>, vector<24x128xf32>,
      } else {
      }
    } else {
    }
    %c0_42 = arith.constant 0 : index
    %54 = memref.load %arg9[%c0_42] : memref<1xi32, #tpu.memory_space<smem>>
    %c0_i32_43 = arith.constant 0 : i32
    %55 = arith.cmpi eq, %54, %c0_i32_43 : i32
    %56 = arith.extui %55 : i1 to i32
    %cst_44 = arith.constant 1.000000e-10 : f32
    %c0_i32_45 = arith.constant 0 : i32
    %57 = arith.cmpi ne, %56, %c0_i32_45 : i32
    scf.if %57 {
      %c0_143 = arith.constant 0 : index
      %c0_144 = arith.constant 0 : index
      %153 = vector.load %arg7[%c0_143, %c0_144] : memref<24x128xf32, #tpu.memory_space<vmem>>, vector<24x128xf32>
      %c0_145 = arith.constant 0 : index
      %c0_146 = arith.constant 0 : index
      %154 = vector.load %arg8[%c0_145, %c0_146] : memref<24x128xf32, #tpu.memory_space<vmem>>, vector<24x128xf32>
      %cst_147 = arith.constant dense<0.000000e+00> : vector<24x128xf32>
      %155 = tpu.matmul %16, %154, %cst_147 {dimension_numbers = #tpu.dot_dimension_numbers<[1], [0], [0], [1], [0, 0, 1, 1], [], []>} : vector<24x24xf32>, vector<24x128xf32>, vector<24x128xf32> -> vector<24x128xf32>
      %156 = arith.addf %155, %19 : vector<24x128xf32>
      %cst_148 = arith.constant 0.000000e+00 : f32
      %157 = arith.subf %cst_148, %24 : f32
      %158 = vector.broadcast %157 : f32 to vector<24x128xf32>
      %159 = arith.maximumf %158, %156 : vector<24x128xf32>
      %160 = vector.broadcast %24 : f32 to vector<24x128xf32>
      %161 = arith.minimumf %160, %159 : vector<24x128xf32>
      %162 = arith.subf %156, %161 : vector<24x128xf32>
      %163 = arith.subf %162, %153 : vector<24x128xf32>
      %164 = arith.mulf %163, %163 : vector<24x128xf32>
      %165 = vector.shape_cast %164 : vector<24x128xf32> to vector<1x24x128xf32>
      %cst_149 = arith.constant dense<0.000000e+00> : vector<1xf32>
      %166 = vector.multi_reduction <add>, %165, %cst_149 [1, 2] : vector<1x24x128xf32> to vector<1xf32>
      %167 = vector.shape_cast %166 : vector<1xf32> to vector<1x1x1xf32>
      %168 = vector.extract %167[0, 0, 0] : f32 from vector<1x1x1xf32>
      %169 = arith.cmpf olt, %168, %cst_44 : f32
      %170 = arith.extui %169 : i1 to i32
      %c0_i32_150 = arith.constant 0 : i32
      %171 = arith.cmpi ne, %170, %c0_i32_150 : i32
      scf.if %171 {
        %c1_i32 = arith.constant 1 : i32
        %c0_152 = arith.constant 0 : index
        %175 = memref.load %arg9[%c0_152] : memref<1xi32, #tpu.memory_space<smem>>
        memref.store %c1_i32, %arg9[%c0_152] : memref<1xi32, #tpu.memory_space<smem>>
      } else {
      }
      %true = arith.constant true
      %172 = arith.xori %169, %true : i1
      %173 = arith.extui %172 : i1 to i32
      %c0_i32_151 = arith.constant 0 : i32
      %174 = arith.cmpi ne, %173, %c0_i32_151 : i32
      scf.if %174 {
        %cst_152 = arith.constant 0.718499839 : f32
        %175 = vector.broadcast %cst_152 : f32 to vector<24x128xf32>
        %176 = arith.mulf %175, %163 : vector<24x128xf32>
        %177 = arith.addf %162, %176 : vector<24x128xf32>
        %c0_153 = arith.constant 0 : index
        %c0_154 = arith.constant 0 : index
        %178 = vector.load %arg8[%c0_153, %c0_154] : memref<24x128xf32, #tpu.memory_space<vmem>>, vector<24x128xf32>
        tpu.vector_store %arg8[%c0_153, %c0_154], %177 {strides = array<i32>} : memref<24x128xf32, #tpu.memory_space<vmem>>, vector<24x128xf32>,
        %c0_155 = arith.constant 0 : index
        %c0_156 = arith.constant 0 : index
        %179 = vector.load %arg7[%c0_155, %c0_156] : memref<24x128xf32, #tpu.memory_space<vmem>>, vector<24x128xf32>
        tpu.vector_store %arg7[%c0_155, %c0_156], %162 {strides = array<i32>} : memref<24x128xf32, #tpu.memory_space<vmem>>, vector<24x128xf32>,
      } else {
      }
    } else {
    }
    %c0_46 = arith.constant 0 : index
    %58 = memref.load %arg9[%c0_46] : memref<1xi32, #tpu.memory_space<smem>>
    %c0_i32_47 = arith.constant 0 : i32
    %59 = arith.cmpi eq, %58, %c0_i32_47 : i32
    %60 = arith.extui %59 : i1 to i32
    %cst_48 = arith.constant 1.000000e-10 : f32
    %c0_i32_49 = arith.constant 0 : i32
    %61 = arith.cmpi ne, %60, %c0_i32_49 : i32
    scf.if %61 {
      %c0_143 = arith.constant 0 : index
      %c0_144 = arith.constant 0 : index
      %153 = vector.load %arg7[%c0_143, %c0_144] : memref<24x128xf32, #tpu.memory_space<vmem>>, vector<24x128xf32>
      %c0_145 = arith.constant 0 : index
      %c0_146 = arith.constant 0 : index
      %154 = vector.load %arg8[%c0_145, %c0_146] : memref<24x128xf32, #tpu.memory_space<vmem>>, vector<24x128xf32>
      %cst_147 = arith.constant dense<0.000000e+00> : vector<24x128xf32>
      %155 = tpu.matmul %16, %154, %cst_147 {dimension_numbers = #tpu.dot_dimension_numbers<[1], [0], [0], [1], [0, 0, 1, 1], [], []>} : vector<24x24xf32>, vector<24x128xf32>, vector<24x128xf32> -> vector<24x128xf32>
      %156 = arith.addf %155, %19 : vector<24x128xf32>
      %cst_148 = arith.constant 0.000000e+00 : f32
      %157 = arith.subf %cst_148, %24 : f32
      %158 = vector.broadcast %157 : f32 to vector<24x128xf32>
      %159 = arith.maximumf %158, %156 : vector<24x128xf32>
      %160 = vector.broadcast %24 : f32 to vector<24x128xf32>
      %161 = arith.minimumf %160, %159 : vector<24x128xf32>
      %162 = arith.subf %156, %161 : vector<24x128xf32>
      %163 = arith.subf %162, %153 : vector<24x128xf32>
      %164 = arith.mulf %163, %163 : vector<24x128xf32>
      %165 = vector.shape_cast %164 : vector<24x128xf32> to vector<1x24x128xf32>
      %cst_149 = arith.constant dense<0.000000e+00> : vector<1xf32>
      %166 = vector.multi_reduction <add>, %165, %cst_149 [1, 2] : vector<1x24x128xf32> to vector<1xf32>
      %167 = vector.shape_cast %166 : vector<1xf32> to vector<1x1x1xf32>
      %168 = vector.extract %167[0, 0, 0] : f32 from vector<1x1x1xf32>
      %169 = arith.cmpf olt, %168, %cst_48 : f32
      %170 = arith.extui %169 : i1 to i32
      %c0_i32_150 = arith.constant 0 : i32
      %171 = arith.cmpi ne, %170, %c0_i32_150 : i32
      scf.if %171 {
        %c1_i32 = arith.constant 1 : i32
        %c0_152 = arith.constant 0 : index
        %175 = memref.load %arg9[%c0_152] : memref<1xi32, #tpu.memory_space<smem>>
        memref.store %c1_i32, %arg9[%c0_152] : memref<1xi32, #tpu.memory_space<smem>>
      } else {
      }
      %true = arith.constant true
      %172 = arith.xori %169, %true : i1
      %173 = arith.extui %172 : i1 to i32
      %c0_i32_151 = arith.constant 0 : i32
      %174 = arith.cmpi ne, %173, %c0_i32_151 : i32
      scf.if %174 {
        %cst_152 = arith.constant 7.436910e-01 : f32
        %175 = vector.broadcast %cst_152 : f32 to vector<24x128xf32>
        %176 = arith.mulf %175, %163 : vector<24x128xf32>
        %177 = arith.addf %162, %176 : vector<24x128xf32>
        %c0_153 = arith.constant 0 : index
        %c0_154 = arith.constant 0 : index
        %178 = vector.load %arg8[%c0_153, %c0_154] : memref<24x128xf32, #tpu.memory_space<vmem>>, vector<24x128xf32>
        tpu.vector_store %arg8[%c0_153, %c0_154], %177 {strides = array<i32>} : memref<24x128xf32, #tpu.memory_space<vmem>>, vector<24x128xf32>,
        %c0_155 = arith.constant 0 : index
        %c0_156 = arith.constant 0 : index
        %179 = vector.load %arg7[%c0_155, %c0_156] : memref<24x128xf32, #tpu.memory_space<vmem>>, vector<24x128xf32>
        tpu.vector_store %arg7[%c0_155, %c0_156], %162 {strides = array<i32>} : memref<24x128xf32, #tpu.memory_space<vmem>>, vector<24x128xf32>,
      } else {
      }
    } else {
    }
    %c0_50 = arith.constant 0 : index
    %62 = memref.load %arg9[%c0_50] : memref<1xi32, #tpu.memory_space<smem>>
    %c0_i32_51 = arith.constant 0 : i32
    %63 = arith.cmpi eq, %62, %c0_i32_51 : i32
    %64 = arith.extui %63 : i1 to i32
    %cst_52 = arith.constant 1.000000e-10 : f32
    %c0_i32_53 = arith.constant 0 : i32
    %65 = arith.cmpi ne, %64, %c0_i32_53 : i32
    scf.if %65 {
      %c0_143 = arith.constant 0 : index
      %c0_144 = arith.constant 0 : index
      %153 = vector.load %arg7[%c0_143, %c0_144] : memref<24x128xf32, #tpu.memory_space<vmem>>, vector<24x128xf32>
      %c0_145 = arith.constant 0 : index
      %c0_146 = arith.constant 0 : index
      %154 = vector.load %arg8[%c0_145, %c0_146] : memref<24x128xf32, #tpu.memory_space<vmem>>, vector<24x128xf32>
      %cst_147 = arith.constant dense<0.000000e+00> : vector<24x128xf32>
      %155 = tpu.matmul %16, %154, %cst_147 {dimension_numbers = #tpu.dot_dimension_numbers<[1], [0], [0], [1], [0, 0, 1, 1], [], []>} : vector<24x24xf32>, vector<24x128xf32>, vector<24x128xf32> -> vector<24x128xf32>
      %156 = arith.addf %155, %19 : vector<24x128xf32>
      %cst_148 = arith.constant 0.000000e+00 : f32
      %157 = arith.subf %cst_148, %24 : f32
      %158 = vector.broadcast %157 : f32 to vector<24x128xf32>
      %159 = arith.maximumf %158, %156 : vector<24x128xf32>
      %160 = vector.broadcast %24 : f32 to vector<24x128xf32>
      %161 = arith.minimumf %160, %159 : vector<24x128xf32>
      %162 = arith.subf %156, %161 : vector<24x128xf32>
      %163 = arith.subf %162, %153 : vector<24x128xf32>
      %164 = arith.mulf %163, %163 : vector<24x128xf32>
      %165 = vector.shape_cast %164 : vector<24x128xf32> to vector<1x24x128xf32>
      %cst_149 = arith.constant dense<0.000000e+00> : vector<1xf32>
      %166 = vector.multi_reduction <add>, %165, %cst_149 [1, 2] : vector<1x24x128xf32> to vector<1xf32>
      %167 = vector.shape_cast %166 : vector<1xf32> to vector<1x1x1xf32>
      %168 = vector.extract %167[0, 0, 0] : f32 from vector<1x1x1xf32>
      %169 = arith.cmpf olt, %168, %cst_52 : f32
      %170 = arith.extui %169 : i1 to i32
      %c0_i32_150 = arith.constant 0 : i32
      %171 = arith.cmpi ne, %170, %c0_i32_150 : i32
      scf.if %171 {
        %c1_i32 = arith.constant 1 : i32
        %c0_152 = arith.constant 0 : index
        %175 = memref.load %arg9[%c0_152] : memref<1xi32, #tpu.memory_space<smem>>
        memref.store %c1_i32, %arg9[%c0_152] : memref<1xi32, #tpu.memory_space<smem>>
      } else {
      }
      %true = arith.constant true
      %172 = arith.xori %169, %true : i1
      %173 = arith.extui %172 : i1 to i32
      %c0_i32_151 = arith.constant 0 : i32
      %174 = arith.cmpi ne, %173, %c0_i32_151 : i32
      scf.if %174 {
        %cst_152 = arith.constant 0.764664709 : f32
        %175 = vector.broadcast %cst_152 : f32 to vector<24x128xf32>
        %176 = arith.mulf %175, %163 : vector<24x128xf32>
        %177 = arith.addf %162, %176 : vector<24x128xf32>
        %c0_153 = arith.constant 0 : index
        %c0_154 = arith.constant 0 : index
        %178 = vector.load %arg8[%c0_153, %c0_154] : memref<24x128xf32, #tpu.memory_space<vmem>>, vector<24x128xf32>
        tpu.vector_store %arg8[%c0_153, %c0_154], %177 {strides = array<i32>} : memref<24x128xf32, #tpu.memory_space<vmem>>, vector<24x128xf32>,
        %c0_155 = arith.constant 0 : index
        %c0_156 = arith.constant 0 : index
        %179 = vector.load %arg7[%c0_155, %c0_156] : memref<24x128xf32, #tpu.memory_space<vmem>>, vector<24x128xf32>
        tpu.vector_store %arg7[%c0_155, %c0_156], %162 {strides = array<i32>} : memref<24x128xf32, #tpu.memory_space<vmem>>, vector<24x128xf32>,
      } else {
      }
    } else {
    }
    %c0_54 = arith.constant 0 : index
    %66 = memref.load %arg9[%c0_54] : memref<1xi32, #tpu.memory_space<smem>>
    %c0_i32_55 = arith.constant 0 : i32
    %67 = arith.cmpi eq, %66, %c0_i32_55 : i32
    %68 = arith.extui %67 : i1 to i32
    %cst_56 = arith.constant 1.000000e-10 : f32
    %c0_i32_57 = arith.constant 0 : i32
    %69 = arith.cmpi ne, %68, %c0_i32_57 : i32
    scf.if %69 {
      %c0_143 = arith.constant 0 : index
      %c0_144 = arith.constant 0 : index
      %153 = vector.load %arg7[%c0_143, %c0_144] : memref<24x128xf32, #tpu.memory_space<vmem>>, vector<24x128xf32>
      %c0_145 = arith.constant 0 : index
      %c0_146 = arith.constant 0 : index
      %154 = vector.load %arg8[%c0_145, %c0_146] : memref<24x128xf32, #tpu.memory_space<vmem>>, vector<24x128xf32>
      %cst_147 = arith.constant dense<0.000000e+00> : vector<24x128xf32>
      %155 = tpu.matmul %16, %154, %cst_147 {dimension_numbers = #tpu.dot_dimension_numbers<[1], [0], [0], [1], [0, 0, 1, 1], [], []>} : vector<24x24xf32>, vector<24x128xf32>, vector<24x128xf32> -> vector<24x128xf32>
      %156 = arith.addf %155, %19 : vector<24x128xf32>
      %cst_148 = arith.constant 0.000000e+00 : f32
      %157 = arith.subf %cst_148, %24 : f32
      %158 = vector.broadcast %157 : f32 to vector<24x128xf32>
      %159 = arith.maximumf %158, %156 : vector<24x128xf32>
      %160 = vector.broadcast %24 : f32 to vector<24x128xf32>
      %161 = arith.minimumf %160, %159 : vector<24x128xf32>
      %162 = arith.subf %156, %161 : vector<24x128xf32>
      %163 = arith.subf %162, %153 : vector<24x128xf32>
      %164 = arith.mulf %163, %163 : vector<24x128xf32>
      %165 = vector.shape_cast %164 : vector<24x128xf32> to vector<1x24x128xf32>
      %cst_149 = arith.constant dense<0.000000e+00> : vector<1xf32>
      %166 = vector.multi_reduction <add>, %165, %cst_149 [1, 2] : vector<1x24x128xf32> to vector<1xf32>
      %167 = vector.shape_cast %166 : vector<1xf32> to vector<1x1x1xf32>
      %168 = vector.extract %167[0, 0, 0] : f32 from vector<1x1x1xf32>
      %169 = arith.cmpf olt, %168, %cst_56 : f32
      %170 = arith.extui %169 : i1 to i32
      %c0_i32_150 = arith.constant 0 : i32
      %171 = arith.cmpi ne, %170, %c0_i32_150 : i32
      scf.if %171 {
        %c1_i32 = arith.constant 1 : i32
        %c0_152 = arith.constant 0 : index
        %175 = memref.load %arg9[%c0_152] : memref<1xi32, #tpu.memory_space<smem>>
        memref.store %c1_i32, %arg9[%c0_152] : memref<1xi32, #tpu.memory_space<smem>>
      } else {
      }
      %true = arith.constant true
      %172 = arith.xori %169, %true : i1
      %173 = arith.extui %172 : i1 to i32
      %c0_i32_151 = arith.constant 0 : i32
      %174 = arith.cmpi ne, %173, %c0_i32_151 : i32
      scf.if %174 {
        %cst_152 = arith.constant 0.78240925 : f32
        %175 = vector.broadcast %cst_152 : f32 to vector<24x128xf32>
        %176 = arith.mulf %175, %163 : vector<24x128xf32>
        %177 = arith.addf %162, %176 : vector<24x128xf32>
        %c0_153 = arith.constant 0 : index
        %c0_154 = arith.constant 0 : index
        %178 = vector.load %arg8[%c0_153, %c0_154] : memref<24x128xf32, #tpu.memory_space<vmem>>, vector<24x128xf32>
        tpu.vector_store %arg8[%c0_153, %c0_154], %177 {strides = array<i32>} : memref<24x128xf32, #tpu.memory_space<vmem>>, vector<24x128xf32>,
        %c0_155 = arith.constant 0 : index
        %c0_156 = arith.constant 0 : index
        %179 = vector.load %arg7[%c0_155, %c0_156] : memref<24x128xf32, #tpu.memory_space<vmem>>, vector<24x128xf32>
        tpu.vector_store %arg7[%c0_155, %c0_156], %162 {strides = array<i32>} : memref<24x128xf32, #tpu.memory_space<vmem>>, vector<24x128xf32>,
      } else {
      }
    } else {
    }
    %c0_58 = arith.constant 0 : index
    %70 = memref.load %arg9[%c0_58] : memref<1xi32, #tpu.memory_space<smem>>
    %c0_i32_59 = arith.constant 0 : i32
    %71 = arith.cmpi eq, %70, %c0_i32_59 : i32
    %72 = arith.extui %71 : i1 to i32
    %cst_60 = arith.constant 1.000000e-10 : f32
    %c0_i32_61 = arith.constant 0 : i32
    %73 = arith.cmpi ne, %72, %c0_i32_61 : i32
    scf.if %73 {
      %c0_143 = arith.constant 0 : index
      %c0_144 = arith.constant 0 : index
      %153 = vector.load %arg7[%c0_143, %c0_144] : memref<24x128xf32, #tpu.memory_space<vmem>>, vector<24x128xf32>
      %c0_145 = arith.constant 0 : index
      %c0_146 = arith.constant 0 : index
      %154 = vector.load %arg8[%c0_145, %c0_146] : memref<24x128xf32, #tpu.memory_space<vmem>>, vector<24x128xf32>
      %cst_147 = arith.constant dense<0.000000e+00> : vector<24x128xf32>
      %155 = tpu.matmul %16, %154, %cst_147 {dimension_numbers = #tpu.dot_dimension_numbers<[1], [0], [0], [1], [0, 0, 1, 1], [], []>} : vector<24x24xf32>, vector<24x128xf32>, vector<24x128xf32> -> vector<24x128xf32>
      %156 = arith.addf %155, %19 : vector<24x128xf32>
      %cst_148 = arith.constant 0.000000e+00 : f32
      %157 = arith.subf %cst_148, %24 : f32
      %158 = vector.broadcast %157 : f32 to vector<24x128xf32>
      %159 = arith.maximumf %158, %156 : vector<24x128xf32>
      %160 = vector.broadcast %24 : f32 to vector<24x128xf32>
      %161 = arith.minimumf %160, %159 : vector<24x128xf32>
      %162 = arith.subf %156, %161 : vector<24x128xf32>
      %163 = arith.subf %162, %153 : vector<24x128xf32>
      %164 = arith.mulf %163, %163 : vector<24x128xf32>
      %165 = vector.shape_cast %164 : vector<24x128xf32> to vector<1x24x128xf32>
      %cst_149 = arith.constant dense<0.000000e+00> : vector<1xf32>
      %166 = vector.multi_reduction <add>, %165, %cst_149 [1, 2] : vector<1x24x128xf32> to vector<1xf32>
      %167 = vector.shape_cast %166 : vector<1xf32> to vector<1x1x1xf32>
      %168 = vector.extract %167[0, 0, 0] : f32 from vector<1x1x1xf32>
      %169 = arith.cmpf olt, %168, %cst_60 : f32
      %170 = arith.extui %169 : i1 to i32
      %c0_i32_150 = arith.constant 0 : i32
      %171 = arith.cmpi ne, %170, %c0_i32_150 : i32
      scf.if %171 {
        %c1_i32 = arith.constant 1 : i32
        %c0_152 = arith.constant 0 : index
        %175 = memref.load %arg9[%c0_152] : memref<1xi32, #tpu.memory_space<smem>>
        memref.store %c1_i32, %arg9[%c0_152] : memref<1xi32, #tpu.memory_space<smem>>
      } else {
      }
      %true = arith.constant true
      %172 = arith.xori %169, %true : i1
      %173 = arith.extui %172 : i1 to i32
      %c0_i32_151 = arith.constant 0 : i32
      %174 = arith.cmpi ne, %173, %c0_i32_151 : i32
      scf.if %174 {
        %cst_152 = arith.constant 0.797624409 : f32
        %175 = vector.broadcast %cst_152 : f32 to vector<24x128xf32>
        %176 = arith.mulf %175, %163 : vector<24x128xf32>
        %177 = arith.addf %162, %176 : vector<24x128xf32>
        %c0_153 = arith.constant 0 : index
        %c0_154 = arith.constant 0 : index
        %178 = vector.load %arg8[%c0_153, %c0_154] : memref<24x128xf32, #tpu.memory_space<vmem>>, vector<24x128xf32>
        tpu.vector_store %arg8[%c0_153, %c0_154], %177 {strides = array<i32>} : memref<24x128xf32, #tpu.memory_space<vmem>>, vector<24x128xf32>,
        %c0_155 = arith.constant 0 : index
        %c0_156 = arith.constant 0 : index
        %179 = vector.load %arg7[%c0_155, %c0_156] : memref<24x128xf32, #tpu.memory_space<vmem>>, vector<24x128xf32>
        tpu.vector_store %arg7[%c0_155, %c0_156], %162 {strides = array<i32>} : memref<24x128xf32, #tpu.memory_space<vmem>>, vector<24x128xf32>,
      } else {
      }
    } else {
    }
    %c0_62 = arith.constant 0 : index
    %74 = memref.load %arg9[%c0_62] : memref<1xi32, #tpu.memory_space<smem>>
    %c0_i32_63 = arith.constant 0 : i32
    %75 = arith.cmpi eq, %74, %c0_i32_63 : i32
    %76 = arith.extui %75 : i1 to i32
    %cst_64 = arith.constant 1.000000e-10 : f32
    %c0_i32_65 = arith.constant 0 : i32
    %77 = arith.cmpi ne, %76, %c0_i32_65 : i32
    scf.if %77 {
      %c0_143 = arith.constant 0 : index
      %c0_144 = arith.constant 0 : index
      %153 = vector.load %arg7[%c0_143, %c0_144] : memref<24x128xf32, #tpu.memory_space<vmem>>, vector<24x128xf32>
      %c0_145 = arith.constant 0 : index
      %c0_146 = arith.constant 0 : index
      %154 = vector.load %arg8[%c0_145, %c0_146] : memref<24x128xf32, #tpu.memory_space<vmem>>, vector<24x128xf32>
      %cst_147 = arith.constant dense<0.000000e+00> : vector<24x128xf32>
      %155 = tpu.matmul %16, %154, %cst_147 {dimension_numbers = #tpu.dot_dimension_numbers<[1], [0], [0], [1], [0, 0, 1, 1], [], []>} : vector<24x24xf32>, vector<24x128xf32>, vector<24x128xf32> -> vector<24x128xf32>
      %156 = arith.addf %155, %19 : vector<24x128xf32>
      %cst_148 = arith.constant 0.000000e+00 : f32
      %157 = arith.subf %cst_148, %24 : f32
      %158 = vector.broadcast %157 : f32 to vector<24x128xf32>
      %159 = arith.maximumf %158, %156 : vector<24x128xf32>
      %160 = vector.broadcast %24 : f32 to vector<24x128xf32>
      %161 = arith.minimumf %160, %159 : vector<24x128xf32>
      %162 = arith.subf %156, %161 : vector<24x128xf32>
      %163 = arith.subf %162, %153 : vector<24x128xf32>
      %164 = arith.mulf %163, %163 : vector<24x128xf32>
      %165 = vector.shape_cast %164 : vector<24x128xf32> to vector<1x24x128xf32>
      %cst_149 = arith.constant dense<0.000000e+00> : vector<1xf32>
      %166 = vector.multi_reduction <add>, %165, %cst_149 [1, 2] : vector<1x24x128xf32> to vector<1xf32>
      %167 = vector.shape_cast %166 : vector<1xf32> to vector<1x1x1xf32>
      %168 = vector.extract %167[0, 0, 0] : f32 from vector<1x1x1xf32>
      %169 = arith.cmpf olt, %168, %cst_64 : f32
      %170 = arith.extui %169 : i1 to i32
      %c0_i32_150 = arith.constant 0 : i32
      %171 = arith.cmpi ne, %170, %c0_i32_150 : i32
      scf.if %171 {
        %c1_i32 = arith.constant 1 : i32
        %c0_152 = arith.constant 0 : index
        %175 = memref.load %arg9[%c0_152] : memref<1xi32, #tpu.memory_space<smem>>
        memref.store %c1_i32, %arg9[%c0_152] : memref<1xi32, #tpu.memory_space<smem>>
      } else {
      }
      %true = arith.constant true
      %172 = arith.xori %169, %true : i1
      %173 = arith.extui %172 : i1 to i32
      %c0_i32_151 = arith.constant 0 : i32
      %174 = arith.cmpi ne, %173, %c0_i32_151 : i32
      scf.if %174 {
        %cst_152 = arith.constant 0.810819983 : f32
        %175 = vector.broadcast %cst_152 : f32 to vector<24x128xf32>
        %176 = arith.mulf %175, %163 : vector<24x128xf32>
        %177 = arith.addf %162, %176 : vector<24x128xf32>
        %c0_153 = arith.constant 0 : index
        %c0_154 = arith.constant 0 : index
        %178 = vector.load %arg8[%c0_153, %c0_154] : memref<24x128xf32, #tpu.memory_space<vmem>>, vector<24x128xf32>
        tpu.vector_store %arg8[%c0_153, %c0_154], %177 {strides = array<i32>} : memref<24x128xf32, #tpu.memory_space<vmem>>, vector<24x128xf32>,
        %c0_155 = arith.constant 0 : index
        %c0_156 = arith.constant 0 : index
        %179 = vector.load %arg7[%c0_155, %c0_156] : memref<24x128xf32, #tpu.memory_space<vmem>>, vector<24x128xf32>
        tpu.vector_store %arg7[%c0_155, %c0_156], %162 {strides = array<i32>} : memref<24x128xf32, #tpu.memory_space<vmem>>, vector<24x128xf32>,
      } else {
      }
    } else {
    }
    %c0_66 = arith.constant 0 : index
    %78 = memref.load %arg9[%c0_66] : memref<1xi32, #tpu.memory_space<smem>>
    %c0_i32_67 = arith.constant 0 : i32
    %79 = arith.cmpi eq, %78, %c0_i32_67 : i32
    %80 = arith.extui %79 : i1 to i32
    %cst_68 = arith.constant 1.000000e-10 : f32
    %c0_i32_69 = arith.constant 0 : i32
    %81 = arith.cmpi ne, %80, %c0_i32_69 : i32
    scf.if %81 {
      %c0_143 = arith.constant 0 : index
      %c0_144 = arith.constant 0 : index
      %153 = vector.load %arg7[%c0_143, %c0_144] : memref<24x128xf32, #tpu.memory_space<vmem>>, vector<24x128xf32>
      %c0_145 = arith.constant 0 : index
      %c0_146 = arith.constant 0 : index
      %154 = vector.load %arg8[%c0_145, %c0_146] : memref<24x128xf32, #tpu.memory_space<vmem>>, vector<24x128xf32>
      %cst_147 = arith.constant dense<0.000000e+00> : vector<24x128xf32>
      %155 = tpu.matmul %16, %154, %cst_147 {dimension_numbers = #tpu.dot_dimension_numbers<[1], [0], [0], [1], [0, 0, 1, 1], [], []>} : vector<24x24xf32>, vector<24x128xf32>, vector<24x128xf32> -> vector<24x128xf32>
      %156 = arith.addf %155, %19 : vector<24x128xf32>
      %cst_148 = arith.constant 0.000000e+00 : f32
      %157 = arith.subf %cst_148, %24 : f32
      %158 = vector.broadcast %157 : f32 to vector<24x128xf32>
      %159 = arith.maximumf %158, %156 : vector<24x128xf32>
      %160 = vector.broadcast %24 : f32 to vector<24x128xf32>
      %161 = arith.minimumf %160, %159 : vector<24x128xf32>
      %162 = arith.subf %156, %161 : vector<24x128xf32>
      %163 = arith.subf %162, %153 : vector<24x128xf32>
      %164 = arith.mulf %163, %163 : vector<24x128xf32>
      %165 = vector.shape_cast %164 : vector<24x128xf32> to vector<1x24x128xf32>
      %cst_149 = arith.constant dense<0.000000e+00> : vector<1xf32>
      %166 = vector.multi_reduction <add>, %165, %cst_149 [1, 2] : vector<1x24x128xf32> to vector<1xf32>
      %167 = vector.shape_cast %166 : vector<1xf32> to vector<1x1x1xf32>
      %168 = vector.extract %167[0, 0, 0] : f32 from vector<1x1x1xf32>
      %169 = arith.cmpf olt, %168, %cst_68 : f32
      %170 = arith.extui %169 : i1 to i32
      %c0_i32_150 = arith.constant 0 : i32
      %171 = arith.cmpi ne, %170, %c0_i32_150 : i32
      scf.if %171 {
        %c1_i32 = arith.constant 1 : i32
        %c0_152 = arith.constant 0 : index
        %175 = memref.load %arg9[%c0_152] : memref<1xi32, #tpu.memory_space<smem>>
        memref.store %c1_i32, %arg9[%c0_152] : memref<1xi32, #tpu.memory_space<smem>>
      } else {
      }
      %true = arith.constant true
      %172 = arith.xori %169, %true : i1
      %173 = arith.extui %172 : i1 to i32
      %c0_i32_151 = arith.constant 0 : i32
      %174 = arith.cmpi ne, %173, %c0_i32_151 : i32
      scf.if %174 {
        %cst_152 = arith.constant 0.822376668 : f32
        %175 = vector.broadcast %cst_152 : f32 to vector<24x128xf32>
        %176 = arith.mulf %175, %163 : vector<24x128xf32>
        %177 = arith.addf %162, %176 : vector<24x128xf32>
        %c0_153 = arith.constant 0 : index
        %c0_154 = arith.constant 0 : index
        %178 = vector.load %arg8[%c0_153, %c0_154] : memref<24x128xf32, #tpu.memory_space<vmem>>, vector<24x128xf32>
        tpu.vector_store %arg8[%c0_153, %c0_154], %177 {strides = array<i32>} : memref<24x128xf32, #tpu.memory_space<vmem>>, vector<24x128xf32>,
        %c0_155 = arith.constant 0 : index
        %c0_156 = arith.constant 0 : index
        %179 = vector.load %arg7[%c0_155, %c0_156] : memref<24x128xf32, #tpu.memory_space<vmem>>, vector<24x128xf32>
        tpu.vector_store %arg7[%c0_155, %c0_156], %162 {strides = array<i32>} : memref<24x128xf32, #tpu.memory_space<vmem>>, vector<24x128xf32>,
      } else {
      }
    } else {
    }
    %c0_70 = arith.constant 0 : index
    %82 = memref.load %arg9[%c0_70] : memref<1xi32, #tpu.memory_space<smem>>
    %c0_i32_71 = arith.constant 0 : i32
    %83 = arith.cmpi eq, %82, %c0_i32_71 : i32
    %84 = arith.extui %83 : i1 to i32
    %cst_72 = arith.constant 1.000000e-10 : f32
    %c0_i32_73 = arith.constant 0 : i32
    %85 = arith.cmpi ne, %84, %c0_i32_73 : i32
    scf.if %85 {
      %c0_143 = arith.constant 0 : index
      %c0_144 = arith.constant 0 : index
      %153 = vector.load %arg7[%c0_143, %c0_144] : memref<24x128xf32, #tpu.memory_space<vmem>>, vector<24x128xf32>
      %c0_145 = arith.constant 0 : index
      %c0_146 = arith.constant 0 : index
      %154 = vector.load %arg8[%c0_145, %c0_146] : memref<24x128xf32, #tpu.memory_space<vmem>>, vector<24x128xf32>
      %cst_147 = arith.constant dense<0.000000e+00> : vector<24x128xf32>
      %155 = tpu.matmul %16, %154, %cst_147 {dimension_numbers = #tpu.dot_dimension_numbers<[1], [0], [0], [1], [0, 0, 1, 1], [], []>} : vector<24x24xf32>, vector<24x128xf32>, vector<24x128xf32> -> vector<24x128xf32>
      %156 = arith.addf %155, %19 : vector<24x128xf32>
      %cst_148 = arith.constant 0.000000e+00 : f32
      %157 = arith.subf %cst_148, %24 : f32
      %158 = vector.broadcast %157 : f32 to vector<24x128xf32>
      %159 = arith.maximumf %158, %156 : vector<24x128xf32>
      %160 = vector.broadcast %24 : f32 to vector<24x128xf32>
      %161 = arith.minimumf %160, %159 : vector<24x128xf32>
      %162 = arith.subf %156, %161 : vector<24x128xf32>
      %163 = arith.subf %162, %153 : vector<24x128xf32>
      %164 = arith.mulf %163, %163 : vector<24x128xf32>
      %165 = vector.shape_cast %164 : vector<24x128xf32> to vector<1x24x128xf32>
      %cst_149 = arith.constant dense<0.000000e+00> : vector<1xf32>
      %166 = vector.multi_reduction <add>, %165, %cst_149 [1, 2] : vector<1x24x128xf32> to vector<1xf32>
      %167 = vector.shape_cast %166 : vector<1xf32> to vector<1x1x1xf32>
      %168 = vector.extract %167[0, 0, 0] : f32 from vector<1x1x1xf32>
      %169 = arith.cmpf olt, %168, %cst_72 : f32
      %170 = arith.extui %169 : i1 to i32
      %c0_i32_150 = arith.constant 0 : i32
      %171 = arith.cmpi ne, %170, %c0_i32_150 : i32
      scf.if %171 {
        %c1_i32 = arith.constant 1 : i32
        %c0_152 = arith.constant 0 : index
        %175 = memref.load %arg9[%c0_152] : memref<1xi32, #tpu.memory_space<smem>>
        memref.store %c1_i32, %arg9[%c0_152] : memref<1xi32, #tpu.memory_space<smem>>
      } else {
      }
      %true = arith.constant true
      %172 = arith.xori %169, %true : i1
      %173 = arith.extui %172 : i1 to i32
      %c0_i32_151 = arith.constant 0 : i32
      %174 = arith.cmpi ne, %173, %c0_i32_151 : i32
      scf.if %174 {
        %cst_152 = arith.constant 0.832584381 : f32
        %175 = vector.broadcast %cst_152 : f32 to vector<24x128xf32>
        %176 = arith.mulf %175, %163 : vector<24x128xf32>
        %177 = arith.addf %162, %176 : vector<24x128xf32>
        %c0_153 = arith.constant 0 : index
        %c0_154 = arith.constant 0 : index
        %178 = vector.load %arg8[%c0_153, %c0_154] : memref<24x128xf32, #tpu.memory_space<vmem>>, vector<24x128xf32>
        tpu.vector_store %arg8[%c0_153, %c0_154], %177 {strides = array<i32>} : memref<24x128xf32, #tpu.memory_space<vmem>>, vector<24x128xf32>,
        %c0_155 = arith.constant 0 : index
        %c0_156 = arith.constant 0 : index
        %179 = vector.load %arg7[%c0_155, %c0_156] : memref<24x128xf32, #tpu.memory_space<vmem>>, vector<24x128xf32>
        tpu.vector_store %arg7[%c0_155, %c0_156], %162 {strides = array<i32>} : memref<24x128xf32, #tpu.memory_space<vmem>>, vector<24x128xf32>,
      } else {
      }
    } else {
    }
    %c0_74 = arith.constant 0 : index
    %86 = memref.load %arg9[%c0_74] : memref<1xi32, #tpu.memory_space<smem>>
    %c0_i32_75 = arith.constant 0 : i32
    %87 = arith.cmpi eq, %86, %c0_i32_75 : i32
    %88 = arith.extui %87 : i1 to i32
    %cst_76 = arith.constant 1.000000e-10 : f32
    %c0_i32_77 = arith.constant 0 : i32
    %89 = arith.cmpi ne, %88, %c0_i32_77 : i32
    scf.if %89 {
      %c0_143 = arith.constant 0 : index
      %c0_144 = arith.constant 0 : index
      %153 = vector.load %arg7[%c0_143, %c0_144] : memref<24x128xf32, #tpu.memory_space<vmem>>, vector<24x128xf32>
      %c0_145 = arith.constant 0 : index
      %c0_146 = arith.constant 0 : index
      %154 = vector.load %arg8[%c0_145, %c0_146] : memref<24x128xf32, #tpu.memory_space<vmem>>, vector<24x128xf32>
      %cst_147 = arith.constant dense<0.000000e+00> : vector<24x128xf32>
      %155 = tpu.matmul %16, %154, %cst_147 {dimension_numbers = #tpu.dot_dimension_numbers<[1], [0], [0], [1], [0, 0, 1, 1], [], []>} : vector<24x24xf32>, vector<24x128xf32>, vector<24x128xf32> -> vector<24x128xf32>
      %156 = arith.addf %155, %19 : vector<24x128xf32>
      %cst_148 = arith.constant 0.000000e+00 : f32
      %157 = arith.subf %cst_148, %24 : f32
      %158 = vector.broadcast %157 : f32 to vector<24x128xf32>
      %159 = arith.maximumf %158, %156 : vector<24x128xf32>
      %160 = vector.broadcast %24 : f32 to vector<24x128xf32>
      %161 = arith.minimumf %160, %159 : vector<24x128xf32>
      %162 = arith.subf %156, %161 : vector<24x128xf32>
      %163 = arith.subf %162, %153 : vector<24x128xf32>
      %164 = arith.mulf %163, %163 : vector<24x128xf32>
      %165 = vector.shape_cast %164 : vector<24x128xf32> to vector<1x24x128xf32>
      %cst_149 = arith.constant dense<0.000000e+00> : vector<1xf32>
      %166 = vector.multi_reduction <add>, %165, %cst_149 [1, 2] : vector<1x24x128xf32> to vector<1xf32>
      %167 = vector.shape_cast %166 : vector<1xf32> to vector<1x1x1xf32>
      %168 = vector.extract %167[0, 0, 0] : f32 from vector<1x1x1xf32>
      %169 = arith.cmpf olt, %168, %cst_76 : f32
      %170 = arith.extui %169 : i1 to i32
      %c0_i32_150 = arith.constant 0 : i32
      %171 = arith.cmpi ne, %170, %c0_i32_150 : i32
      scf.if %171 {
        %c1_i32 = arith.constant 1 : i32
        %c0_152 = arith.constant 0 : index
        %175 = memref.load %arg9[%c0_152] : memref<1xi32, #tpu.memory_space<smem>>
        memref.store %c1_i32, %arg9[%c0_152] : memref<1xi32, #tpu.memory_space<smem>>
      } else {
      }
      %true = arith.constant true
      %172 = arith.xori %169, %true : i1
      %173 = arith.extui %172 : i1 to i32
      %c0_i32_151 = arith.constant 0 : i32
      %174 = arith.cmpi ne, %173, %c0_i32_151 : i32
      scf.if %174 {
        %cst_152 = arith.constant 0.841668248 : f32
        %175 = vector.broadcast %cst_152 : f32 to vector<24x128xf32>
        %176 = arith.mulf %175, %163 : vector<24x128xf32>
        %177 = arith.addf %162, %176 : vector<24x128xf32>
        %c0_153 = arith.constant 0 : index
        %c0_154 = arith.constant 0 : index
        %178 = vector.load %arg8[%c0_153, %c0_154] : memref<24x128xf32, #tpu.memory_space<vmem>>, vector<24x128xf32>
        tpu.vector_store %arg8[%c0_153, %c0_154], %177 {strides = array<i32>} : memref<24x128xf32, #tpu.memory_space<vmem>>, vector<24x128xf32>,
        %c0_155 = arith.constant 0 : index
        %c0_156 = arith.constant 0 : index
        %179 = vector.load %arg7[%c0_155, %c0_156] : memref<24x128xf32, #tpu.memory_space<vmem>>, vector<24x128xf32>
        tpu.vector_store %arg7[%c0_155, %c0_156], %162 {strides = array<i32>} : memref<24x128xf32, #tpu.memory_space<vmem>>, vector<24x128xf32>,
      } else {
      }
    } else {
    }
    %c0_78 = arith.constant 0 : index
    %90 = memref.load %arg9[%c0_78] : memref<1xi32, #tpu.memory_space<smem>>
    %c0_i32_79 = arith.constant 0 : i32
    %91 = arith.cmpi eq, %90, %c0_i32_79 : i32
    %92 = arith.extui %91 : i1 to i32
    %cst_80 = arith.constant 1.000000e-10 : f32
    %c0_i32_81 = arith.constant 0 : i32
    %93 = arith.cmpi ne, %92, %c0_i32_81 : i32
    scf.if %93 {
      %c0_143 = arith.constant 0 : index
      %c0_144 = arith.constant 0 : index
      %153 = vector.load %arg7[%c0_143, %c0_144] : memref<24x128xf32, #tpu.memory_space<vmem>>, vector<24x128xf32>
      %c0_145 = arith.constant 0 : index
      %c0_146 = arith.constant 0 : index
      %154 = vector.load %arg8[%c0_145, %c0_146] : memref<24x128xf32, #tpu.memory_space<vmem>>, vector<24x128xf32>
      %cst_147 = arith.constant dense<0.000000e+00> : vector<24x128xf32>
      %155 = tpu.matmul %16, %154, %cst_147 {dimension_numbers = #tpu.dot_dimension_numbers<[1], [0], [0], [1], [0, 0, 1, 1], [], []>} : vector<24x24xf32>, vector<24x128xf32>, vector<24x128xf32> -> vector<24x128xf32>
      %156 = arith.addf %155, %19 : vector<24x128xf32>
      %cst_148 = arith.constant 0.000000e+00 : f32
      %157 = arith.subf %cst_148, %24 : f32
      %158 = vector.broadcast %157 : f32 to vector<24x128xf32>
      %159 = arith.maximumf %158, %156 : vector<24x128xf32>
      %160 = vector.broadcast %24 : f32 to vector<24x128xf32>
      %161 = arith.minimumf %160, %159 : vector<24x128xf32>
      %162 = arith.subf %156, %161 : vector<24x128xf32>
      %163 = arith.subf %162, %153 : vector<24x128xf32>
      %164 = arith.mulf %163, %163 : vector<24x128xf32>
      %165 = vector.shape_cast %164 : vector<24x128xf32> to vector<1x24x128xf32>
      %cst_149 = arith.constant dense<0.000000e+00> : vector<1xf32>
      %166 = vector.multi_reduction <add>, %165, %cst_149 [1, 2] : vector<1x24x128xf32> to vector<1xf32>
      %167 = vector.shape_cast %166 : vector<1xf32> to vector<1x1x1xf32>
      %168 = vector.extract %167[0, 0, 0] : f32 from vector<1x1x1xf32>
      %169 = arith.cmpf olt, %168, %cst_80 : f32
      %170 = arith.extui %169 : i1 to i32
      %c0_i32_150 = arith.constant 0 : i32
      %171 = arith.cmpi ne, %170, %c0_i32_150 : i32
      scf.if %171 {
        %c1_i32 = arith.constant 1 : i32
        %c0_152 = arith.constant 0 : index
        %175 = memref.load %arg9[%c0_152] : memref<1xi32, #tpu.memory_space<smem>>
        memref.store %c1_i32, %arg9[%c0_152] : memref<1xi32, #tpu.memory_space<smem>>
      } else {
      }
      %true = arith.constant true
      %172 = arith.xori %169, %true : i1
      %173 = arith.extui %172 : i1 to i32
      %c0_i32_151 = arith.constant 0 : i32
      %174 = arith.cmpi ne, %173, %c0_i32_151 : i32
      scf.if %174 {
        %cst_152 = arith.constant 0.849805533 : f32
        %175 = vector.broadcast %cst_152 : f32 to vector<24x128xf32>
        %176 = arith.mulf %175, %163 : vector<24x128xf32>
        %177 = arith.addf %162, %176 : vector<24x128xf32>
        %c0_153 = arith.constant 0 : index
        %c0_154 = arith.constant 0 : index
        %178 = vector.load %arg8[%c0_153, %c0_154] : memref<24x128xf32, #tpu.memory_space<vmem>>, vector<24x128xf32>
        tpu.vector_store %arg8[%c0_153, %c0_154], %177 {strides = array<i32>} : memref<24x128xf32, #tpu.memory_space<vmem>>, vector<24x128xf32>,
        %c0_155 = arith.constant 0 : index
        %c0_156 = arith.constant 0 : index
        %179 = vector.load %arg7[%c0_155, %c0_156] : memref<24x128xf32, #tpu.memory_space<vmem>>, vector<24x128xf32>
        tpu.vector_store %arg7[%c0_155, %c0_156], %162 {strides = array<i32>} : memref<24x128xf32, #tpu.memory_space<vmem>>, vector<24x128xf32>,
      } else {
      }
    } else {
    }
    %c0_82 = arith.constant 0 : index
    %94 = memref.load %arg9[%c0_82] : memref<1xi32, #tpu.memory_space<smem>>
    %c0_i32_83 = arith.constant 0 : i32
    %95 = arith.cmpi eq, %94, %c0_i32_83 : i32
    %96 = arith.extui %95 : i1 to i32
    %cst_84 = arith.constant 1.000000e-10 : f32
    %c0_i32_85 = arith.constant 0 : i32
    %97 = arith.cmpi ne, %96, %c0_i32_85 : i32
    scf.if %97 {
      %c0_143 = arith.constant 0 : index
      %c0_144 = arith.constant 0 : index
      %153 = vector.load %arg7[%c0_143, %c0_144] : memref<24x128xf32, #tpu.memory_space<vmem>>, vector<24x128xf32>
      %c0_145 = arith.constant 0 : index
      %c0_146 = arith.constant 0 : index
      %154 = vector.load %arg8[%c0_145, %c0_146] : memref<24x128xf32, #tpu.memory_space<vmem>>, vector<24x128xf32>
      %cst_147 = arith.constant dense<0.000000e+00> : vector<24x128xf32>
      %155 = tpu.matmul %16, %154, %cst_147 {dimension_numbers = #tpu.dot_dimension_numbers<[1], [0], [0], [1], [0, 0, 1, 1], [], []>} : vector<24x24xf32>, vector<24x128xf32>, vector<24x128xf32> -> vector<24x128xf32>
      %156 = arith.addf %155, %19 : vector<24x128xf32>
      %cst_148 = arith.constant 0.000000e+00 : f32
      %157 = arith.subf %cst_148, %24 : f32
      %158 = vector.broadcast %157 : f32 to vector<24x128xf32>
      %159 = arith.maximumf %158, %156 : vector<24x128xf32>
      %160 = vector.broadcast %24 : f32 to vector<24x128xf32>
      %161 = arith.minimumf %160, %159 : vector<24x128xf32>
      %162 = arith.subf %156, %161 : vector<24x128xf32>
      %163 = arith.subf %162, %153 : vector<24x128xf32>
      %164 = arith.mulf %163, %163 : vector<24x128xf32>
      %165 = vector.shape_cast %164 : vector<24x128xf32> to vector<1x24x128xf32>
      %cst_149 = arith.constant dense<0.000000e+00> : vector<1xf32>
      %166 = vector.multi_reduction <add>, %165, %cst_149 [1, 2] : vector<1x24x128xf32> to vector<1xf32>
      %167 = vector.shape_cast %166 : vector<1xf32> to vector<1x1x1xf32>
      %168 = vector.extract %167[0, 0, 0] : f32 from vector<1x1x1xf32>
      %169 = arith.cmpf olt, %168, %cst_84 : f32
      %170 = arith.extui %169 : i1 to i32
      %c0_i32_150 = arith.constant 0 : i32
      %171 = arith.cmpi ne, %170, %c0_i32_150 : i32
      scf.if %171 {
        %c1_i32 = arith.constant 1 : i32
        %c0_152 = arith.constant 0 : index
        %175 = memref.load %arg9[%c0_152] : memref<1xi32, #tpu.memory_space<smem>>
        memref.store %c1_i32, %arg9[%c0_152] : memref<1xi32, #tpu.memory_space<smem>>
      } else {
      }
      %true = arith.constant true
      %172 = arith.xori %169, %true : i1
      %173 = arith.extui %172 : i1 to i32
      %c0_i32_151 = arith.constant 0 : i32
      %174 = arith.cmpi ne, %173, %c0_i32_151 : i32
      scf.if %174 {
        %cst_152 = arith.constant 0.857137918 : f32
        %175 = vector.broadcast %cst_152 : f32 to vector<24x128xf32>
        %176 = arith.mulf %175, %163 : vector<24x128xf32>
        %177 = arith.addf %162, %176 : vector<24x128xf32>
        %c0_153 = arith.constant 0 : index
        %c0_154 = arith.constant 0 : index
        %178 = vector.load %arg8[%c0_153, %c0_154] : memref<24x128xf32, #tpu.memory_space<vmem>>, vector<24x128xf32>
        tpu.vector_store %arg8[%c0_153, %c0_154], %177 {strides = array<i32>} : memref<24x128xf32, #tpu.memory_space<vmem>>, vector<24x128xf32>,
        %c0_155 = arith.constant 0 : index
        %c0_156 = arith.constant 0 : index
        %179 = vector.load %arg7[%c0_155, %c0_156] : memref<24x128xf32, #tpu.memory_space<vmem>>, vector<24x128xf32>
        tpu.vector_store %arg7[%c0_155, %c0_156], %162 {strides = array<i32>} : memref<24x128xf32, #tpu.memory_space<vmem>>, vector<24x128xf32>,
      } else {
      }
    } else {
    }
    %c0_86 = arith.constant 0 : index
    %98 = memref.load %arg9[%c0_86] : memref<1xi32, #tpu.memory_space<smem>>
    %c0_i32_87 = arith.constant 0 : i32
    %99 = arith.cmpi eq, %98, %c0_i32_87 : i32
    %100 = arith.extui %99 : i1 to i32
    %cst_88 = arith.constant 1.000000e-10 : f32
    %c0_i32_89 = arith.constant 0 : i32
    %101 = arith.cmpi ne, %100, %c0_i32_89 : i32
    scf.if %101 {
      %c0_143 = arith.constant 0 : index
      %c0_144 = arith.constant 0 : index
      %153 = vector.load %arg7[%c0_143, %c0_144] : memref<24x128xf32, #tpu.memory_space<vmem>>, vector<24x128xf32>
      %c0_145 = arith.constant 0 : index
      %c0_146 = arith.constant 0 : index
      %154 = vector.load %arg8[%c0_145, %c0_146] : memref<24x128xf32, #tpu.memory_space<vmem>>, vector<24x128xf32>
      %cst_147 = arith.constant dense<0.000000e+00> : vector<24x128xf32>
      %155 = tpu.matmul %16, %154, %cst_147 {dimension_numbers = #tpu.dot_dimension_numbers<[1], [0], [0], [1], [0, 0, 1, 1], [], []>} : vector<24x24xf32>, vector<24x128xf32>, vector<24x128xf32> -> vector<24x128xf32>
      %156 = arith.addf %155, %19 : vector<24x128xf32>
      %cst_148 = arith.constant 0.000000e+00 : f32
      %157 = arith.subf %cst_148, %24 : f32
      %158 = vector.broadcast %157 : f32 to vector<24x128xf32>
      %159 = arith.maximumf %158, %156 : vector<24x128xf32>
      %160 = vector.broadcast %24 : f32 to vector<24x128xf32>
      %161 = arith.minimumf %160, %159 : vector<24x128xf32>
      %162 = arith.subf %156, %161 : vector<24x128xf32>
      %163 = arith.subf %162, %153 : vector<24x128xf32>
      %164 = arith.mulf %163, %163 : vector<24x128xf32>
      %165 = vector.shape_cast %164 : vector<24x128xf32> to vector<1x24x128xf32>
      %cst_149 = arith.constant dense<0.000000e+00> : vector<1xf32>
      %166 = vector.multi_reduction <add>, %165, %cst_149 [1, 2] : vector<1x24x128xf32> to vector<1xf32>
      %167 = vector.shape_cast %166 : vector<1xf32> to vector<1x1x1xf32>
      %168 = vector.extract %167[0, 0, 0] : f32 from vector<1x1x1xf32>
      %169 = arith.cmpf olt, %168, %cst_88 : f32
      %170 = arith.extui %169 : i1 to i32
      %c0_i32_150 = arith.constant 0 : i32
      %171 = arith.cmpi ne, %170, %c0_i32_150 : i32
      scf.if %171 {
        %c1_i32 = arith.constant 1 : i32
        %c0_152 = arith.constant 0 : index
        %175 = memref.load %arg9[%c0_152] : memref<1xi32, #tpu.memory_space<smem>>
        memref.store %c1_i32, %arg9[%c0_152] : memref<1xi32, #tpu.memory_space<smem>>
      } else {
      }
      %true = arith.constant true
      %172 = arith.xori %169, %true : i1
      %173 = arith.extui %172 : i1 to i32
      %c0_i32_151 = arith.constant 0 : i32
      %174 = arith.cmpi ne, %173, %c0_i32_151 : i32
      scf.if %174 {
        %cst_152 = arith.constant 0.86378014 : f32
        %175 = vector.broadcast %cst_152 : f32 to vector<24x128xf32>
        %176 = arith.mulf %175, %163 : vector<24x128xf32>
        %177 = arith.addf %162, %176 : vector<24x128xf32>
        %c0_153 = arith.constant 0 : index
        %c0_154 = arith.constant 0 : index
        %178 = vector.load %arg8[%c0_153, %c0_154] : memref<24x128xf32, #tpu.memory_space<vmem>>, vector<24x128xf32>
        tpu.vector_store %arg8[%c0_153, %c0_154], %177 {strides = array<i32>} : memref<24x128xf32, #tpu.memory_space<vmem>>, vector<24x128xf32>,
        %c0_155 = arith.constant 0 : index
        %c0_156 = arith.constant 0 : index
        %179 = vector.load %arg7[%c0_155, %c0_156] : memref<24x128xf32, #tpu.memory_space<vmem>>, vector<24x128xf32>
        tpu.vector_store %arg7[%c0_155, %c0_156], %162 {strides = array<i32>} : memref<24x128xf32, #tpu.memory_space<vmem>>, vector<24x128xf32>,
      } else {
      }
    } else {
    }
    %c0_90 = arith.constant 0 : index
    %102 = memref.load %arg9[%c0_90] : memref<1xi32, #tpu.memory_space<smem>>
    %c0_i32_91 = arith.constant 0 : i32
    %103 = arith.cmpi eq, %102, %c0_i32_91 : i32
    %104 = arith.extui %103 : i1 to i32
    %cst_92 = arith.constant 1.000000e-10 : f32
    %c0_i32_93 = arith.constant 0 : i32
    %105 = arith.cmpi ne, %104, %c0_i32_93 : i32
    scf.if %105 {
      %c0_143 = arith.constant 0 : index
      %c0_144 = arith.constant 0 : index
      %153 = vector.load %arg7[%c0_143, %c0_144] : memref<24x128xf32, #tpu.memory_space<vmem>>, vector<24x128xf32>
      %c0_145 = arith.constant 0 : index
      %c0_146 = arith.constant 0 : index
      %154 = vector.load %arg8[%c0_145, %c0_146] : memref<24x128xf32, #tpu.memory_space<vmem>>, vector<24x128xf32>
      %cst_147 = arith.constant dense<0.000000e+00> : vector<24x128xf32>
      %155 = tpu.matmul %16, %154, %cst_147 {dimension_numbers = #tpu.dot_dimension_numbers<[1], [0], [0], [1], [0, 0, 1, 1], [], []>} : vector<24x24xf32>, vector<24x128xf32>, vector<24x128xf32> -> vector<24x128xf32>
      %156 = arith.addf %155, %19 : vector<24x128xf32>
      %cst_148 = arith.constant 0.000000e+00 : f32
      %157 = arith.subf %cst_148, %24 : f32
      %158 = vector.broadcast %157 : f32 to vector<24x128xf32>
      %159 = arith.maximumf %158, %156 : vector<24x128xf32>
      %160 = vector.broadcast %24 : f32 to vector<24x128xf32>
      %161 = arith.minimumf %160, %159 : vector<24x128xf32>
      %162 = arith.subf %156, %161 : vector<24x128xf32>
      %163 = arith.subf %162, %153 : vector<24x128xf32>
      %164 = arith.mulf %163, %163 : vector<24x128xf32>
      %165 = vector.shape_cast %164 : vector<24x128xf32> to vector<1x24x128xf32>
      %cst_149 = arith.constant dense<0.000000e+00> : vector<1xf32>
      %166 = vector.multi_reduction <add>, %165, %cst_149 [1, 2] : vector<1x24x128xf32> to vector<1xf32>
      %167 = vector.shape_cast %166 : vector<1xf32> to vector<1x1x1xf32>
      %168 = vector.extract %167[0, 0, 0] : f32 from vector<1x1x1xf32>
      %169 = arith.cmpf olt, %168, %cst_92 : f32
      %170 = arith.extui %169 : i1 to i32
      %c0_i32_150 = arith.constant 0 : i32
      %171 = arith.cmpi ne, %170, %c0_i32_150 : i32
      scf.if %171 {
        %c1_i32 = arith.constant 1 : i32
        %c0_152 = arith.constant 0 : index
        %175 = memref.load %arg9[%c0_152] : memref<1xi32, #tpu.memory_space<smem>>
        memref.store %c1_i32, %arg9[%c0_152] : memref<1xi32, #tpu.memory_space<smem>>
      } else {
      }
      %true = arith.constant true
      %172 = arith.xori %169, %true : i1
      %173 = arith.extui %172 : i1 to i32
      %c0_i32_151 = arith.constant 0 : i32
      %174 = arith.cmpi ne, %173, %c0_i32_151 : i32
      scf.if %174 {
        %cst_152 = arith.constant 0.86982578 : f32
        %175 = vector.broadcast %cst_152 : f32 to vector<24x128xf32>
        %176 = arith.mulf %175, %163 : vector<24x128xf32>
        %177 = arith.addf %162, %176 : vector<24x128xf32>
        %c0_153 = arith.constant 0 : index
        %c0_154 = arith.constant 0 : index
        %178 = vector.load %arg8[%c0_153, %c0_154] : memref<24x128xf32, #tpu.memory_space<vmem>>, vector<24x128xf32>
        tpu.vector_store %arg8[%c0_153, %c0_154], %177 {strides = array<i32>} : memref<24x128xf32, #tpu.memory_space<vmem>>, vector<24x128xf32>,
        %c0_155 = arith.constant 0 : index
        %c0_156 = arith.constant 0 : index
        %179 = vector.load %arg7[%c0_155, %c0_156] : memref<24x128xf32, #tpu.memory_space<vmem>>, vector<24x128xf32>
        tpu.vector_store %arg7[%c0_155, %c0_156], %162 {strides = array<i32>} : memref<24x128xf32, #tpu.memory_space<vmem>>, vector<24x128xf32>,
      } else {
      }
    } else {
    }
    %c0_94 = arith.constant 0 : index
    %106 = memref.load %arg9[%c0_94] : memref<1xi32, #tpu.memory_space<smem>>
    %c0_i32_95 = arith.constant 0 : i32
    %107 = arith.cmpi eq, %106, %c0_i32_95 : i32
    %108 = arith.extui %107 : i1 to i32
    %cst_96 = arith.constant 1.000000e-10 : f32
    %c0_i32_97 = arith.constant 0 : i32
    %109 = arith.cmpi ne, %108, %c0_i32_97 : i32
    scf.if %109 {
      %c0_143 = arith.constant 0 : index
      %c0_144 = arith.constant 0 : index
      %153 = vector.load %arg7[%c0_143, %c0_144] : memref<24x128xf32, #tpu.memory_space<vmem>>, vector<24x128xf32>
      %c0_145 = arith.constant 0 : index
      %c0_146 = arith.constant 0 : index
      %154 = vector.load %arg8[%c0_145, %c0_146] : memref<24x128xf32, #tpu.memory_space<vmem>>, vector<24x128xf32>
      %cst_147 = arith.constant dense<0.000000e+00> : vector<24x128xf32>
      %155 = tpu.matmul %16, %154, %cst_147 {dimension_numbers = #tpu.dot_dimension_numbers<[1], [0], [0], [1], [0, 0, 1, 1], [], []>} : vector<24x24xf32>, vector<24x128xf32>, vector<24x128xf32> -> vector<24x128xf32>
      %156 = arith.addf %155, %19 : vector<24x128xf32>
      %cst_148 = arith.constant 0.000000e+00 : f32
      %157 = arith.subf %cst_148, %24 : f32
      %158 = vector.broadcast %157 : f32 to vector<24x128xf32>
      %159 = arith.maximumf %158, %156 : vector<24x128xf32>
      %160 = vector.broadcast %24 : f32 to vector<24x128xf32>
      %161 = arith.minimumf %160, %159 : vector<24x128xf32>
      %162 = arith.subf %156, %161 : vector<24x128xf32>
      %163 = arith.subf %162, %153 : vector<24x128xf32>
      %164 = arith.mulf %163, %163 : vector<24x128xf32>
      %165 = vector.shape_cast %164 : vector<24x128xf32> to vector<1x24x128xf32>
      %cst_149 = arith.constant dense<0.000000e+00> : vector<1xf32>
      %166 = vector.multi_reduction <add>, %165, %cst_149 [1, 2] : vector<1x24x128xf32> to vector<1xf32>
      %167 = vector.shape_cast %166 : vector<1xf32> to vector<1x1x1xf32>
      %168 = vector.extract %167[0, 0, 0] : f32 from vector<1x1x1xf32>
      %169 = arith.cmpf olt, %168, %cst_96 : f32
      %170 = arith.extui %169 : i1 to i32
      %c0_i32_150 = arith.constant 0 : i32
      %171 = arith.cmpi ne, %170, %c0_i32_150 : i32
      scf.if %171 {
        %c1_i32 = arith.constant 1 : i32
        %c0_152 = arith.constant 0 : index
        %175 = memref.load %arg9[%c0_152] : memref<1xi32, #tpu.memory_space<smem>>
        memref.store %c1_i32, %arg9[%c0_152] : memref<1xi32, #tpu.memory_space<smem>>
      } else {
      }
      %true = arith.constant true
      %172 = arith.xori %169, %true : i1
      %173 = arith.extui %172 : i1 to i32
      %c0_i32_151 = arith.constant 0 : i32
      %174 = arith.cmpi ne, %173, %c0_i32_151 : i32
      scf.if %174 {
        %cst_152 = arith.constant 0.875352323 : f32
        %175 = vector.broadcast %cst_152 : f32 to vector<24x128xf32>
        %176 = arith.mulf %175, %163 : vector<24x128xf32>
        %177 = arith.addf %162, %176 : vector<24x128xf32>
        %c0_153 = arith.constant 0 : index
        %c0_154 = arith.constant 0 : index
        %178 = vector.load %arg8[%c0_153, %c0_154] : memref<24x128xf32, #tpu.memory_space<vmem>>, vector<24x128xf32>
        tpu.vector_store %arg8[%c0_153, %c0_154], %177 {strides = array<i32>} : memref<24x128xf32, #tpu.memory_space<vmem>>, vector<24x128xf32>,
        %c0_155 = arith.constant 0 : index
        %c0_156 = arith.constant 0 : index
        %179 = vector.load %arg7[%c0_155, %c0_156] : memref<24x128xf32, #tpu.memory_space<vmem>>, vector<24x128xf32>
        tpu.vector_store %arg7[%c0_155, %c0_156], %162 {strides = array<i32>} : memref<24x128xf32, #tpu.memory_space<vmem>>, vector<24x128xf32>,
      } else {
      }
    } else {
    }
    %c0_98 = arith.constant 0 : index
    %110 = memref.load %arg9[%c0_98] : memref<1xi32, #tpu.memory_space<smem>>
    %c0_i32_99 = arith.constant 0 : i32
    %111 = arith.cmpi eq, %110, %c0_i32_99 : i32
    %112 = arith.extui %111 : i1 to i32
    %cst_100 = arith.constant 1.000000e-10 : f32
    %c0_i32_101 = arith.constant 0 : i32
    %113 = arith.cmpi ne, %112, %c0_i32_101 : i32
    scf.if %113 {
      %c0_143 = arith.constant 0 : index
      %c0_144 = arith.constant 0 : index
      %153 = vector.load %arg7[%c0_143, %c0_144] : memref<24x128xf32, #tpu.memory_space<vmem>>, vector<24x128xf32>
      %c0_145 = arith.constant 0 : index
      %c0_146 = arith.constant 0 : index
      %154 = vector.load %arg8[%c0_145, %c0_146] : memref<24x128xf32, #tpu.memory_space<vmem>>, vector<24x128xf32>
      %cst_147 = arith.constant dense<0.000000e+00> : vector<24x128xf32>
      %155 = tpu.matmul %16, %154, %cst_147 {dimension_numbers = #tpu.dot_dimension_numbers<[1], [0], [0], [1], [0, 0, 1, 1], [], []>} : vector<24x24xf32>, vector<24x128xf32>, vector<24x128xf32> -> vector<24x128xf32>
      %156 = arith.addf %155, %19 : vector<24x128xf32>
      %cst_148 = arith.constant 0.000000e+00 : f32
      %157 = arith.subf %cst_148, %24 : f32
      %158 = vector.broadcast %157 : f32 to vector<24x128xf32>
      %159 = arith.maximumf %158, %156 : vector<24x128xf32>
      %160 = vector.broadcast %24 : f32 to vector<24x128xf32>
      %161 = arith.minimumf %160, %159 : vector<24x128xf32>
      %162 = arith.subf %156, %161 : vector<24x128xf32>
      %163 = arith.subf %162, %153 : vector<24x128xf32>
      %164 = arith.mulf %163, %163 : vector<24x128xf32>
      %165 = vector.shape_cast %164 : vector<24x128xf32> to vector<1x24x128xf32>
      %cst_149 = arith.constant dense<0.000000e+00> : vector<1xf32>
      %166 = vector.multi_reduction <add>, %165, %cst_149 [1, 2] : vector<1x24x128xf32> to vector<1xf32>
      %167 = vector.shape_cast %166 : vector<1xf32> to vector<1x1x1xf32>
      %168 = vector.extract %167[0, 0, 0] : f32 from vector<1x1x1xf32>
      %169 = arith.cmpf olt, %168, %cst_100 : f32
      %170 = arith.extui %169 : i1 to i32
      %c0_i32_150 = arith.constant 0 : i32
      %171 = arith.cmpi ne, %170, %c0_i32_150 : i32
      scf.if %171 {
        %c1_i32 = arith.constant 1 : i32
        %c0_152 = arith.constant 0 : index
        %175 = memref.load %arg9[%c0_152] : memref<1xi32, #tpu.memory_space<smem>>
        memref.store %c1_i32, %arg9[%c0_152] : memref<1xi32, #tpu.memory_space<smem>>
      } else {
      }
      %true = arith.constant true
      %172 = arith.xori %169, %true : i1
      %173 = arith.extui %172 : i1 to i32
      %c0_i32_151 = arith.constant 0 : i32
      %174 = arith.cmpi ne, %173, %c0_i32_151 : i32
      scf.if %174 {
        %cst_152 = arith.constant 0.88042432 : f32
        %175 = vector.broadcast %cst_152 : f32 to vector<24x128xf32>
        %176 = arith.mulf %175, %163 : vector<24x128xf32>
        %177 = arith.addf %162, %176 : vector<24x128xf32>
        %c0_153 = arith.constant 0 : index
        %c0_154 = arith.constant 0 : index
        %178 = vector.load %arg8[%c0_153, %c0_154] : memref<24x128xf32, #tpu.memory_space<vmem>>, vector<24x128xf32>
        tpu.vector_store %arg8[%c0_153, %c0_154], %177 {strides = array<i32>} : memref<24x128xf32, #tpu.memory_space<vmem>>, vector<24x128xf32>,
        %c0_155 = arith.constant 0 : index
        %c0_156 = arith.constant 0 : index
        %179 = vector.load %arg7[%c0_155, %c0_156] : memref<24x128xf32, #tpu.memory_space<vmem>>, vector<24x128xf32>
        tpu.vector_store %arg7[%c0_155, %c0_156], %162 {strides = array<i32>} : memref<24x128xf32, #tpu.memory_space<vmem>>, vector<24x128xf32>,
      } else {
      }
    } else {
    }
    %c0_102 = arith.constant 0 : index
    %114 = memref.load %arg9[%c0_102] : memref<1xi32, #tpu.memory_space<smem>>
    %c0_i32_103 = arith.constant 0 : i32
    %115 = arith.cmpi eq, %114, %c0_i32_103 : i32
    %116 = arith.extui %115 : i1 to i32
    %cst_104 = arith.constant 1.000000e-10 : f32
    %c0_i32_105 = arith.constant 0 : i32
    %117 = arith.cmpi ne, %116, %c0_i32_105 : i32
    scf.if %117 {
      %c0_143 = arith.constant 0 : index
      %c0_144 = arith.constant 0 : index
      %153 = vector.load %arg7[%c0_143, %c0_144] : memref<24x128xf32, #tpu.memory_space<vmem>>, vector<24x128xf32>
      %c0_145 = arith.constant 0 : index
      %c0_146 = arith.constant 0 : index
      %154 = vector.load %arg8[%c0_145, %c0_146] : memref<24x128xf32, #tpu.memory_space<vmem>>, vector<24x128xf32>
      %cst_147 = arith.constant dense<0.000000e+00> : vector<24x128xf32>
      %155 = tpu.matmul %16, %154, %cst_147 {dimension_numbers = #tpu.dot_dimension_numbers<[1], [0], [0], [1], [0, 0, 1, 1], [], []>} : vector<24x24xf32>, vector<24x128xf32>, vector<24x128xf32> -> vector<24x128xf32>
      %156 = arith.addf %155, %19 : vector<24x128xf32>
      %cst_148 = arith.constant 0.000000e+00 : f32
      %157 = arith.subf %cst_148, %24 : f32
      %158 = vector.broadcast %157 : f32 to vector<24x128xf32>
      %159 = arith.maximumf %158, %156 : vector<24x128xf32>
      %160 = vector.broadcast %24 : f32 to vector<24x128xf32>
      %161 = arith.minimumf %160, %159 : vector<24x128xf32>
      %162 = arith.subf %156, %161 : vector<24x128xf32>
      %163 = arith.subf %162, %153 : vector<24x128xf32>
      %164 = arith.mulf %163, %163 : vector<24x128xf32>
      %165 = vector.shape_cast %164 : vector<24x128xf32> to vector<1x24x128xf32>
      %cst_149 = arith.constant dense<0.000000e+00> : vector<1xf32>
      %166 = vector.multi_reduction <add>, %165, %cst_149 [1, 2] : vector<1x24x128xf32> to vector<1xf32>
      %167 = vector.shape_cast %166 : vector<1xf32> to vector<1x1x1xf32>
      %168 = vector.extract %167[0, 0, 0] : f32 from vector<1x1x1xf32>
      %169 = arith.cmpf olt, %168, %cst_104 : f32
      %170 = arith.extui %169 : i1 to i32
      %c0_i32_150 = arith.constant 0 : i32
      %171 = arith.cmpi ne, %170, %c0_i32_150 : i32
      scf.if %171 {
        %c1_i32 = arith.constant 1 : i32
        %c0_152 = arith.constant 0 : index
        %175 = memref.load %arg9[%c0_152] : memref<1xi32, #tpu.memory_space<smem>>
        memref.store %c1_i32, %arg9[%c0_152] : memref<1xi32, #tpu.memory_space<smem>>
      } else {
      }
      %true = arith.constant true
      %172 = arith.xori %169, %true : i1
      %173 = arith.extui %172 : i1 to i32
      %c0_i32_151 = arith.constant 0 : i32
      %174 = arith.cmpi ne, %173, %c0_i32_151 : i32
      scf.if %174 {
        %cst_152 = arith.constant 0.885095894 : f32
        %175 = vector.broadcast %cst_152 : f32 to vector<24x128xf32>
        %176 = arith.mulf %175, %163 : vector<24x128xf32>
        %177 = arith.addf %162, %176 : vector<24x128xf32>
        %c0_153 = arith.constant 0 : index
        %c0_154 = arith.constant 0 : index
        %178 = vector.load %arg8[%c0_153, %c0_154] : memref<24x128xf32, #tpu.memory_space<vmem>>, vector<24x128xf32>
        tpu.vector_store %arg8[%c0_153, %c0_154], %177 {strides = array<i32>} : memref<24x128xf32, #tpu.memory_space<vmem>>, vector<24x128xf32>,
        %c0_155 = arith.constant 0 : index
        %c0_156 = arith.constant 0 : index
        %179 = vector.load %arg7[%c0_155, %c0_156] : memref<24x128xf32, #tpu.memory_space<vmem>>, vector<24x128xf32>
        tpu.vector_store %arg7[%c0_155, %c0_156], %162 {strides = array<i32>} : memref<24x128xf32, #tpu.memory_space<vmem>>, vector<24x128xf32>,
      } else {
      }
    } else {
    }
    %c0_106 = arith.constant 0 : index
    %118 = memref.load %arg9[%c0_106] : memref<1xi32, #tpu.memory_space<smem>>
    %c0_i32_107 = arith.constant 0 : i32
    %119 = arith.cmpi eq, %118, %c0_i32_107 : i32
    %120 = arith.extui %119 : i1 to i32
    %cst_108 = arith.constant 1.000000e-10 : f32
    %c0_i32_109 = arith.constant 0 : i32
    %121 = arith.cmpi ne, %120, %c0_i32_109 : i32
    scf.if %121 {
      %c0_143 = arith.constant 0 : index
      %c0_144 = arith.constant 0 : index
      %153 = vector.load %arg7[%c0_143, %c0_144] : memref<24x128xf32, #tpu.memory_space<vmem>>, vector<24x128xf32>
      %c0_145 = arith.constant 0 : index
      %c0_146 = arith.constant 0 : index
      %154 = vector.load %arg8[%c0_145, %c0_146] : memref<24x128xf32, #tpu.memory_space<vmem>>, vector<24x128xf32>
      %cst_147 = arith.constant dense<0.000000e+00> : vector<24x128xf32>
      %155 = tpu.matmul %16, %154, %cst_147 {dimension_numbers = #tpu.dot_dimension_numbers<[1], [0], [0], [1], [0, 0, 1, 1], [], []>} : vector<24x24xf32>, vector<24x128xf32>, vector<24x128xf32> -> vector<24x128xf32>
      %156 = arith.addf %155, %19 : vector<24x128xf32>
      %cst_148 = arith.constant 0.000000e+00 : f32
      %157 = arith.subf %cst_148, %24 : f32
      %158 = vector.broadcast %157 : f32 to vector<24x128xf32>
      %159 = arith.maximumf %158, %156 : vector<24x128xf32>
      %160 = vector.broadcast %24 : f32 to vector<24x128xf32>
      %161 = arith.minimumf %160, %159 : vector<24x128xf32>
      %162 = arith.subf %156, %161 : vector<24x128xf32>
      %163 = arith.subf %162, %153 : vector<24x128xf32>
      %164 = arith.mulf %163, %163 : vector<24x128xf32>
      %165 = vector.shape_cast %164 : vector<24x128xf32> to vector<1x24x128xf32>
      %cst_149 = arith.constant dense<0.000000e+00> : vector<1xf32>
      %166 = vector.multi_reduction <add>, %165, %cst_149 [1, 2] : vector<1x24x128xf32> to vector<1xf32>
      %167 = vector.shape_cast %166 : vector<1xf32> to vector<1x1x1xf32>
      %168 = vector.extract %167[0, 0, 0] : f32 from vector<1x1x1xf32>
      %169 = arith.cmpf olt, %168, %cst_108 : f32
      %170 = arith.extui %169 : i1 to i32
      %c0_i32_150 = arith.constant 0 : i32
      %171 = arith.cmpi ne, %170, %c0_i32_150 : i32
      scf.if %171 {
        %c1_i32 = arith.constant 1 : i32
        %c0_152 = arith.constant 0 : index
        %175 = memref.load %arg9[%c0_152] : memref<1xi32, #tpu.memory_space<smem>>
        memref.store %c1_i32, %arg9[%c0_152] : memref<1xi32, #tpu.memory_space<smem>>
      } else {
      }
      %true = arith.constant true
      %172 = arith.xori %169, %true : i1
      %173 = arith.extui %172 : i1 to i32
      %c0_i32_151 = arith.constant 0 : i32
      %174 = arith.cmpi ne, %173, %c0_i32_151 : i32
      scf.if %174 {
        %cst_152 = arith.constant 0.889412999 : f32
        %175 = vector.broadcast %cst_152 : f32 to vector<24x128xf32>
        %176 = arith.mulf %175, %163 : vector<24x128xf32>
        %177 = arith.addf %162, %176 : vector<24x128xf32>
        %c0_153 = arith.constant 0 : index
        %c0_154 = arith.constant 0 : index
        %178 = vector.load %arg8[%c0_153, %c0_154] : memref<24x128xf32, #tpu.memory_space<vmem>>, vector<24x128xf32>
        tpu.vector_store %arg8[%c0_153, %c0_154], %177 {strides = array<i32>} : memref<24x128xf32, #tpu.memory_space<vmem>>, vector<24x128xf32>,
        %c0_155 = arith.constant 0 : index
        %c0_156 = arith.constant 0 : index
        %179 = vector.load %arg7[%c0_155, %c0_156] : memref<24x128xf32, #tpu.memory_space<vmem>>, vector<24x128xf32>
        tpu.vector_store %arg7[%c0_155, %c0_156], %162 {strides = array<i32>} : memref<24x128xf32, #tpu.memory_space<vmem>>, vector<24x128xf32>,
      } else {
      }
    } else {
    }
    %c0_110 = arith.constant 0 : index
    %122 = memref.load %arg9[%c0_110] : memref<1xi32, #tpu.memory_space<smem>>
    %c0_i32_111 = arith.constant 0 : i32
    %123 = arith.cmpi eq, %122, %c0_i32_111 : i32
    %124 = arith.extui %123 : i1 to i32
    %cst_112 = arith.constant 1.000000e-10 : f32
    %c0_i32_113 = arith.constant 0 : i32
    %125 = arith.cmpi ne, %124, %c0_i32_113 : i32
    scf.if %125 {
      %c0_143 = arith.constant 0 : index
      %c0_144 = arith.constant 0 : index
      %153 = vector.load %arg7[%c0_143, %c0_144] : memref<24x128xf32, #tpu.memory_space<vmem>>, vector<24x128xf32>
      %c0_145 = arith.constant 0 : index
      %c0_146 = arith.constant 0 : index
      %154 = vector.load %arg8[%c0_145, %c0_146] : memref<24x128xf32, #tpu.memory_space<vmem>>, vector<24x128xf32>
      %cst_147 = arith.constant dense<0.000000e+00> : vector<24x128xf32>
      %155 = tpu.matmul %16, %154, %cst_147 {dimension_numbers = #tpu.dot_dimension_numbers<[1], [0], [0], [1], [0, 0, 1, 1], [], []>} : vector<24x24xf32>, vector<24x128xf32>, vector<24x128xf32> -> vector<24x128xf32>
      %156 = arith.addf %155, %19 : vector<24x128xf32>
      %cst_148 = arith.constant 0.000000e+00 : f32
      %157 = arith.subf %cst_148, %24 : f32
      %158 = vector.broadcast %157 : f32 to vector<24x128xf32>
      %159 = arith.maximumf %158, %156 : vector<24x128xf32>
      %160 = vector.broadcast %24 : f32 to vector<24x128xf32>
      %161 = arith.minimumf %160, %159 : vector<24x128xf32>
      %162 = arith.subf %156, %161 : vector<24x128xf32>
      %163 = arith.subf %162, %153 : vector<24x128xf32>
      %164 = arith.mulf %163, %163 : vector<24x128xf32>
      %165 = vector.shape_cast %164 : vector<24x128xf32> to vector<1x24x128xf32>
      %cst_149 = arith.constant dense<0.000000e+00> : vector<1xf32>
      %166 = vector.multi_reduction <add>, %165, %cst_149 [1, 2] : vector<1x24x128xf32> to vector<1xf32>
      %167 = vector.shape_cast %166 : vector<1xf32> to vector<1x1x1xf32>
      %168 = vector.extract %167[0, 0, 0] : f32 from vector<1x1x1xf32>
      %169 = arith.cmpf olt, %168, %cst_112 : f32
      %170 = arith.extui %169 : i1 to i32
      %c0_i32_150 = arith.constant 0 : i32
      %171 = arith.cmpi ne, %170, %c0_i32_150 : i32
      scf.if %171 {
        %c1_i32 = arith.constant 1 : i32
        %c0_152 = arith.constant 0 : index
        %175 = memref.load %arg9[%c0_152] : memref<1xi32, #tpu.memory_space<smem>>
        memref.store %c1_i32, %arg9[%c0_152] : memref<1xi32, #tpu.memory_space<smem>>
      } else {
      }
      %true = arith.constant true
      %172 = arith.xori %169, %true : i1
      %173 = arith.extui %172 : i1 to i32
      %c0_i32_151 = arith.constant 0 : i32
      %174 = arith.cmpi ne, %173, %c0_i32_151 : i32
      scf.if %174 {
        %cst_152 = arith.constant 0.893414736 : f32
        %175 = vector.broadcast %cst_152 : f32 to vector<24x128xf32>
        %176 = arith.mulf %175, %163 : vector<24x128xf32>
        %177 = arith.addf %162, %176 : vector<24x128xf32>
        %c0_153 = arith.constant 0 : index
        %c0_154 = arith.constant 0 : index
        %178 = vector.load %arg8[%c0_153, %c0_154] : memref<24x128xf32, #tpu.memory_space<vmem>>, vector<24x128xf32>
        tpu.vector_store %arg8[%c0_153, %c0_154], %177 {strides = array<i32>} : memref<24x128xf32, #tpu.memory_space<vmem>>, vector<24x128xf32>,
        %c0_155 = arith.constant 0 : index
        %c0_156 = arith.constant 0 : index
        %179 = vector.load %arg7[%c0_155, %c0_156] : memref<24x128xf32, #tpu.memory_space<vmem>>, vector<24x128xf32>
        tpu.vector_store %arg7[%c0_155, %c0_156], %162 {strides = array<i32>} : memref<24x128xf32, #tpu.memory_space<vmem>>, vector<24x128xf32>,
      } else {
      }
    } else {
    }
    %c0_114 = arith.constant 0 : index
    %126 = memref.load %arg9[%c0_114] : memref<1xi32, #tpu.memory_space<smem>>
    %c0_i32_115 = arith.constant 0 : i32
    %127 = arith.cmpi eq, %126, %c0_i32_115 : i32
    %128 = arith.extui %127 : i1 to i32
    %cst_116 = arith.constant 1.000000e-10 : f32
    %c0_i32_117 = arith.constant 0 : i32
    %129 = arith.cmpi ne, %128, %c0_i32_117 : i32
    scf.if %129 {
      %c0_143 = arith.constant 0 : index
      %c0_144 = arith.constant 0 : index
      %153 = vector.load %arg7[%c0_143, %c0_144] : memref<24x128xf32, #tpu.memory_space<vmem>>, vector<24x128xf32>
      %c0_145 = arith.constant 0 : index
      %c0_146 = arith.constant 0 : index
      %154 = vector.load %arg8[%c0_145, %c0_146] : memref<24x128xf32, #tpu.memory_space<vmem>>, vector<24x128xf32>
      %cst_147 = arith.constant dense<0.000000e+00> : vector<24x128xf32>
      %155 = tpu.matmul %16, %154, %cst_147 {dimension_numbers = #tpu.dot_dimension_numbers<[1], [0], [0], [1], [0, 0, 1, 1], [], []>} : vector<24x24xf32>, vector<24x128xf32>, vector<24x128xf32> -> vector<24x128xf32>
      %156 = arith.addf %155, %19 : vector<24x128xf32>
      %cst_148 = arith.constant 0.000000e+00 : f32
      %157 = arith.subf %cst_148, %24 : f32
      %158 = vector.broadcast %157 : f32 to vector<24x128xf32>
      %159 = arith.maximumf %158, %156 : vector<24x128xf32>
      %160 = vector.broadcast %24 : f32 to vector<24x128xf32>
      %161 = arith.minimumf %160, %159 : vector<24x128xf32>
      %162 = arith.subf %156, %161 : vector<24x128xf32>
      %163 = arith.subf %162, %153 : vector<24x128xf32>
      %164 = arith.mulf %163, %163 : vector<24x128xf32>
      %165 = vector.shape_cast %164 : vector<24x128xf32> to vector<1x24x128xf32>
      %cst_149 = arith.constant dense<0.000000e+00> : vector<1xf32>
      %166 = vector.multi_reduction <add>, %165, %cst_149 [1, 2] : vector<1x24x128xf32> to vector<1xf32>
      %167 = vector.shape_cast %166 : vector<1xf32> to vector<1x1x1xf32>
      %168 = vector.extract %167[0, 0, 0] : f32 from vector<1x1x1xf32>
      %169 = arith.cmpf olt, %168, %cst_116 : f32
      %170 = arith.extui %169 : i1 to i32
      %c0_i32_150 = arith.constant 0 : i32
      %171 = arith.cmpi ne, %170, %c0_i32_150 : i32
      scf.if %171 {
        %c1_i32 = arith.constant 1 : i32
        %c0_152 = arith.constant 0 : index
        %175 = memref.load %arg9[%c0_152] : memref<1xi32, #tpu.memory_space<smem>>
        memref.store %c1_i32, %arg9[%c0_152] : memref<1xi32, #tpu.memory_space<smem>>
      } else {
      }
      %true = arith.constant true
      %172 = arith.xori %169, %true : i1
      %173 = arith.extui %172 : i1 to i32
      %c0_i32_151 = arith.constant 0 : i32
      %174 = arith.cmpi ne, %173, %c0_i32_151 : i32
      scf.if %174 {
        %cst_152 = arith.constant 0.897134542 : f32
        %175 = vector.broadcast %cst_152 : f32 to vector<24x128xf32>
        %176 = arith.mulf %175, %163 : vector<24x128xf32>
        %177 = arith.addf %162, %176 : vector<24x128xf32>
        %c0_153 = arith.constant 0 : index
        %c0_154 = arith.constant 0 : index
        %178 = vector.load %arg8[%c0_153, %c0_154] : memref<24x128xf32, #tpu.memory_space<vmem>>, vector<24x128xf32>
        tpu.vector_store %arg8[%c0_153, %c0_154], %177 {strides = array<i32>} : memref<24x128xf32, #tpu.memory_space<vmem>>, vector<24x128xf32>,
        %c0_155 = arith.constant 0 : index
        %c0_156 = arith.constant 0 : index
        %179 = vector.load %arg7[%c0_155, %c0_156] : memref<24x128xf32, #tpu.memory_space<vmem>>, vector<24x128xf32>
        tpu.vector_store %arg7[%c0_155, %c0_156], %162 {strides = array<i32>} : memref<24x128xf32, #tpu.memory_space<vmem>>, vector<24x128xf32>,
      } else {
      }
    } else {
    }
    %c0_118 = arith.constant 0 : index
    %130 = memref.load %arg9[%c0_118] : memref<1xi32, #tpu.memory_space<smem>>
    %c0_i32_119 = arith.constant 0 : i32
    %131 = arith.cmpi eq, %130, %c0_i32_119 : i32
    %132 = arith.extui %131 : i1 to i32
    %cst_120 = arith.constant 1.000000e-10 : f32
    %c0_i32_121 = arith.constant 0 : i32
    %133 = arith.cmpi ne, %132, %c0_i32_121 : i32
    scf.if %133 {
      %c0_143 = arith.constant 0 : index
      %c0_144 = arith.constant 0 : index
      %153 = vector.load %arg7[%c0_143, %c0_144] : memref<24x128xf32, #tpu.memory_space<vmem>>, vector<24x128xf32>
      %c0_145 = arith.constant 0 : index
      %c0_146 = arith.constant 0 : index
      %154 = vector.load %arg8[%c0_145, %c0_146] : memref<24x128xf32, #tpu.memory_space<vmem>>, vector<24x128xf32>
      %cst_147 = arith.constant dense<0.000000e+00> : vector<24x128xf32>
      %155 = tpu.matmul %16, %154, %cst_147 {dimension_numbers = #tpu.dot_dimension_numbers<[1], [0], [0], [1], [0, 0, 1, 1], [], []>} : vector<24x24xf32>, vector<24x128xf32>, vector<24x128xf32> -> vector<24x128xf32>
      %156 = arith.addf %155, %19 : vector<24x128xf32>
      %cst_148 = arith.constant 0.000000e+00 : f32
      %157 = arith.subf %cst_148, %24 : f32
      %158 = vector.broadcast %157 : f32 to vector<24x128xf32>
      %159 = arith.maximumf %158, %156 : vector<24x128xf32>
      %160 = vector.broadcast %24 : f32 to vector<24x128xf32>
      %161 = arith.minimumf %160, %159 : vector<24x128xf32>
      %162 = arith.subf %156, %161 : vector<24x128xf32>
      %163 = arith.subf %162, %153 : vector<24x128xf32>
      %164 = arith.mulf %163, %163 : vector<24x128xf32>
      %165 = vector.shape_cast %164 : vector<24x128xf32> to vector<1x24x128xf32>
      %cst_149 = arith.constant dense<0.000000e+00> : vector<1xf32>
      %166 = vector.multi_reduction <add>, %165, %cst_149 [1, 2] : vector<1x24x128xf32> to vector<1xf32>
      %167 = vector.shape_cast %166 : vector<1xf32> to vector<1x1x1xf32>
      %168 = vector.extract %167[0, 0, 0] : f32 from vector<1x1x1xf32>
      %169 = arith.cmpf olt, %168, %cst_120 : f32
      %170 = arith.extui %169 : i1 to i32
      %c0_i32_150 = arith.constant 0 : i32
      %171 = arith.cmpi ne, %170, %c0_i32_150 : i32
      scf.if %171 {
        %c1_i32 = arith.constant 1 : i32
        %c0_152 = arith.constant 0 : index
        %175 = memref.load %arg9[%c0_152] : memref<1xi32, #tpu.memory_space<smem>>
        memref.store %c1_i32, %arg9[%c0_152] : memref<1xi32, #tpu.memory_space<smem>>
      } else {
      }
      %true = arith.constant true
      %172 = arith.xori %169, %true : i1
      %173 = arith.extui %172 : i1 to i32
      %c0_i32_151 = arith.constant 0 : i32
      %174 = arith.cmpi ne, %173, %c0_i32_151 : i32
      scf.if %174 {
        %cst_152 = arith.constant 0.900601446 : f32
        %175 = vector.broadcast %cst_152 : f32 to vector<24x128xf32>
        %176 = arith.mulf %175, %163 : vector<24x128xf32>
        %177 = arith.addf %162, %176 : vector<24x128xf32>
        %c0_153 = arith.constant 0 : index
        %c0_154 = arith.constant 0 : index
        %178 = vector.load %arg8[%c0_153, %c0_154] : memref<24x128xf32, #tpu.memory_space<vmem>>, vector<24x128xf32>
        tpu.vector_store %arg8[%c0_153, %c0_154], %177 {strides = array<i32>} : memref<24x128xf32, #tpu.memory_space<vmem>>, vector<24x128xf32>,
        %c0_155 = arith.constant 0 : index
        %c0_156 = arith.constant 0 : index
        %179 = vector.load %arg7[%c0_155, %c0_156] : memref<24x128xf32, #tpu.memory_space<vmem>>, vector<24x128xf32>
        tpu.vector_store %arg7[%c0_155, %c0_156], %162 {strides = array<i32>} : memref<24x128xf32, #tpu.memory_space<vmem>>, vector<24x128xf32>,
      } else {
      }
    } else {
    }
    %c0_122 = arith.constant 0 : index
    %134 = memref.load %arg9[%c0_122] : memref<1xi32, #tpu.memory_space<smem>>
    %c0_i32_123 = arith.constant 0 : i32
    %135 = arith.cmpi eq, %134, %c0_i32_123 : i32
    %136 = arith.extui %135 : i1 to i32
    %cst_124 = arith.constant 1.000000e-10 : f32
    %c0_i32_125 = arith.constant 0 : i32
    %137 = arith.cmpi ne, %136, %c0_i32_125 : i32
    scf.if %137 {
      %c0_143 = arith.constant 0 : index
      %c0_144 = arith.constant 0 : index
      %153 = vector.load %arg7[%c0_143, %c0_144] : memref<24x128xf32, #tpu.memory_space<vmem>>, vector<24x128xf32>
      %c0_145 = arith.constant 0 : index
      %c0_146 = arith.constant 0 : index
      %154 = vector.load %arg8[%c0_145, %c0_146] : memref<24x128xf32, #tpu.memory_space<vmem>>, vector<24x128xf32>
      %cst_147 = arith.constant dense<0.000000e+00> : vector<24x128xf32>
      %155 = tpu.matmul %16, %154, %cst_147 {dimension_numbers = #tpu.dot_dimension_numbers<[1], [0], [0], [1], [0, 0, 1, 1], [], []>} : vector<24x24xf32>, vector<24x128xf32>, vector<24x128xf32> -> vector<24x128xf32>
      %156 = arith.addf %155, %19 : vector<24x128xf32>
      %cst_148 = arith.constant 0.000000e+00 : f32
      %157 = arith.subf %cst_148, %24 : f32
      %158 = vector.broadcast %157 : f32 to vector<24x128xf32>
      %159 = arith.maximumf %158, %156 : vector<24x128xf32>
      %160 = vector.broadcast %24 : f32 to vector<24x128xf32>
      %161 = arith.minimumf %160, %159 : vector<24x128xf32>
      %162 = arith.subf %156, %161 : vector<24x128xf32>
      %163 = arith.subf %162, %153 : vector<24x128xf32>
      %164 = arith.mulf %163, %163 : vector<24x128xf32>
      %165 = vector.shape_cast %164 : vector<24x128xf32> to vector<1x24x128xf32>
      %cst_149 = arith.constant dense<0.000000e+00> : vector<1xf32>
      %166 = vector.multi_reduction <add>, %165, %cst_149 [1, 2] : vector<1x24x128xf32> to vector<1xf32>
      %167 = vector.shape_cast %166 : vector<1xf32> to vector<1x1x1xf32>
      %168 = vector.extract %167[0, 0, 0] : f32 from vector<1x1x1xf32>
      %169 = arith.cmpf olt, %168, %cst_124 : f32
      %170 = arith.extui %169 : i1 to i32
      %c0_i32_150 = arith.constant 0 : i32
      %171 = arith.cmpi ne, %170, %c0_i32_150 : i32
      scf.if %171 {
        %c1_i32 = arith.constant 1 : i32
        %c0_152 = arith.constant 0 : index
        %175 = memref.load %arg9[%c0_152] : memref<1xi32, #tpu.memory_space<smem>>
        memref.store %c1_i32, %arg9[%c0_152] : memref<1xi32, #tpu.memory_space<smem>>
      } else {
      }
      %true = arith.constant true
      %172 = arith.xori %169, %true : i1
      %173 = arith.extui %172 : i1 to i32
      %c0_i32_151 = arith.constant 0 : i32
      %174 = arith.cmpi ne, %173, %c0_i32_151 : i32
      scf.if %174 {
        %cst_152 = arith.constant 0.903840422 : f32
        %175 = vector.broadcast %cst_152 : f32 to vector<24x128xf32>
        %176 = arith.mulf %175, %163 : vector<24x128xf32>
        %177 = arith.addf %162, %176 : vector<24x128xf32>
        %c0_153 = arith.constant 0 : index
        %c0_154 = arith.constant 0 : index
        %178 = vector.load %arg8[%c0_153, %c0_154] : memref<24x128xf32, #tpu.memory_space<vmem>>, vector<24x128xf32>
        tpu.vector_store %arg8[%c0_153, %c0_154], %177 {strides = array<i32>} : memref<24x128xf32, #tpu.memory_space<vmem>>, vector<24x128xf32>,
        %c0_155 = arith.constant 0 : index
        %c0_156 = arith.constant 0 : index
        %179 = vector.load %arg7[%c0_155, %c0_156] : memref<24x128xf32, #tpu.memory_space<vmem>>, vector<24x128xf32>
        tpu.vector_store %arg7[%c0_155, %c0_156], %162 {strides = array<i32>} : memref<24x128xf32, #tpu.memory_space<vmem>>, vector<24x128xf32>,
      } else {
      }
    } else {
    }
    %c0_126 = arith.constant 0 : index
    %138 = memref.load %arg9[%c0_126] : memref<1xi32, #tpu.memory_space<smem>>
    %c0_i32_127 = arith.constant 0 : i32
    %139 = arith.cmpi eq, %138, %c0_i32_127 : i32
    %140 = arith.extui %139 : i1 to i32
    %cst_128 = arith.constant 1.000000e-10 : f32
    %c0_i32_129 = arith.constant 0 : i32
    %141 = arith.cmpi ne, %140, %c0_i32_129 : i32
    scf.if %141 {
      %c0_143 = arith.constant 0 : index
      %c0_144 = arith.constant 0 : index
      %153 = vector.load %arg7[%c0_143, %c0_144] : memref<24x128xf32, #tpu.memory_space<vmem>>, vector<24x128xf32>
      %c0_145 = arith.constant 0 : index
      %c0_146 = arith.constant 0 : index
      %154 = vector.load %arg8[%c0_145, %c0_146] : memref<24x128xf32, #tpu.memory_space<vmem>>, vector<24x128xf32>
      %cst_147 = arith.constant dense<0.000000e+00> : vector<24x128xf32>
      %155 = tpu.matmul %16, %154, %cst_147 {dimension_numbers = #tpu.dot_dimension_numbers<[1], [0], [0], [1], [0, 0, 1, 1], [], []>} : vector<24x24xf32>, vector<24x128xf32>, vector<24x128xf32> -> vector<24x128xf32>
      %156 = arith.addf %155, %19 : vector<24x128xf32>
      %cst_148 = arith.constant 0.000000e+00 : f32
      %157 = arith.subf %cst_148, %24 : f32
      %158 = vector.broadcast %157 : f32 to vector<24x128xf32>
      %159 = arith.maximumf %158, %156 : vector<24x128xf32>
      %160 = vector.broadcast %24 : f32 to vector<24x128xf32>
      %161 = arith.minimumf %160, %159 : vector<24x128xf32>
      %162 = arith.subf %156, %161 : vector<24x128xf32>
      %163 = arith.subf %162, %153 : vector<24x128xf32>
      %164 = arith.mulf %163, %163 : vector<24x128xf32>
      %165 = vector.shape_cast %164 : vector<24x128xf32> to vector<1x24x128xf32>
      %cst_149 = arith.constant dense<0.000000e+00> : vector<1xf32>
      %166 = vector.multi_reduction <add>, %165, %cst_149 [1, 2] : vector<1x24x128xf32> to vector<1xf32>
      %167 = vector.shape_cast %166 : vector<1xf32> to vector<1x1x1xf32>
      %168 = vector.extract %167[0, 0, 0] : f32 from vector<1x1x1xf32>
      %169 = arith.cmpf olt, %168, %cst_128 : f32
      %170 = arith.extui %169 : i1 to i32
      %c0_i32_150 = arith.constant 0 : i32
      %171 = arith.cmpi ne, %170, %c0_i32_150 : i32
      scf.if %171 {
        %c1_i32 = arith.constant 1 : i32
        %c0_152 = arith.constant 0 : index
        %175 = memref.load %arg9[%c0_152] : memref<1xi32, #tpu.memory_space<smem>>
        memref.store %c1_i32, %arg9[%c0_152] : memref<1xi32, #tpu.memory_space<smem>>
      } else {
      }
      %true = arith.constant true
      %172 = arith.xori %169, %true : i1
      %173 = arith.extui %172 : i1 to i32
      %c0_i32_151 = arith.constant 0 : i32
      %174 = arith.cmpi ne, %173, %c0_i32_151 : i32
      scf.if %174 {
        %cst_152 = arith.constant 0.906873465 : f32
        %175 = vector.broadcast %cst_152 : f32 to vector<24x128xf32>
        %176 = arith.mulf %175, %163 : vector<24x128xf32>
        %177 = arith.addf %162, %176 : vector<24x128xf32>
        %c0_153 = arith.constant 0 : index
        %c0_154 = arith.constant 0 : index
        %178 = vector.load %arg8[%c0_153, %c0_154] : memref<24x128xf32, #tpu.memory_space<vmem>>, vector<24x128xf32>
        tpu.vector_store %arg8[%c0_153, %c0_154], %177 {strides = array<i32>} : memref<24x128xf32, #tpu.memory_space<vmem>>, vector<24x128xf32>,
        %c0_155 = arith.constant 0 : index
        %c0_156 = arith.constant 0 : index
        %179 = vector.load %arg7[%c0_155, %c0_156] : memref<24x128xf32, #tpu.memory_space<vmem>>, vector<24x128xf32>
        tpu.vector_store %arg7[%c0_155, %c0_156], %162 {strides = array<i32>} : memref<24x128xf32, #tpu.memory_space<vmem>>, vector<24x128xf32>,
      } else {
      }
    } else {
    }
    %c0_130 = arith.constant 0 : index
    %142 = memref.load %arg9[%c0_130] : memref<1xi32, #tpu.memory_space<smem>>
    %c0_i32_131 = arith.constant 0 : i32
    %143 = arith.cmpi eq, %142, %c0_i32_131 : i32
    %144 = arith.extui %143 : i1 to i32
    %cst_132 = arith.constant 1.000000e-10 : f32
    %c0_i32_133 = arith.constant 0 : i32
    %145 = arith.cmpi ne, %144, %c0_i32_133 : i32
    scf.if %145 {
      %c0_143 = arith.constant 0 : index
      %c0_144 = arith.constant 0 : index
      %153 = vector.load %arg7[%c0_143, %c0_144] : memref<24x128xf32, #tpu.memory_space<vmem>>, vector<24x128xf32>
      %c0_145 = arith.constant 0 : index
      %c0_146 = arith.constant 0 : index
      %154 = vector.load %arg8[%c0_145, %c0_146] : memref<24x128xf32, #tpu.memory_space<vmem>>, vector<24x128xf32>
      %cst_147 = arith.constant dense<0.000000e+00> : vector<24x128xf32>
      %155 = tpu.matmul %16, %154, %cst_147 {dimension_numbers = #tpu.dot_dimension_numbers<[1], [0], [0], [1], [0, 0, 1, 1], [], []>} : vector<24x24xf32>, vector<24x128xf32>, vector<24x128xf32> -> vector<24x128xf32>
      %156 = arith.addf %155, %19 : vector<24x128xf32>
      %cst_148 = arith.constant 0.000000e+00 : f32
      %157 = arith.subf %cst_148, %24 : f32
      %158 = vector.broadcast %157 : f32 to vector<24x128xf32>
      %159 = arith.maximumf %158, %156 : vector<24x128xf32>
      %160 = vector.broadcast %24 : f32 to vector<24x128xf32>
      %161 = arith.minimumf %160, %159 : vector<24x128xf32>
      %162 = arith.subf %156, %161 : vector<24x128xf32>
      %163 = arith.subf %162, %153 : vector<24x128xf32>
      %164 = arith.mulf %163, %163 : vector<24x128xf32>
      %165 = vector.shape_cast %164 : vector<24x128xf32> to vector<1x24x128xf32>
      %cst_149 = arith.constant dense<0.000000e+00> : vector<1xf32>
      %166 = vector.multi_reduction <add>, %165, %cst_149 [1, 2] : vector<1x24x128xf32> to vector<1xf32>
      %167 = vector.shape_cast %166 : vector<1xf32> to vector<1x1x1xf32>
      %168 = vector.extract %167[0, 0, 0] : f32 from vector<1x1x1xf32>
      %169 = arith.cmpf olt, %168, %cst_132 : f32
      %170 = arith.extui %169 : i1 to i32
      %c0_i32_150 = arith.constant 0 : i32
      %171 = arith.cmpi ne, %170, %c0_i32_150 : i32
      scf.if %171 {
        %c1_i32 = arith.constant 1 : i32
        %c0_152 = arith.constant 0 : index
        %175 = memref.load %arg9[%c0_152] : memref<1xi32, #tpu.memory_space<smem>>
        memref.store %c1_i32, %arg9[%c0_152] : memref<1xi32, #tpu.memory_space<smem>>
      } else {
      }
      %true = arith.constant true
      %172 = arith.xori %169, %true : i1
      %173 = arith.extui %172 : i1 to i32
      %c0_i32_151 = arith.constant 0 : i32
      %174 = arith.cmpi ne, %173, %c0_i32_151 : i32
      scf.if %174 {
        %cst_152 = arith.constant 0.909719586 : f32
        %175 = vector.broadcast %cst_152 : f32 to vector<24x128xf32>
        %176 = arith.mulf %175, %163 : vector<24x128xf32>
        %177 = arith.addf %162, %176 : vector<24x128xf32>
        %c0_153 = arith.constant 0 : index
        %c0_154 = arith.constant 0 : index
        %178 = vector.load %arg8[%c0_153, %c0_154] : memref<24x128xf32, #tpu.memory_space<vmem>>, vector<24x128xf32>
        tpu.vector_store %arg8[%c0_153, %c0_154], %177 {strides = array<i32>} : memref<24x128xf32, #tpu.memory_space<vmem>>, vector<24x128xf32>,
        %c0_155 = arith.constant 0 : index
        %c0_156 = arith.constant 0 : index
        %179 = vector.load %arg7[%c0_155, %c0_156] : memref<24x128xf32, #tpu.memory_space<vmem>>, vector<24x128xf32>
        tpu.vector_store %arg7[%c0_155, %c0_156], %162 {strides = array<i32>} : memref<24x128xf32, #tpu.memory_space<vmem>>, vector<24x128xf32>,
      } else {
      }
    } else {
    }
    %c0_134 = arith.constant 0 : index
    %c0_135 = arith.constant 0 : index
    %146 = vector.load %arg7[%c0_134, %c0_135] : memref<24x128xf32, #tpu.memory_space<vmem>>, vector<24x128xf32>
    %c0_136 = arith.constant 0 : index
    %c0_137 = arith.constant 0 : index
    %147 = vector.load %arg6[%c0_136, %c0_137] : memref<24x128xf32, #tpu.memory_space<vmem>>, vector<24x128xf32>
    tpu.vector_store %arg6[%c0_136, %c0_137], %146 {strides = array<i32>} : memref<24x128xf32, #tpu.memory_space<vmem>>, vector<24x128xf32>,
    %c0_138 = arith.constant 0 : index
    %c0_139 = arith.constant 0 : index
    %148 = vector.load %arg3[%c0_138, %c0_139] : memref<1x24xf32, #tpu.memory_space<vmem>>, vector<1x24xf32>
    %149 = vector.broadcast %148 : vector<1x24xf32> to vector<12x24xf32>
    %150 = arith.mulf %1, %149 : vector<12x24xf32>
    %cst_140 = arith.constant dense<0.000000e+00> : vector<12x128xf32>
    %151 = tpu.matmul %150, %146, %cst_140 {dimension_numbers = #tpu.dot_dimension_numbers<[1], [0], [0], [1], [0, 0, 1, 1], [], []>} : vector<12x24xf32>, vector<24x128xf32>, vector<12x128xf32> -> vector<12x128xf32>
    %c0_141 = arith.constant 0 : index
    %c0_142 = arith.constant 0 : index
    %152 = vector.load %arg5[%c0_141, %c0_142] : memref<12x128xf32, #tpu.memory_space<vmem>>, vector<12x128xf32>
    tpu.vector_store %arg5[%c0_141, %c0_142], %151 {strides = array<i32>} : memref<12x128xf32, #tpu.memory_space<vmem>>, vector<12x128xf32>,
    return
  }
  func.func @transform_0(%arg0: i32) -> (i32, i32) {
    %c0_i32 = arith.constant 0 : i32
    %c0_i32_0 = arith.constant 0 : i32
    %c0_i32_1 = arith.constant 0 : i32
    return %c0_i32, %c0_i32_0 : i32, i32
  }
  func.func @transform_1(%arg0: i32) -> (i32, i32) {
    %c0_i32 = arith.constant 0 : i32
    %c0_i32_0 = arith.constant 0 : i32
    %c0_i32_1 = arith.constant 0 : i32
    return %c0_i32, %c0_i32_0 : i32, i32
  }
  func.func @transform_2(%arg0: i32) -> (i32, i32) {
    %c0_i32 = arith.constant 0 : i32
    %c0_i32_0 = arith.constant 0 : i32
    %c0_i32_1 = arith.constant 0 : i32
    return %c0_i32, %c0_i32_0 : i32, i32
  }
  func.func @transform_3(%arg0: i32) -> (i32, i32) {
    %c0_i32 = arith.constant 0 : i32
    %c0_i32_0 = arith.constant 0 : i32
    return %c0_i32, %arg0 : i32, i32
  }
  func.func @transform_4(%arg0: i32) -> (i32, i32) {
    %c0_i32 = arith.constant 0 : i32
    %c0_i32_0 = arith.constant 0 : i32
    return %c0_i32, %arg0 : i32, i32
  }
  func.func @transform_5(%arg0: i32) -> (i32, i32) {
    %c0_i32 = arith.constant 0 : i32
    %c0_i32_0 = arith.constant 0 : i32
    return %c0_i32, %arg0 : i32, i32
  }
}

</mosaic_0001>

<bundles_post_ra>
// kernel: tpu_custom_call.1
= control target key start
LH: loop header
LB: loop body
LE: loop exit
PB: predicated region body
PF: predicated region fallthrough
CT: control target
= control target key end

     0   :  { %11 = vsyncpa [#allocation6], 0  ;;  %s4327_s0 = inlined_call_operand.hbm [shape: f32[24,24], index: 0, kind: input, shape index: {}]   ;;  %s4328_s1 = inlined_call_operand.hbm [shape: f32[12,24], index: 1, kind: input, shape index: {}]   ;;  %s4329_s2 = inlined_call_operand.vmem [shape: f32[1,24], index: 2, kind: input, shape index: {}]   ;;  %s4330_s3 = inlined_call_operand.hbm [shape: f32[12,128], index: 3, kind: input, shape index: {}]   ;;  %s4331_s4 = inlined_call_operand.hbm [shape: f32[12,128], index: 4, kind: output, shape index: {0}]   ;;  %s4332_s5 = inlined_call_operand.hbm [shape: f32[24,128], index: 5, kind: output, shape index: {1}]  }
   0x1   :  { %12 = vsyncpa [#allocation9], 0 }
   0x2   :  { %13 = vsyncpa [#allocation7], 0 }
   0x3   :  { %14 = vsyncpa [#allocation13], 0  ;;  %s32_s20 = sshll.u32 %s4328_s1, 4  ;;  %s3723_s21 = smov [#allocation8]   ;;  %s33_s20 = int_to_ptr.hbm [resolvable:$true] %s32_s20 }
   0x4   :  { %s34_s22 = sshll.u32 %s3723_s21, 4  ;;  %s19_s25 = sshll.u32 %s4327_s0, 4  ;;  %s35_s22 = int_to_ptr.vmem [resolvable:$true] %s34_s22  ;;  %s20_s25 = int_to_ptr.hbm [resolvable:$true] %s19_s25 }
   0x5   :  { %s3724_s26 = smov 128   ;;  %s3725_s27 = smov 8  }
   0x6   :  { %40 = dma.hbm_to_vmem [thread:$0]  %s33_s20, 256, %s35_s22, [#allocation9], %s3724_s26, %s3724_s26, %s3725_s27  }
   0x7   :  { %s3726_s28 = smov [#allocation5]   ;;  %s47_s1 = sshll.u32 %s4330_s3, 4  ;;  %s48_s1 = int_to_ptr.hbm [resolvable:$true] %s47_s1 }
   0x8   :  { %s21_s29 = sshll.u32 %s3726_s28, 4  ;;  %s3727_s0 = smov [#allocation10]   ;;  %s22_s29 = int_to_ptr.vmem [resolvable:$true] %s21_s29 }
   0x9   :  { %27 = dma.hbm_to_vmem [thread:$0]  %s20_s25, 384, %s22_s29, [#allocation6], %s3724_s26, %s3724_s26, %s3725_s27  }
   0xa   :  { %s49_s7 = sshll.u32 %s3727_s0, 4  ;;  %s50_s7 = int_to_ptr.vmem [resolvable:$true] %s49_s7 }
   0xb   :  { %55 = dma.hbm_to_vmem [thread:$0]  %s48_s1, 256, %s50_s7, [#allocation9], %s3724_s26, %s3724_s26, %s3725_s27  }
   0xc   :  { %3715 = dma.done.wait [#allocation6], 384  }
   0xd   :  { %3716 = vsyncadd [#allocation6], 4294966912 }
   0xe   :  { %3717 = dma.done.wait [#allocation9], 512  }
   0xf   :  { %3718 = vsyncadd [#allocation9], 4294966784  ;;  %s3728_s8 = smov 0   ;;  %v3810_v0 = vld [vmem:[#allocation5] sm:$0xff]  ;;  %v3812_v1 = vld [vmem:[#allocation5 + $0x8] sm:$0xff]  ;;  %vm78_vm0 = vcmask 195584   ;;  %v105_v34 = vlaneseq }
  0x10   :  { %210 = sst [smem:[#allocation4]] %s3728_s8  ;;  %v3814_v2 = vld [vmem:[#allocation5 + $0x10] sm:$0xff]  ;;  %v75_v3 = vmul.f32 %v3810_v0, %v3810_v0  ;;  %v76_v4 = vmul.f32 %v3812_v1, %v3812_v1  ;;  %v3825_v11 = vld [vmem:[#allocation8] sm:$0xff]  ;;  %v3828_v12 = vld [vmem:[#allocation8 + $0x8] sm:$0xf]  ;;  %vm169_vm1 = vcmask 1043456  }
  0x11   :  { %v77_v5 = vmul.f32 %v3814_v2, %v3814_v2  ;;  %v74_v20 = vld [vmem:[#allocation10 + $0x8] sm:$0xf]  ;;  %v73_v21 = vld [vmem:[#allocation10] sm:$0xff]  ;;  %vm159_vm5 = vcmask 97280   ;;  %v3729_v32 = vmov 0.0   ;;  %v106_v35 = vshrl.u32 %v105_v34, 7 }
  0x12   :  { %v79_v6 = vsel %vm78_vm0, %v75_v3, 0.0  ;;  %v80_v7 = vsel %vm78_vm0, %v76_v4, 0.0  ;;  %3145 = vmatpush.msk.msra.mxu0 %vm169_vm1, %v74_v20  ;;  %3271 = vmatpush.msk.msra.mxu1 %vm169_vm1, %v74_v20  ;;  %202 = vst [vmem:[#allocation2 + $0x10] sm:$0xff] %v3729_v32  ;;  %v110_v38 = vand.u32 127, %v105_v34  ;;  %s3730_s13 = smov 1  }
  0x13   :  { %v82_v8 = vsel %vm78_vm0, %v77_v5, 0.0  ;;  %v81_v9 = vadd.f32 %v80_v7, %v79_v6  ;;  %3272 = vmatpush.msk.msra.mxu2 %vm169_vm1, %v74_v20  ;;  %203 = vst [vmem:[#allocation2] sm:$0xff] %v3729_v32  ;;  %v107_v36 = vadd.s32 8, %v106_v35  ;;  %v108_v37 = vadd.s32 16, %v106_v35 }
  0x14   :  { %188 = vmatpush.msra.mxu0 %v73_v21  ;;  %3273 = vmatpush.msra.mxu1 %v73_v21  ;;  %204 = vst [vmem:[#allocation2 + $0x8] sm:$0xff] %v3729_v32  ;;  %vm111_vm6 = vcmp.eq.s32.totalorder %v106_v35, %v110_v38 }
  0x15   :  { %v83_v10 = vadd.f32 %v82_v8, %v81_v9  ;;  %3274 = vmatpush.msra.mxu2 %v73_v21  ;;  %205 = vst [vmem:[#allocation3 + $0x8] sm:$0xff] %v3729_v32  ;;  %vm112_vm7 = vcmp.eq.s32.totalorder %v107_v36, %v110_v38  ;;  %vm113_vm8 = vcmp.eq.s32.totalorder %v108_v37, %v110_v38  ;;  %v3142_v39 = vsel %vm111_vm6, 1.0, %v3729_v32 }
  0x16   :  { %206 = vst [vmem:[#allocation3] sm:$0xff] %v3729_v32  ;;  %v3143_v40 = vsel %vm112_vm7, 1.0, %v3729_v32  ;;  %v3144_v41 = vsel %vm113_vm8, 1.0, %v3729_v32 }
  0x17   :  { %84 = vadd.xlane.f32.xlu0 %v83_v10  ;;  %207 = vst [vmem:[#allocation3 + $0x10] sm:$0xff] %v3729_v32 }
  0x19   :  { %v216_v4 = vld [vmem:[#allocation2 + $0x10] sm:$0xff] }
  0x1a   :  { %v217_v6 = vld [vmem:[#allocation2] sm:$0xff] }
  0x1c   :  { %v219_v57 = vld [vmem:[#allocation3 + $0x8] sm:$0xff] }
  0x1d   :  { %v220_v56 = vld [vmem:[#allocation3] sm:$0xff] }
  0x1e   :  { %v221_v55 = vld [vmem:[#allocation3 + $0x10] sm:$0xff] }
  0x40   :  { %127 = vxpose.xlu0.b32.start [1/2] (short) (narrow) %v3825_v11, 24 }
  0x48   :  { %128 = vxpose.xlu0.b32.end [2/2] (short) (narrow) %v3828_v12, 24 }
  0x8a   :  { %v85_v13 = vpop.xlane.xlu0 %84 }
  0x8b   :  { %v86_v14 = vrot.slane %v85_v13, 4 }
  0x8d   :  { %v87_v15 = vadd.f32 %v86_v14, %v85_v13 }
  0x8f   :  { %v88_v16 = vrot.slane %v87_v15, 2 }
  0x91   :  { %v89_v17 = vadd.f32 %v88_v16, %v87_v15  ;;  %v218_v16 = vld [vmem:[#allocation2 + $0x8] sm:$0xff] }
  0x93   :  { %v90_v18 = vrot.slane %v89_v17, 1 }
  0x95   :  { %v91_v19 = vadd.f32 %v90_v18, %v89_v17 }
  0x97   :  { %3458 = vpush %v91_v19 }
  0xc8   :  { %s3459_s3 = spop %3458 }
  0xc9   :  { %v93_v22 = vstv %s3459_s3 }
  0xca   :  { %3591 = vrsqrt.f32 %v93_v22  ;;  %vm100_vm3 = vweird.f32 %v93_v22 }
  0xd0   :  { %v3592_v23 = vpop.eup %3591 }
  0xd1   :  { %v95_v24 = vmul.f32 %v3592_v23, %v93_v22  ;;  %vm101_vm2 = vweird.f32 %v3592_v23 }
  0xd2   :  { %vm102_vm4 = vmor %vm100_vm3, %vm101_vm2 }
  0xd3   :  { %v96_v25 = vmul.f32 %v3592_v23, %v95_v24 }
  0xd5   :  { %v97_v26 = vmul.f32 0.5, %v96_v25 }
  0xd7   :  { %v98_v27 = vsub.f32 1.5, %v97_v26 }
  0xd9   :  { %v99_v28 = vmul.f32 %v3592_v23, %v98_v27 }
  0xdb   :  { %v103_v29 = vsel %vm102_vm4, %v3592_v23, %v99_v28 }
  0xdc   :  { %3460 = vpush %v103_v29 }
  0xe4   :  { %v143_v30 = vpop.trf.xlu0 }
  0xe5   :  { %3146 = vmatmul.msk.f32.vlgmr.msra.gmra.mxu0 %vm159_vm5, %v143_v30 }
  0xe6   :  { %244 = vmatpush.msra.mxu0 %v221_v55 }
  0xe8   :  { %245 = vmatpush.msra.mxu0 %v220_v56 }
  0xea   :  { %246 = vmatpush.msra.mxu0 %v219_v57 }
  0xec   :  { %v144_v31 = vpop.trf.xlu0 }
  0xed   :  { %3147 = vmatmul.msk.f32.vlgmr.msra.gmra.mxu1 %vm159_vm5, %v144_v31 }
  0xee   :  { %3275 = vmatpush.msra.mxu1 %v221_v55 }
  0xf0   :  { %3277 = vmatpush.msra.mxu1 %v220_v56 }
  0xf2   :  { %3279 = vmatpush.msra.mxu1 %v219_v57 }
  0xf4   :  { %v145_v33 = vpop.trf.xlu0 }
  0xf5   :  { %3148 = vmatmul.msk.f32.vlgmr.msra.gmra.mxu2 %vm159_vm5, %v145_v33 }
  0xf6   :  { %3276 = vmatpush.msra.mxu2 %v221_v55 }
  0xf8   :  { %3278 = vmatpush.msra.mxu2 %v220_v56 }
  0xfa   :  { %3280 = vmatpush.msra.mxu2 %v219_v57 }
 0x10d   :  { %s3831_s9 = spop %3460 }
 0x10e   :  { %v120_v42 = vstv %s3831_s9  ;;  %s208_s10 = smul.f32 0.1, %s3831_s9 }
 0x10f   :  { %v121_v43 = vmul.f32 %v120_v42, %v3810_v0  ;;  %v122_v44 = vmul.f32 %v120_v42, %v3812_v1  ;;  %v123_v45 = vmul.f32 %v120_v42, %v3814_v2 }
 0x110   :  { %s257_s11 = ssub.f32 0.0, %s208_s10  ;;  %v3863_v62 = vstv %s208_s10 }
 0x111   :  { %v3838_v46 = vsub.f32 %v3142_v39, %v121_v43  ;;  %v3840_v47 = vsub.f32 %v3143_v40, %v122_v44  ;;  %v3842_v48 = vsub.f32 %v3144_v41, %v123_v45 }
 0x112   :  { %v3858_v59 = vstv %s257_s11 }
 0x113   :  { %3150 = vmatmul.msk.f32.vlgmr.msra.gmra.mxu0 %vm78_vm0, %v3838_v46  ;;  %3151 = vmatmul.msk.f32.vlgmr.msra.gmra.mxu1 %vm78_vm0, %v3840_v47 }
 0x114   :  { %3152 = vmatmul.msk.f32.vlgmr.msra.gmra.mxu2 %vm78_vm0, %v3842_v48 }
 0x162   :  { %v190_v49 = vpop.f32.mrf.mxu0 }
 0x163   :  { %v3844_v50 = vmul.f32 %v190_v49, %v120_v42 }
 0x16a   :  { %v193_v51 = vpop.f32.mrf.mxu1 }
 0x16b   :  { %v3846_v52 = vmul.f32 %v193_v51, %v120_v42 }
 0x178   :  { %v196_v53 = vpop.f32.mrf.mxu2 }
 0x179   :  { %v3848_v54 = vmul.f32 %v196_v53, %v120_v42 }
 0x190   :  { %v248_v58 = vpop.f32.mrf.mxu0  ;;  %v251_v61 = vpop.f32.mrf.mxu1 }
 0x191   :  { %v249_v60 = vadd.f32 %v248_v58, %v3844_v50  ;;  %v252_v63 = vadd.f32 %v251_v61, %v3846_v52 }
 0x193   :  { %v259_v0 = vmax.f32 %v3858_v59, %v249_v60  ;;  %v260_v1 = vmax.f32 %v3858_v59, %v252_v63 }
 0x195   :  { %v263_v2 = vmin.f32 %v3863_v62, %v259_v0  ;;  %v264_v3 = vmin.f32 %v3863_v62, %v260_v1 }
 0x197   :  { %v266_v5 = vsub.f32 %v249_v60, %v263_v2  ;;  %v254_v7 = vpop.f32.mrf.mxu2  ;;  %v267_v8 = vsub.f32 %v252_v63, %v264_v3 }
 0x198   :  { %v255_v9 = vadd.f32 %v254_v7, %v3848_v54 }
 0x199   :  { %v269_v10 = vsub.f32 %v266_v5, %v216_v4  ;;  %v270_v13 = vsub.f32 %v267_v8, %v217_v6 }
 0x19a   :  { %v261_v14 = vmax.f32 %v3858_v59, %v255_v9 }
 0x19b   :  { %v272_v18 = vmul.f32 %v269_v10, %v269_v10  ;;  %v273_v19 = vmul.f32 %v270_v13, %v270_v13 }
 0x19c   :  { %v265_v15 = vmin.f32 %v3863_v62, %v261_v14 }
 0x19d   :  { %v275_v22 = vadd.f32 %v273_v19, %v272_v18 }
 0x19e   :  { %v268_v17 = vsub.f32 %v255_v9, %v265_v15 }
 0x1a0   :  { %v271_v20 = vsub.f32 %v268_v17, %v218_v16 }
 0x1a2   :  { %v274_v21 = vmul.f32 %v271_v20, %v271_v20 }
 0x1a4   :  { %v276_v23 = vadd.f32 %v275_v22, %v274_v21 }
 0x1a6   :  { %277 = vadd.xlane.f32.xlu0 %v276_v23 }
 0x219   :  { %v278_v24 = vpop.xlane.xlu0 %277 }
 0x21a   :  { %v279_v25 = vrot.slane %v278_v24, 4 }
 0x21c   :  { %v280_v26 = vadd.f32 %v279_v25, %v278_v24 }
 0x21e   :  { %v281_v27 = vrot.slane %v280_v26, 2 }
 0x220   :  { %v282_v28 = vadd.f32 %v281_v27, %v280_v26 }
 0x222   :  { %v283_v29 = vrot.slane %v282_v28, 1 }
 0x224   :  { %v284_v30 = vadd.f32 %v283_v29, %v282_v28 }
 0x226   :  { %3462 = vpush %v284_v30 }
 0x257   :  { %s3463_s12 = spop %3462 }
 0x258   :  { %p286_p0 = scmp.lt.f32.partialorder %s3463_s12, 1e-10 }
 0x25a   :  { %3522 = sst [smem:[#allocation4]] (%p286_p0), %s3730_s13  ;;  %293 = sbr.rel (%p286_p0) target bundleno = 614 (0x266), region = 41 }
 0x25f   :  { %v294_v31 = vmul.f32 0.0, %v269_v10  ;;  %v295_v32 = vmul.f32 0.0, %v270_v13  ;;  %v296_v33 = vmul.f32 0.0, %v271_v20  ;;  %303 = vst [vmem:[#allocation2 + $0x10] sm:$0xff] %v266_v5 }
 0x260   :  { %304 = vst [vmem:[#allocation2] sm:$0xff] %v267_v8 }
 0x261   :  { %v297_v34 = vadd.f32 %v294_v31, %v266_v5  ;;  %v298_v35 = vadd.f32 %v295_v32, %v267_v8  ;;  %v299_v36 = vadd.f32 %v296_v33, %v268_v17  ;;  %305 = vst [vmem:[#allocation2 + $0x8] sm:$0xff] %v268_v17 }
 0x263   :  { %300 = vst [vmem:[#allocation3 + $0x8] sm:$0xff] %v297_v34 }
 0x264   :  { %301 = vst [vmem:[#allocation3] sm:$0xff] %v298_v35 }
 0x265   :  { %302 = vst [vmem:[#allocation3 + $0x10] sm:$0xff] %v299_v36 }
 0x266 PF:  { %s306_s14 = sld [smem:[#allocation4]] }
 0x26c   :  { %p3153_p1 = scmp.ne.s32.totalorder %s306_s14, 0 }
 0x26d   :  { %s3731_s16 = smov (!%p3153_p1), 1  }
 0x26e   :  { %310 = sbr.rel (%p3153_p1) target bundleno = 972 (0x3cc), region = 45 }
 0x273   :  { %v316_v37 = vld [vmem:[#allocation3 + $0x10] sm:$0xff]  ;;  %v315_v38 = vld [vmem:[#allocation3] sm:$0xff]  ;;  %v314_v39 = vld [vmem:[#allocation3 + $0x8] sm:$0xff] }
 0x274   :  { %339 = vmatpush.msra.mxu0 %v316_v37  ;;  %3281 = vmatpush.msra.mxu1 %v316_v37  ;;  %v311_v53 = vld [vmem:[#allocation2 + $0x10] sm:$0xff]  ;;  %v312_v56 = vld [vmem:[#allocation2] sm:$0xff]  ;;  %v313_v2 = vld [vmem:[#allocation2 + $0x8] sm:$0xff] }
 0x275   :  { %3282 = vmatpush.msra.mxu2 %v316_v37 }
 0x276   :  { %340 = vmatpush.msra.mxu0 %v315_v38  ;;  %3283 = vmatpush.msra.mxu1 %v315_v38 }
 0x277   :  { %3284 = vmatpush.msra.mxu2 %v315_v38 }
 0x278   :  { %341 = vmatpush.msra.mxu0 %v314_v39  ;;  %3285 = vmatpush.msra.mxu1 %v314_v39 }
 0x279   :  { %3286 = vmatpush.msra.mxu2 %v314_v39  ;;  %3154 = vmatmul.msk.f32.vlgmr.msra.gmra.mxu0 %vm78_vm0, %v3838_v46 }
 0x27a   :  { %3155 = vmatmul.msk.f32.vlgmr.msra.gmra.mxu1 %vm78_vm0, %v3840_v47  ;;  %3156 = vmatmul.msk.f32.vlgmr.msra.gmra.mxu2 %vm78_vm0, %v3842_v48 }
 0x2f6   :  { %v343_v40 = vpop.f32.mrf.mxu0 }
 0x2f7   :  { %v344_v41 = vadd.f32 %v343_v40, %v3844_v50  ;;  %v346_v42 = vpop.f32.mrf.mxu1 }
 0x2f8   :  { %v347_v43 = vadd.f32 %v346_v42, %v3846_v52 }
 0x2f9   :  { %v354_v44 = vmax.f32 %v3858_v59, %v344_v41 }
 0x2fa   :  { %v355_v45 = vmax.f32 %v3858_v59, %v347_v43 }
 0x2fb   :  { %v358_v49 = vmin.f32 %v3863_v62, %v354_v44 }
 0x2fc   :  { %v359_v51 = vmin.f32 %v3863_v62, %v355_v45 }
 0x2fd   :  { %v361_v55 = vsub.f32 %v344_v41, %v358_v49  ;;  %v349_v57 = vpop.f32.mrf.mxu2 }
 0x2fe   :  { %v362_v58 = vsub.f32 %v347_v43, %v359_v51  ;;  %v350_v60 = vadd.f32 %v349_v57, %v3848_v54 }
 0x2ff   :  { %v364_v61 = vsub.f32 %v361_v55, %v311_v53 }
 0x300   :  { %v365_v63 = vsub.f32 %v362_v58, %v312_v56  ;;  %v356_v0 = vmax.f32 %v3858_v59, %v350_v60 }
 0x301   :  { %v367_v4 = vmul.f32 %v364_v61, %v364_v61 }
 0x302   :  { %v360_v1 = vmin.f32 %v3863_v62, %v356_v0  ;;  %v368_v5 = vmul.f32 %v365_v63, %v365_v63 }
 0x304   :  { %v363_v3 = vsub.f32 %v350_v60, %v360_v1  ;;  %v370_v8 = vadd.f32 %v368_v5, %v367_v4 }
 0x306   :  { %v366_v6 = vsub.f32 %v363_v3, %v313_v2 }
 0x308   :  { %v369_v7 = vmul.f32 %v366_v6, %v366_v6 }
 0x30a   :  { %v371_v9 = vadd.f32 %v370_v8, %v369_v7 }
 0x30c   :  { %372 = vadd.xlane.f32.xlu0 %v371_v9 }
 0x37f   :  { %v373_v10 = vpop.xlane.xlu0 %372 }
 0x380   :  { %v374_v13 = vrot.slane %v373_v10, 4 }
 0x382   :  { %v375_v14 = vadd.f32 %v374_v13, %v373_v10 }
 0x384   :  { %v376_v15 = vrot.slane %v375_v14, 2 }
 0x386   :  { %v377_v16 = vadd.f32 %v376_v15, %v375_v14 }
 0x388   :  { %v378_v17 = vrot.slane %v377_v16, 1 }
 0x38a   :  { %v379_v18 = vadd.f32 %v378_v17, %v377_v16 }
 0x38c   :  { %3464 = vpush %v379_v18 }
 0x3bd   :  { %s3465_s15 = spop %3464 }
 0x3be   :  { %p381_p2 = scmp.lt.f32.partialorder %s3465_s15, 1e-10 }
 0x3c0   :  { %3523 = sst [smem:[#allocation4]] (%p381_p2), %s3731_s16  ;;  %388 = sbr.rel (%p381_p2) target bundleno = 972 (0x3cc), region = 53 }
 0x3c5   :  { %v389_v19 = vmul.f32 0.2817535, %v364_v61  ;;  %v390_v20 = vmul.f32 0.2817535, %v365_v63  ;;  %v391_v21 = vmul.f32 0.2817535, %v366_v6 }
 0x3c6   :  { %398 = vst [vmem:[#allocation2 + $0x10] sm:$0xff] %v361_v55 }
 0x3c7   :  { %v392_v22 = vadd.f32 %v389_v19, %v361_v55  ;;  %v393_v23 = vadd.f32 %v390_v20, %v362_v58  ;;  %v394_v24 = vadd.f32 %v391_v21, %v363_v3  ;;  %399 = vst [vmem:[#allocation2] sm:$0xff] %v362_v58 }
 0x3c8   :  { %400 = vst [vmem:[#allocation2 + $0x8] sm:$0xff] %v363_v3 }
 0x3c9   :  { %395 = vst [vmem:[#allocation3 + $0x8] sm:$0xff] %v392_v22 }
 0x3ca   :  { %396 = vst [vmem:[#allocation3] sm:$0xff] %v393_v23 }
 0x3cb   :  { %397 = vst [vmem:[#allocation3 + $0x10] sm:$0xff] %v394_v24 }
 0x3cc PF:  { %s401_s17 = sld [smem:[#allocation4]] }
 0x3d2   :  { %p3157_p3 = scmp.ne.s32.totalorder %s401_s17, 0 }
 0x3d3   :  { %s3732_s19 = smov (!%p3157_p3), 1  }
 0x3d4   :  { %405 = sbr.rel (%p3157_p3) target bundleno = 1330 (0x532), region = 57 }
 0x3d9   :  { %v411_v25 = vld [vmem:[#allocation3 + $0x10] sm:$0xff]  ;;  %v410_v26 = vld [vmem:[#allocation3] sm:$0xff]  ;;  %v409_v27 = vld [vmem:[#allocation3 + $0x8] sm:$0xff] }
 0x3da   :  { %434 = vmatpush.msra.mxu0 %v411_v25  ;;  %3287 = vmatpush.msra.mxu1 %v411_v25  ;;  %v406_v36 = vld [vmem:[#allocation2 + $0x10] sm:$0xff]  ;;  %v407_v38 = vld [vmem:[#allocation2] sm:$0xff]  ;;  %v408_v49 = vld [vmem:[#allocation2 + $0x8] sm:$0xff] }
 0x3db   :  { %3288 = vmatpush.msra.mxu2 %v411_v25 }
 0x3dc   :  { %435 = vmatpush.msra.mxu0 %v410_v26  ;;  %3289 = vmatpush.msra.mxu1 %v410_v26 }
 0x3dd   :  { %3290 = vmatpush.msra.mxu2 %v410_v26 }
 0x3de   :  { %436 = vmatpush.msra.mxu0 %v409_v27  ;;  %3291 = vmatpush.msra.mxu1 %v409_v27 }
 0x3df   :  { %3292 = vmatpush.msra.mxu2 %v409_v27  ;;  %3158 = vmatmul.msk.f32.vlgmr.msra.gmra.mxu0 %vm78_vm0, %v3838_v46 }
 0x3e0   :  { %3159 = vmatmul.msk.f32.vlgmr.msra.gmra.mxu1 %vm78_vm0, %v3840_v47  ;;  %3160 = vmatmul.msk.f32.vlgmr.msra.gmra.mxu2 %vm78_vm0, %v3842_v48 }
 0x45c   :  { %v438_v28 = vpop.f32.mrf.mxu0 }
 0x45d   :  { %v439_v29 = vadd.f32 %v438_v28, %v3844_v50  ;;  %v441_v30 = vpop.f32.mrf.mxu1 }
 0x45e   :  { %v442_v31 = vadd.f32 %v441_v30, %v3846_v52 }
 0x45f   :  { %v449_v32 = vmax.f32 %v3858_v59, %v439_v29 }
 0x460   :  { %v450_v33 = vmax.f32 %v3858_v59, %v442_v31 }
 0x461   :  { %v453_v34 = vmin.f32 %v3863_v62, %v449_v32 }
 0x462   :  { %v454_v35 = vmin.f32 %v3863_v62, %v450_v33 }
 0x463   :  { %v456_v37 = vsub.f32 %v439_v29, %v453_v34  ;;  %v444_v39 = vpop.f32.mrf.mxu2 }
 0x464   :  { %v457_v40 = vsub.f32 %v442_v31, %v454_v35  ;;  %v445_v41 = vadd.f32 %v444_v39, %v3848_v54 }
 0x465   :  { %v459_v42 = vsub.f32 %v456_v37, %v406_v36 }
 0x466   :  { %v460_v43 = vsub.f32 %v457_v40, %v407_v38  ;;  %v451_v44 = vmax.f32 %v3858_v59, %v445_v41 }
 0x467   :  { %v462_v53 = vmul.f32 %v459_v42, %v459_v42 }
 0x468   :  { %v455_v45 = vmin.f32 %v3863_v62, %v451_v44  ;;  %v463_v55 = vmul.f32 %v460_v43, %v460_v43 }
 0x46a   :  { %v458_v51 = vsub.f32 %v445_v41, %v455_v45  ;;  %v465_v58 = vadd.f32 %v463_v55, %v462_v53 }
 0x46c   :  { %v461_v56 = vsub.f32 %v458_v51, %v408_v49 }
 0x46e   :  { %v464_v57 = vmul.f32 %v461_v56, %v461_v56 }
 0x470   :  { %v466_v60 = vadd.f32 %v465_v58, %v464_v57 }
 0x472   :  { %467 = vadd.xlane.f32.xlu0 %v466_v60 }
 0x4e5   :  { %v468_v61 = vpop.xlane.xlu0 %467 }
 0x4e6   :  { %v469_v63 = vrot.slane %v468_v61, 4 }
 0x4e8   :  { %v470_v0 = vadd.f32 %v469_v63, %v468_v61 }
 0x4ea   :  { %v471_v1 = vrot.slane %v470_v0, 2 }
 0x4ec   :  { %v472_v2 = vadd.f32 %v471_v1, %v470_v0 }
 0x4ee   :  { %v473_v3 = vrot.slane %v472_v2, 1 }
 0x4f0   :  { %v474_v4 = vadd.f32 %v473_v3, %v472_v2 }
 0x4f2   :  { %3466 = vpush %v474_v4 }
 0x523   :  { %s3467_s18 = spop %3466 }
 0x524   :  { %p476_p4 = scmp.lt.f32.partialorder %s3467_s18, 1e-10 }
 0x526   :  { %3524 = sst [smem:[#allocation4]] (%p476_p4), %s3732_s19  ;;  %483 = sbr.rel (%p476_p4) target bundleno = 1330 (0x532), region = 65 }
 0x52b   :  { %v484_v5 = vmul.f32 0.43404278, %v459_v42  ;;  %v485_v6 = vmul.f32 0.43404278, %v460_v43  ;;  %v486_v7 = vmul.f32 0.43404278, %v461_v56 }
 0x52c   :  { %493 = vst [vmem:[#allocation2 + $0x10] sm:$0xff] %v456_v37 }
 0x52d   :  { %v487_v8 = vadd.f32 %v484_v5, %v456_v37  ;;  %v488_v9 = vadd.f32 %v485_v6, %v457_v40  ;;  %v489_v10 = vadd.f32 %v486_v7, %v458_v51  ;;  %494 = vst [vmem:[#allocation2] sm:$0xff] %v457_v40 }
 0x52e   :  { %495 = vst [vmem:[#allocation2 + $0x8] sm:$0xff] %v458_v51 }
 0x52f   :  { %490 = vst [vmem:[#allocation3 + $0x8] sm:$0xff] %v487_v8 }
 0x530   :  { %491 = vst [vmem:[#allocation3] sm:$0xff] %v488_v9 }
 0x531   :  { %492 = vst [vmem:[#allocation3 + $0x10] sm:$0xff] %v489_v10 }
 0x532 PF:  { %s496_s20 = sld [smem:[#allocation4]] }
 0x538   :  { %p3161_p5 = scmp.ne.s32.totalorder %s496_s20, 0 }
 0x539   :  { %s3733_s22 = smov (!%p3161_p5), 1  }
 0x53a   :  { %500 = sbr.rel (%p3161_p5) target bundleno = 1688 (0x698), region = 69 }
 0x53f   :  { %v506_v13 = vld [vmem:[#allocation3 + $0x10] sm:$0xff]  ;;  %v505_v14 = vld [vmem:[#allocation3] sm:$0xff]  ;;  %v504_v15 = vld [vmem:[#allocation3 + $0x8] sm:$0xff] }
 0x540   :  { %529 = vmatpush.msra.mxu0 %v506_v13  ;;  %3293 = vmatpush.msra.mxu1 %v506_v13  ;;  %v501_v24 = vld [vmem:[#allocation2 + $0x10] sm:$0xff]  ;;  %v502_v26 = vld [vmem:[#allocation2] sm:$0xff]  ;;  %v503_v34 = vld [vmem:[#allocation2 + $0x8] sm:$0xff] }
 0x541   :  { %3294 = vmatpush.msra.mxu2 %v506_v13 }
 0x542   :  { %530 = vmatpush.msra.mxu0 %v505_v14  ;;  %3295 = vmatpush.msra.mxu1 %v505_v14 }
 0x543   :  { %3296 = vmatpush.msra.mxu2 %v505_v14 }
 0x544   :  { %531 = vmatpush.msra.mxu0 %v504_v15  ;;  %3297 = vmatpush.msra.mxu1 %v504_v15 }
 0x545   :  { %3298 = vmatpush.msra.mxu2 %v504_v15  ;;  %3162 = vmatmul.msk.f32.vlgmr.msra.gmra.mxu0 %vm78_vm0, %v3838_v46 }
 0x546   :  { %3163 = vmatmul.msk.f32.vlgmr.msra.gmra.mxu1 %vm78_vm0, %v3840_v47  ;;  %3164 = vmatmul.msk.f32.vlgmr.msra.gmra.mxu2 %vm78_vm0, %v3842_v48 }
 0x5c2   :  { %v533_v16 = vpop.f32.mrf.mxu0 }
 0x5c3   :  { %v534_v17 = vadd.f32 %v533_v16, %v3844_v50  ;;  %v536_v18 = vpop.f32.mrf.mxu1 }
 0x5c4   :  { %v537_v19 = vadd.f32 %v536_v18, %v3846_v52 }
 0x5c5   :  { %v544_v20 = vmax.f32 %v3858_v59, %v534_v17 }
 0x5c6   :  { %v545_v21 = vmax.f32 %v3858_v59, %v537_v19 }
 0x5c7   :  { %v548_v22 = vmin.f32 %v3863_v62, %v544_v20 }
 0x5c8   :  { %v549_v23 = vmin.f32 %v3863_v62, %v545_v21 }
 0x5c9   :  { %v551_v25 = vsub.f32 %v534_v17, %v548_v22  ;;  %v539_v27 = vpop.f32.mrf.mxu2 }
 0x5ca   :  { %v552_v28 = vsub.f32 %v537_v19, %v549_v23  ;;  %v540_v29 = vadd.f32 %v539_v27, %v3848_v54 }
 0x5cb   :  { %v554_v30 = vsub.f32 %v551_v25, %v501_v24 }
 0x5cc   :  { %v555_v31 = vsub.f32 %v552_v28, %v502_v26  ;;  %v546_v32 = vmax.f32 %v3858_v59, %v540_v29 }
 0x5cd   :  { %v557_v36 = vmul.f32 %v554_v30, %v554_v30 }
 0x5ce   :  { %v550_v33 = vmin.f32 %v3863_v62, %v546_v32  ;;  %v558_v37 = vmul.f32 %v555_v31, %v555_v31 }
 0x5d0   :  { %v553_v35 = vsub.f32 %v540_v29, %v550_v33  ;;  %v560_v40 = vadd.f32 %v558_v37, %v557_v36 }
 0x5d2   :  { %v556_v38 = vsub.f32 %v553_v35, %v503_v34 }
 0x5d4   :  { %v559_v39 = vmul.f32 %v556_v38, %v556_v38 }
 0x5d6   :  { %v561_v41 = vadd.f32 %v560_v40, %v559_v39 }
 0x5d8   :  { %562 = vadd.xlane.f32.xlu0 %v561_v41 }
 0x64b   :  { %v563_v42 = vpop.xlane.xlu0 %562 }
 0x64c   :  { %v564_v43 = vrot.slane %v563_v42, 4 }
 0x64e   :  { %v565_v44 = vadd.f32 %v564_v43, %v563_v42 }
 0x650   :  { %v566_v45 = vrot.slane %v565_v44, 2 }
 0x652   :  { %v567_v49 = vadd.f32 %v566_v45, %v565_v44 }
 0x654   :  { %v568_v51 = vrot.slane %v567_v49, 1 }
 0x656   :  { %v569_v53 = vadd.f32 %v568_v51, %v567_v49 }
 0x658   :  { %3468 = vpush %v569_v53 }
 0x689   :  { %s3469_s21 = spop %3468 }
 0x68a   :  { %p571_p6 = scmp.lt.f32.partialorder %s3469_s21, 1e-10 }
 0x68c   :  { %3525 = sst [smem:[#allocation4]] (%p571_p6), %s3733_s22  ;;  %578 = sbr.rel (%p571_p6) target bundleno = 1688 (0x698), region = 77 }
 0x691   :  { %v579_v55 = vmul.f32 0.5310638, %v554_v30  ;;  %v580_v56 = vmul.f32 0.5310638, %v555_v31  ;;  %v581_v57 = vmul.f32 0.5310638, %v556_v38 }
 0x692   :  { %588 = vst [vmem:[#allocation2 + $0x10] sm:$0xff] %v551_v25 }
 0x693   :  { %v582_v58 = vadd.f32 %v579_v55, %v551_v25  ;;  %v583_v60 = vadd.f32 %v580_v56, %v552_v28  ;;  %v584_v61 = vadd.f32 %v581_v57, %v553_v35  ;;  %589 = vst [vmem:[#allocation2] sm:$0xff] %v552_v28 }
 0x694   :  { %590 = vst [vmem:[#allocation2 + $0x8] sm:$0xff] %v553_v35 }
 0x695   :  { %585 = vst [vmem:[#allocation3 + $0x8] sm:$0xff] %v582_v58 }
 0x696   :  { %586 = vst [vmem:[#allocation3] sm:$0xff] %v583_v60 }
 0x697   :  { %587 = vst [vmem:[#allocation3 + $0x10] sm:$0xff] %v584_v61 }
 0x698 PF:  { %s591_s23 = sld [smem:[#allocation4]] }
 0x69e   :  { %p3165_p7 = scmp.ne.s32.totalorder %s591_s23, 0 }
 0x69f   :  { %s3734_s25 = smov (!%p3165_p7), 1  }
 0x6a0   :  { %595 = sbr.rel (%p3165_p7) target bundleno = 2046 (0x7fe), region = 81 }
 0x6a5   :  { %v601_v63 = vld [vmem:[#allocation3 + $0x10] sm:$0xff]  ;;  %v600_v0 = vld [vmem:[#allocation3] sm:$0xff]  ;;  %v599_v1 = vld [vmem:[#allocation3 + $0x8] sm:$0xff] }
 0x6a6   :  { %624 = vmatpush.msra.mxu0 %v601_v63  ;;  %3299 = vmatpush.msra.mxu1 %v601_v63  ;;  %v596_v10 = vld [vmem:[#allocation2 + $0x10] sm:$0xff]  ;;  %v597_v14 = vld [vmem:[#allocation2] sm:$0xff]  ;;  %v598_v22 = vld [vmem:[#allocation2 + $0x8] sm:$0xff] }
 0x6a7   :  { %3300 = vmatpush.msra.mxu2 %v601_v63 }
 0x6a8   :  { %625 = vmatpush.msra.mxu0 %v600_v0  ;;  %3301 = vmatpush.msra.mxu1 %v600_v0 }
 0x6a9   :  { %3302 = vmatpush.msra.mxu2 %v600_v0 }
 0x6aa   :  { %626 = vmatpush.msra.mxu0 %v599_v1  ;;  %3303 = vmatpush.msra.mxu1 %v599_v1 }
 0x6ab   :  { %3304 = vmatpush.msra.mxu2 %v599_v1  ;;  %3166 = vmatmul.msk.f32.vlgmr.msra.gmra.mxu0 %vm78_vm0, %v3838_v46 }
 0x6ac   :  { %3167 = vmatmul.msk.f32.vlgmr.msra.gmra.mxu1 %vm78_vm0, %v3840_v47  ;;  %3168 = vmatmul.msk.f32.vlgmr.msra.gmra.mxu2 %vm78_vm0, %v3842_v48 }
 0x728   :  { %v628_v2 = vpop.f32.mrf.mxu0 }
 0x729   :  { %v629_v3 = vadd.f32 %v628_v2, %v3844_v50  ;;  %v631_v4 = vpop.f32.mrf.mxu1 }
 0x72a   :  { %v632_v5 = vadd.f32 %v631_v4, %v3846_v52 }
 0x72b   :  { %v639_v6 = vmax.f32 %v3858_v59, %v629_v3 }
 0x72c   :  { %v640_v7 = vmax.f32 %v3858_v59, %v632_v5 }
 0x72d   :  { %v643_v8 = vmin.f32 %v3863_v62, %v639_v6 }
 0x72e   :  { %v644_v9 = vmin.f32 %v3863_v62, %v640_v7 }
 0x72f   :  { %v646_v13 = vsub.f32 %v629_v3, %v643_v8  ;;  %v634_v15 = vpop.f32.mrf.mxu2 }
 0x730   :  { %v647_v16 = vsub.f32 %v632_v5, %v644_v9  ;;  %v635_v17 = vadd.f32 %v634_v15, %v3848_v54 }
 0x731   :  { %v649_v18 = vsub.f32 %v646_v13, %v596_v10 }
 0x732   :  { %v650_v19 = vsub.f32 %v647_v16, %v597_v14  ;;  %v641_v20 = vmax.f32 %v3858_v59, %v635_v17 }
 0x733   :  { %v652_v24 = vmul.f32 %v649_v18, %v649_v18 }
 0x734   :  { %v645_v21 = vmin.f32 %v3863_v62, %v641_v20  ;;  %v653_v25 = vmul.f32 %v650_v19, %v650_v19 }
 0x736   :  { %v648_v23 = vsub.f32 %v635_v17, %v645_v21  ;;  %v655_v28 = vadd.f32 %v653_v25, %v652_v24 }
 0x738   :  { %v651_v26 = vsub.f32 %v648_v23, %v598_v22 }
 0x73a   :  { %v654_v27 = vmul.f32 %v651_v26, %v651_v26 }
 0x73c   :  { %v656_v29 = vadd.f32 %v655_v28, %v654_v27 }
 0x73e   :  { %657 = vadd.xlane.f32.xlu0 %v656_v29 }
 0x7b1   :  { %v658_v30 = vpop.xlane.xlu0 %657 }
 0x7b2   :  { %v659_v31 = vrot.slane %v658_v30, 4 }
 0x7b4   :  { %v660_v32 = vadd.f32 %v659_v31, %v658_v30 }
 0x7b6   :  { %v661_v33 = vrot.slane %v660_v32, 2 }
 0x7b8   :  { %v662_v34 = vadd.f32 %v661_v33, %v660_v32 }
 0x7ba   :  { %v663_v35 = vrot.slane %v662_v34, 1 }
 0x7bc   :  { %v664_v36 = vadd.f32 %v663_v35, %v662_v34 }
 0x7be   :  { %3470 = vpush %v664_v36 }
 0x7ef   :  { %s3471_s24 = spop %3470 }
 0x7f0   :  { %p666_p8 = scmp.lt.f32.partialorder %s3471_s24, 1e-10 }
 0x7f2   :  { %3526 = sst [smem:[#allocation4]] (%p666_p8), %s3734_s25  ;;  %673 = sbr.rel (%p666_p8) target bundleno = 2046 (0x7fe), region = 89 }
 0x7f7   :  { %v674_v37 = vmul.f32 0.5987786, %v649_v18  ;;  %v675_v38 = vmul.f32 0.5987786, %v650_v19  ;;  %v676_v39 = vmul.f32 0.5987786, %v651_v26 }
 0x7f8   :  { %683 = vst [vmem:[#allocation2 + $0x10] sm:$0xff] %v646_v13 }
 0x7f9   :  { %v677_v40 = vadd.f32 %v674_v37, %v646_v13  ;;  %v678_v41 = vadd.f32 %v675_v38, %v647_v16  ;;  %v679_v42 = vadd.f32 %v676_v39, %v648_v23  ;;  %684 = vst [vmem:[#allocation2] sm:$0xff] %v647_v16 }
 0x7fa   :  { %685 = vst [vmem:[#allocation2 + $0x8] sm:$0xff] %v648_v23 }
 0x7fb   :  { %680 = vst [vmem:[#allocation3 + $0x8] sm:$0xff] %v677_v40 }
 0x7fc   :  { %681 = vst [vmem:[#allocation3] sm:$0xff] %v678_v41 }
 0x7fd   :  { %682 = vst [vmem:[#allocation3 + $0x10] sm:$0xff] %v679_v42 }
 0x7fe PF:  { %s686_s28 = sld [smem:[#allocation4]] }
 0x804   :  { %p3169_p9 = scmp.ne.s32.totalorder %s686_s28, 0 }
 0x805   :  { %s3735_s30 = smov (!%p3169_p9), 1  }
 0x806   :  { %690 = sbr.rel (%p3169_p9) target bundleno = 2404 (0x964), region = 93 }
 0x80b   :  { %v696_v43 = vld [vmem:[#allocation3 + $0x10] sm:$0xff]  ;;  %v695_v44 = vld [vmem:[#allocation3] sm:$0xff]  ;;  %v694_v45 = vld [vmem:[#allocation3 + $0x8] sm:$0xff] }
 0x80c   :  { %719 = vmatpush.msra.mxu0 %v696_v43  ;;  %3305 = vmatpush.msra.mxu1 %v696_v43  ;;  %v691_v61 = vld [vmem:[#allocation2 + $0x10] sm:$0xff]  ;;  %v692_v0 = vld [vmem:[#allocation2] sm:$0xff]  ;;  %v693_v8 = vld [vmem:[#allocation2 + $0x8] sm:$0xff] }
 0x80d   :  { %3306 = vmatpush.msra.mxu2 %v696_v43 }
 0x80e   :  { %720 = vmatpush.msra.mxu0 %v695_v44  ;;  %3307 = vmatpush.msra.mxu1 %v695_v44 }
 0x80f   :  { %3308 = vmatpush.msra.mxu2 %v695_v44 }
 0x810   :  { %721 = vmatpush.msra.mxu0 %v694_v45  ;;  %3309 = vmatpush.msra.mxu1 %v694_v45 }
 0x811   :  { %3310 = vmatpush.msra.mxu2 %v694_v45  ;;  %3170 = vmatmul.msk.f32.vlgmr.msra.gmra.mxu0 %vm78_vm0, %v3838_v46 }
 0x812   :  { %3171 = vmatmul.msk.f32.vlgmr.msra.gmra.mxu1 %vm78_vm0, %v3840_v47  ;;  %3172 = vmatmul.msk.f32.vlgmr.msra.gmra.mxu2 %vm78_vm0, %v3842_v48 }
 0x88e   :  { %v723_v49 = vpop.f32.mrf.mxu0 }
 0x88f   :  { %v724_v51 = vadd.f32 %v723_v49, %v3844_v50  ;;  %v726_v53 = vpop.f32.mrf.mxu1 }
 0x890   :  { %v727_v55 = vadd.f32 %v726_v53, %v3846_v52 }
 0x891   :  { %v734_v56 = vmax.f32 %v3858_v59, %v724_v51 }
 0x892   :  { %v735_v57 = vmax.f32 %v3858_v59, %v727_v55 }
 0x893   :  { %v738_v58 = vmin.f32 %v3863_v62, %v734_v56 }
 0x894   :  { %v739_v60 = vmin.f32 %v3863_v62, %v735_v57 }
 0x895   :  { %v741_v63 = vsub.f32 %v724_v51, %v738_v58  ;;  %v729_v1 = vpop.f32.mrf.mxu2 }
 0x896   :  { %v742_v2 = vsub.f32 %v727_v55, %v739_v60  ;;  %v730_v3 = vadd.f32 %v729_v1, %v3848_v54 }
 0x897   :  { %v744_v4 = vsub.f32 %v741_v63, %v691_v61 }
 0x898   :  { %v745_v5 = vsub.f32 %v742_v2, %v692_v0  ;;  %v736_v6 = vmax.f32 %v3858_v59, %v730_v3 }
 0x899   :  { %v747_v10 = vmul.f32 %v744_v4, %v744_v4 }
 0x89a   :  { %v740_v7 = vmin.f32 %v3863_v62, %v736_v6  ;;  %v748_v13 = vmul.f32 %v745_v5, %v745_v5 }
 0x89c   :  { %v743_v9 = vsub.f32 %v730_v3, %v740_v7  ;;  %v750_v16 = vadd.f32 %v748_v13, %v747_v10 }
 0x89e   :  { %v746_v14 = vsub.f32 %v743_v9, %v693_v8 }
 0x8a0   :  { %v749_v15 = vmul.f32 %v746_v14, %v746_v14 }
 0x8a2   :  { %v751_v17 = vadd.f32 %v750_v16, %v749_v15 }
 0x8a4   :  { %752 = vadd.xlane.f32.xlu0 %v751_v17 }
 0x917   :  { %v753_v18 = vpop.xlane.xlu0 %752 }
 0x918   :  { %v754_v19 = vrot.slane %v753_v18, 4 }
 0x91a   :  { %v755_v20 = vadd.f32 %v754_v19, %v753_v18 }
 0x91c   :  { %v756_v21 = vrot.slane %v755_v20, 2 }
 0x91e   :  { %v757_v22 = vadd.f32 %v756_v21, %v755_v20 }
 0x920   :  { %v758_v23 = vrot.slane %v757_v22, 1 }
 0x922   :  { %v759_v24 = vadd.f32 %v758_v23, %v757_v22 }
 0x924   :  { %3472 = vpush %v759_v24 }
 0x955   :  { %s3473_s29 = spop %3472 }
 0x956   :  { %p761_p10 = scmp.lt.f32.partialorder %s3473_s29, 1e-10 }
 0x958   :  { %3527 = sst [smem:[#allocation4]] (%p761_p10), %s3735_s30  ;;  %768 = sbr.rel (%p761_p10) target bundleno = 2404 (0x964), region = 101 }
 0x95d   :  { %v769_v25 = vmul.f32 0.64892334, %v744_v4  ;;  %v770_v26 = vmul.f32 0.64892334, %v745_v5  ;;  %v771_v27 = vmul.f32 0.64892334, %v746_v14 }
 0x95e   :  { %778 = vst [vmem:[#allocation2 + $0x10] sm:$0xff] %v741_v63 }
 0x95f   :  { %v772_v28 = vadd.f32 %v769_v25, %v741_v63  ;;  %v773_v29 = vadd.f32 %v770_v26, %v742_v2  ;;  %v774_v30 = vadd.f32 %v771_v27, %v743_v9  ;;  %779 = vst [vmem:[#allocation2] sm:$0xff] %v742_v2 }
 0x960   :  { %780 = vst [vmem:[#allocation2 + $0x8] sm:$0xff] %v743_v9 }
 0x961   :  { %775 = vst [vmem:[#allocation3 + $0x8] sm:$0xff] %v772_v28 }
 0x962   :  { %776 = vst [vmem:[#allocation3] sm:$0xff] %v773_v29 }
 0x963   :  { %777 = vst [vmem:[#allocation3 + $0x10] sm:$0xff] %v774_v30 }
 0x964 PF:  { %s781_s6 = sld [smem:[#allocation4]] }
 0x96a   :  { %p3173_p11 = scmp.ne.s32.totalorder %s781_s6, 0 }
 0x96b   :  { %s3736_s0 = smov (!%p3173_p11), 1  }
 0x96c   :  { %785 = sbr.rel (%p3173_p11) target bundleno = 2762 (0xaca), region = 105 }
 0x971   :  { %v791_v31 = vld [vmem:[#allocation3 + $0x10] sm:$0xff]  ;;  %v790_v32 = vld [vmem:[#allocation3] sm:$0xff]  ;;  %v789_v33 = vld [vmem:[#allocation3 + $0x8] sm:$0xff] }
 0x972   :  { %814 = vmatpush.msra.mxu0 %v791_v31  ;;  %3311 = vmatpush.msra.mxu1 %v791_v31  ;;  %v786_v42 = vld [vmem:[#allocation2 + $0x10] sm:$0xff]  ;;  %v787_v44 = vld [vmem:[#allocation2] sm:$0xff]  ;;  %v788_v58 = vld [vmem:[#allocation2 + $0x8] sm:$0xff] }
 0x973   :  { %3312 = vmatpush.msra.mxu2 %v791_v31 }
 0x974   :  { %815 = vmatpush.msra.mxu0 %v790_v32  ;;  %3313 = vmatpush.msra.mxu1 %v790_v32 }
 0x975   :  { %3314 = vmatpush.msra.mxu2 %v790_v32 }
 0x976   :  { %816 = vmatpush.msra.mxu0 %v789_v33  ;;  %3315 = vmatpush.msra.mxu1 %v789_v33 }
 0x977   :  { %3316 = vmatpush.msra.mxu2 %v789_v33  ;;  %3174 = vmatmul.msk.f32.vlgmr.msra.gmra.mxu0 %vm78_vm0, %v3838_v46 }
 0x978   :  { %3175 = vmatmul.msk.f32.vlgmr.msra.gmra.mxu1 %vm78_vm0, %v3840_v47  ;;  %3176 = vmatmul.msk.f32.vlgmr.msra.gmra.mxu2 %vm78_vm0, %v3842_v48 }
 0x9f4   :  { %v818_v34 = vpop.f32.mrf.mxu0 }
 0x9f5   :  { %v819_v35 = vadd.f32 %v818_v34, %v3844_v50  ;;  %v821_v36 = vpop.f32.mrf.mxu1 }
 0x9f6   :  { %v822_v37 = vadd.f32 %v821_v36, %v3846_v52 }
 0x9f7   :  { %v829_v38 = vmax.f32 %v3858_v59, %v819_v35 }
 0x9f8   :  { %v830_v39 = vmax.f32 %v3858_v59, %v822_v37 }
 0x9f9   :  { %v833_v40 = vmin.f32 %v3863_v62, %v829_v38 }
 0x9fa   :  { %v834_v41 = vmin.f32 %v3863_v62, %v830_v39 }
 0x9fb   :  { %v836_v43 = vsub.f32 %v819_v35, %v833_v40  ;;  %v824_v45 = vpop.f32.mrf.mxu2 }
 0x9fc   :  { %v837_v49 = vsub.f32 %v822_v37, %v834_v41  ;;  %v825_v51 = vadd.f32 %v824_v45, %v3848_v54 }
 0x9fd   :  { %v839_v53 = vsub.f32 %v836_v43, %v786_v42 }
 0x9fe   :  { %v840_v55 = vsub.f32 %v837_v49, %v787_v44  ;;  %v831_v56 = vmax.f32 %v3858_v59, %v825_v51 }
 0x9ff   :  { %v842_v61 = vmul.f32 %v839_v53, %v839_v53 }
 0xa00   :  { %v835_v57 = vmin.f32 %v3863_v62, %v831_v56  ;;  %v843_v63 = vmul.f32 %v840_v55, %v840_v55 }
 0xa02   :  { %v838_v60 = vsub.f32 %v825_v51, %v835_v57  ;;  %v845_v2 = vadd.f32 %v843_v63, %v842_v61 }
 0xa04   :  { %v841_v0 = vsub.f32 %v838_v60, %v788_v58 }
 0xa06   :  { %v844_v1 = vmul.f32 %v841_v0, %v841_v0 }
 0xa08   :  { %v846_v3 = vadd.f32 %v845_v2, %v844_v1 }
 0xa0a   :  { %847 = vadd.xlane.f32.xlu0 %v846_v3 }
 0xa7d   :  { %v848_v4 = vpop.xlane.xlu0 %847 }
 0xa7e   :  { %v849_v5 = vrot.slane %v848_v4, 4 }
 0xa80   :  { %v850_v6 = vadd.f32 %v849_v5, %v848_v4 }
 0xa82   :  { %v851_v7 = vrot.slane %v850_v6, 2 }
 0xa84   :  { %v852_v8 = vadd.f32 %v851_v7, %v850_v6 }
 0xa86   :  { %v853_v9 = vrot.slane %v852_v8, 1 }
 0xa88   :  { %v854_v10 = vadd.f32 %v853_v9, %v852_v8 }
 0xa8a   :  { %3474 = vpush %v854_v10 }
 0xabb   :  { %s3475_s1 = spop %3474 }
 0xabc   :  { %p856_p12 = scmp.lt.f32.partialorder %s3475_s1, 1e-10 }
 0xabe   :  { %3528 = sst [smem:[#allocation4]] (%p856_p12), %s3736_s0  ;;  %863 = sbr.rel (%p856_p12) target bundleno = 2762 (0xaca), region = 113 }
 0xac3   :  { %v864_v13 = vmul.f32 0.68764585, %v839_v53  ;;  %v865_v14 = vmul.f32 0.68764585, %v840_v55  ;;  %v866_v15 = vmul.f32 0.68764585, %v841_v0 }
 0xac4   :  { %873 = vst [vmem:[#allocation2 + $0x10] sm:$0xff] %v836_v43 }
 0xac5   :  { %v867_v16 = vadd.f32 %v864_v13, %v836_v43  ;;  %v868_v17 = vadd.f32 %v865_v14, %v837_v49  ;;  %v869_v18 = vadd.f32 %v866_v15, %v838_v60  ;;  %874 = vst [vmem:[#allocation2] sm:$0xff] %v837_v49 }
 0xac6   :  { %875 = vst [vmem:[#allocation2 + $0x8] sm:$0xff] %v838_v60 }
 0xac7   :  { %870 = vst [vmem:[#allocation3 + $0x8] sm:$0xff] %v867_v16 }
 0xac8   :  { %871 = vst [vmem:[#allocation3] sm:$0xff] %v868_v17 }
 0xac9   :  { %872 = vst [vmem:[#allocation3 + $0x10] sm:$0xff] %v869_v18 }
 0xaca PF:  { %s876_s7 = sld [smem:[#allocation4]] }
 0xad0   :  { %p3177_p13 = scmp.ne.s32.totalorder %s876_s7, 0 }
 0xad1   :  { %s3737_s3 = smov (!%p3177_p13), 1  }
 0xad2   :  { %880 = sbr.rel (%p3177_p13) target bundleno = 3120 (0xc30), region = 117 }
 0xad7   :  { %v886_v19 = vld [vmem:[#allocation3 + $0x10] sm:$0xff]  ;;  %v885_v20 = vld [vmem:[#allocation3] sm:$0xff]  ;;  %v884_v21 = vld [vmem:[#allocation3 + $0x8] sm:$0xff] }
 0xad8   :  { %909 = vmatpush.msra.mxu0 %v886_v19  ;;  %3317 = vmatpush.msra.mxu1 %v886_v19  ;;  %v881_v30 = vld [vmem:[#allocation2 + $0x10] sm:$0xff]  ;;  %v882_v32 = vld [vmem:[#allocation2] sm:$0xff]  ;;  %v883_v40 = vld [vmem:[#allocation2 + $0x8] sm:$0xff] }
 0xad9   :  { %3318 = vmatpush.msra.mxu2 %v886_v19 }
 0xada   :  { %910 = vmatpush.msra.mxu0 %v885_v20  ;;  %3319 = vmatpush.msra.mxu1 %v885_v20 }
 0xadb   :  { %3320 = vmatpush.msra.mxu2 %v885_v20 }
 0xadc   :  { %911 = vmatpush.msra.mxu0 %v884_v21  ;;  %3321 = vmatpush.msra.mxu1 %v884_v21 }
 0xadd   :  { %3322 = vmatpush.msra.mxu2 %v884_v21  ;;  %3178 = vmatmul.msk.f32.vlgmr.msra.gmra.mxu0 %vm78_vm0, %v3838_v46 }
 0xade   :  { %3179 = vmatmul.msk.f32.vlgmr.msra.gmra.mxu1 %vm78_vm0, %v3840_v47  ;;  %3180 = vmatmul.msk.f32.vlgmr.msra.gmra.mxu2 %vm78_vm0, %v3842_v48 }
 0xb5a   :  { %v913_v22 = vpop.f32.mrf.mxu0 }
 0xb5b   :  { %v914_v23 = vadd.f32 %v913_v22, %v3844_v50  ;;  %v916_v24 = vpop.f32.mrf.mxu1 }
 0xb5c   :  { %v917_v25 = vadd.f32 %v916_v24, %v3846_v52 }
 0xb5d   :  { %v924_v26 = vmax.f32 %v3858_v59, %v914_v23 }
 0xb5e   :  { %v925_v27 = vmax.f32 %v3858_v59, %v917_v25 }
 0xb5f   :  { %v928_v28 = vmin.f32 %v3863_v62, %v924_v26 }
 0xb60   :  { %v929_v29 = vmin.f32 %v3863_v62, %v925_v27 }
 0xb61   :  { %v931_v31 = vsub.f32 %v914_v23, %v928_v28  ;;  %v919_v33 = vpop.f32.mrf.mxu2 }
 0xb62   :  { %v932_v34 = vsub.f32 %v917_v25, %v929_v29  ;;  %v920_v35 = vadd.f32 %v919_v33, %v3848_v54 }
 0xb63   :  { %v934_v36 = vsub.f32 %v931_v31, %v881_v30 }
 0xb64   :  { %v935_v37 = vsub.f32 %v932_v34, %v882_v32  ;;  %v926_v38 = vmax.f32 %v3858_v59, %v920_v35 }
 0xb65   :  { %v937_v42 = vmul.f32 %v934_v36, %v934_v36 }
 0xb66   :  { %v930_v39 = vmin.f32 %v3863_v62, %v926_v38  ;;  %v938_v43 = vmul.f32 %v935_v37, %v935_v37 }
 0xb68   :  { %v933_v41 = vsub.f32 %v920_v35, %v930_v39  ;;  %v940_v49 = vadd.f32 %v938_v43, %v937_v42 }
 0xb6a   :  { %v936_v44 = vsub.f32 %v933_v41, %v883_v40 }
 0xb6c   :  { %v939_v45 = vmul.f32 %v936_v44, %v936_v44 }
 0xb6e   :  { %v941_v51 = vadd.f32 %v940_v49, %v939_v45 }
 0xb70   :  { %942 = vadd.xlane.f32.xlu0 %v941_v51 }
 0xbe3   :  { %v943_v53 = vpop.xlane.xlu0 %942 }
 0xbe4   :  { %v944_v55 = vrot.slane %v943_v53, 4 }
 0xbe6   :  { %v945_v56 = vadd.f32 %v944_v55, %v943_v53 }
 0xbe8   :  { %v946_v57 = vrot.slane %v945_v56, 2 }
 0xbea   :  { %v947_v58 = vadd.f32 %v946_v57, %v945_v56 }
 0xbec   :  { %v948_v60 = vrot.slane %v947_v58, 1 }
 0xbee   :  { %v949_v61 = vadd.f32 %v948_v60, %v947_v58 }
 0xbf0   :  { %3476 = vpush %v949_v61 }
 0xc21   :  { %s3477_s8 = spop %3476 }
 0xc22   :  { %p951_p0 = scmp.lt.f32.partialorder %s3477_s8, 1e-10 }
 0xc24   :  { %3529 = sst [smem:[#allocation4]] (%p951_p0), %s3737_s3  ;;  %958 = sbr.rel (%p951_p0) target bundleno = 3120 (0xc30), region = 125 }
 0xc29   :  { %v959_v63 = vmul.f32 0.71849984, %v934_v36  ;;  %v960_v0 = vmul.f32 0.71849984, %v935_v37  ;;  %v961_v1 = vmul.f32 0.71849984, %v936_v44 }
 0xc2a   :  { %968 = vst [vmem:[#allocation2 + $0x10] sm:$0xff] %v931_v31 }
 0xc2b   :  { %v962_v2 = vadd.f32 %v959_v63, %v931_v31  ;;  %v963_v3 = vadd.f32 %v960_v0, %v932_v34  ;;  %v964_v4 = vadd.f32 %v961_v1, %v933_v41  ;;  %969 = vst [vmem:[#allocation2] sm:$0xff] %v932_v34 }
 0xc2c   :  { %970 = vst [vmem:[#allocation2 + $0x8] sm:$0xff] %v933_v41 }
 0xc2d   :  { %965 = vst [vmem:[#allocation3 + $0x8] sm:$0xff] %v962_v2 }
 0xc2e   :  { %966 = vst [vmem:[#allocation3] sm:$0xff] %v963_v3 }
 0xc2f   :  { %967 = vst [vmem:[#allocation3 + $0x10] sm:$0xff] %v964_v4 }
 0xc30 PF:  { %s971_s9 = sld [smem:[#allocation4]] }
 0xc36   :  { %p3181_p1 = scmp.ne.s32.totalorder %s971_s9, 0 }
 0xc37   :  { %s3738_s11 = smov (!%p3181_p1), 1  }
 0xc38   :  { %975 = sbr.rel (%p3181_p1) target bundleno = 3478 (0xd96), region = 129 }
 0xc3d   :  { %v981_v5 = vld [vmem:[#allocation3 + $0x10] sm:$0xff]  ;;  %v980_v6 = vld [vmem:[#allocation3] sm:$0xff]  ;;  %v979_v7 = vld [vmem:[#allocation3 + $0x8] sm:$0xff] }
 0xc3e   :  { %1004 = vmatpush.msra.mxu0 %v981_v5  ;;  %3323 = vmatpush.msra.mxu1 %v981_v5  ;;  %v976_v18 = vld [vmem:[#allocation2 + $0x10] sm:$0xff]  ;;  %v977_v20 = vld [vmem:[#allocation2] sm:$0xff]  ;;  %v978_v28 = vld [vmem:[#allocation2 + $0x8] sm:$0xff] }
 0xc3f   :  { %3324 = vmatpush.msra.mxu2 %v981_v5 }
 0xc40   :  { %1005 = vmatpush.msra.mxu0 %v980_v6  ;;  %3325 = vmatpush.msra.mxu1 %v980_v6 }
 0xc41   :  { %3326 = vmatpush.msra.mxu2 %v980_v6 }
 0xc42   :  { %1006 = vmatpush.msra.mxu0 %v979_v7  ;;  %3327 = vmatpush.msra.mxu1 %v979_v7 }
 0xc43   :  { %3328 = vmatpush.msra.mxu2 %v979_v7  ;;  %3182 = vmatmul.msk.f32.vlgmr.msra.gmra.mxu0 %vm78_vm0, %v3838_v46 }
 0xc44   :  { %3183 = vmatmul.msk.f32.vlgmr.msra.gmra.mxu1 %vm78_vm0, %v3840_v47  ;;  %3184 = vmatmul.msk.f32.vlgmr.msra.gmra.mxu2 %vm78_vm0, %v3842_v48 }
 0xcc0   :  { %v1008_v8 = vpop.f32.mrf.mxu0 }
 0xcc1   :  { %v1009_v9 = vadd.f32 %v1008_v8, %v3844_v50  ;;  %v1011_v10 = vpop.f32.mrf.mxu1 }
 0xcc2   :  { %v1012_v13 = vadd.f32 %v1011_v10, %v3846_v52 }
 0xcc3   :  { %v1019_v14 = vmax.f32 %v3858_v59, %v1009_v9 }
 0xcc4   :  { %v1020_v15 = vmax.f32 %v3858_v59, %v1012_v13 }
 0xcc5   :  { %v1023_v16 = vmin.f32 %v3863_v62, %v1019_v14 }
 0xcc6   :  { %v1024_v17 = vmin.f32 %v3863_v62, %v1020_v15 }
 0xcc7   :  { %v1026_v19 = vsub.f32 %v1009_v9, %v1023_v16  ;;  %v1014_v21 = vpop.f32.mrf.mxu2 }
 0xcc8   :  { %v1027_v22 = vsub.f32 %v1012_v13, %v1024_v17  ;;  %v1015_v23 = vadd.f32 %v1014_v21, %v3848_v54 }
 0xcc9   :  { %v1029_v24 = vsub.f32 %v1026_v19, %v976_v18 }
 0xcca   :  { %v1030_v25 = vsub.f32 %v1027_v22, %v977_v20  ;;  %v1021_v26 = vmax.f32 %v3858_v59, %v1015_v23 }
 0xccb   :  { %v1032_v30 = vmul.f32 %v1029_v24, %v1029_v24 }
 0xccc   :  { %v1025_v27 = vmin.f32 %v3863_v62, %v1021_v26  ;;  %v1033_v31 = vmul.f32 %v1030_v25, %v1030_v25 }
 0xcce   :  { %v1028_v29 = vsub.f32 %v1015_v23, %v1025_v27  ;;  %v1035_v34 = vadd.f32 %v1033_v31, %v1032_v30 }
 0xcd0   :  { %v1031_v32 = vsub.f32 %v1028_v29, %v978_v28 }
 0xcd2   :  { %v1034_v33 = vmul.f32 %v1031_v32, %v1031_v32 }
 0xcd4   :  { %v1036_v35 = vadd.f32 %v1035_v34, %v1034_v33 }
 0xcd6   :  { %1037 = vadd.xlane.f32.xlu0 %v1036_v35 }
 0xd49   :  { %v1038_v36 = vpop.xlane.xlu0 %1037 }
 0xd4a   :  { %v1039_v37 = vrot.slane %v1038_v36, 4 }
 0xd4c   :  { %v1040_v38 = vadd.f32 %v1039_v37, %v1038_v36 }
 0xd4e   :  { %v1041_v39 = vrot.slane %v1040_v38, 2 }
 0xd50   :  { %v1042_v40 = vadd.f32 %v1041_v39, %v1040_v38 }
 0xd52   :  { %v1043_v41 = vrot.slane %v1042_v40, 1 }
 0xd54   :  { %v1044_v42 = vadd.f32 %v1043_v41, %v1042_v40 }
 0xd56   :  { %3478 = vpush %v1044_v42 }
 0xd87   :  { %s3479_s10 = spop %3478 }
 0xd88   :  { %p1046_p2 = scmp.lt.f32.partialorder %s3479_s10, 1e-10 }
 0xd8a   :  { %3530 = sst [smem:[#allocation4]] (%p1046_p2), %s3738_s11  ;;  %1053 = sbr.rel (%p1046_p2) target bundleno = 3478 (0xd96), region = 137 }
 0xd8f   :  { %v1054_v43 = vmul.f32 0.743691, %v1029_v24  ;;  %v1055_v44 = vmul.f32 0.743691, %v1030_v25  ;;  %v1056_v45 = vmul.f32 0.743691, %v1031_v32 }
 0xd90   :  { %1063 = vst [vmem:[#allocation2 + $0x10] sm:$0xff] %v1026_v19 }
 0xd91   :  { %v1057_v49 = vadd.f32 %v1054_v43, %v1026_v19  ;;  %v1058_v51 = vadd.f32 %v1055_v44, %v1027_v22  ;;  %v1059_v53 = vadd.f32 %v1056_v45, %v1028_v29  ;;  %1064 = vst [vmem:[#allocation2] sm:$0xff] %v1027_v22 }
 0xd92   :  { %1065 = vst [vmem:[#allocation2 + $0x8] sm:$0xff] %v1028_v29 }
 0xd93   :  { %1060 = vst [vmem:[#allocation3 + $0x8] sm:$0xff] %v1057_v49 }
 0xd94   :  { %1061 = vst [vmem:[#allocation3] sm:$0xff] %v1058_v51 }
 0xd95   :  { %1062 = vst [vmem:[#allocation3 + $0x10] sm:$0xff] %v1059_v53 }
 0xd96 PF:  { %s1066_s12 = sld [smem:[#allocation4]] }
 0xd9c   :  { %p3185_p3 = scmp.ne.s32.totalorder %s1066_s12, 0 }
 0xd9d   :  { %s3739_s14 = smov (!%p3185_p3), 1  }
 0xd9e   :  { %1070 = sbr.rel (%p3185_p3) target bundleno = 3836 (0xefc), region = 141 }
 0xda3   :  { %v1076_v55 = vld [vmem:[#allocation3 + $0x10] sm:$0xff]  ;;  %v1075_v56 = vld [vmem:[#allocation3] sm:$0xff]  ;;  %v1074_v57 = vld [vmem:[#allocation3 + $0x8] sm:$0xff] }
 0xda4   :  { %1099 = vmatpush.msra.mxu0 %v1076_v55  ;;  %3329 = vmatpush.msra.mxu1 %v1076_v55  ;;  %v1071_v4 = vld [vmem:[#allocation2 + $0x10] sm:$0xff]  ;;  %v1072_v6 = vld [vmem:[#allocation2] sm:$0xff]  ;;  %v1073_v16 = vld [vmem:[#allocation2 + $0x8] sm:$0xff] }
 0xda5   :  { %3330 = vmatpush.msra.mxu2 %v1076_v55 }
 0xda6   :  { %1100 = vmatpush.msra.mxu0 %v1075_v56  ;;  %3331 = vmatpush.msra.mxu1 %v1075_v56 }
 0xda7   :  { %3332 = vmatpush.msra.mxu2 %v1075_v56 }
 0xda8   :  { %1101 = vmatpush.msra.mxu0 %v1074_v57  ;;  %3333 = vmatpush.msra.mxu1 %v1074_v57 }
 0xda9   :  { %3334 = vmatpush.msra.mxu2 %v1074_v57  ;;  %3186 = vmatmul.msk.f32.vlgmr.msra.gmra.mxu0 %vm78_vm0, %v3838_v46 }
 0xdaa   :  { %3187 = vmatmul.msk.f32.vlgmr.msra.gmra.mxu1 %vm78_vm0, %v3840_v47  ;;  %3188 = vmatmul.msk.f32.vlgmr.msra.gmra.mxu2 %vm78_vm0, %v3842_v48 }
 0xe26   :  { %v1103_v58 = vpop.f32.mrf.mxu0 }
 0xe27   :  { %v1104_v60 = vadd.f32 %v1103_v58, %v3844_v50  ;;  %v1106_v61 = vpop.f32.mrf.mxu1 }
 0xe28   :  { %v1107_v63 = vadd.f32 %v1106_v61, %v3846_v52 }
 0xe29   :  { %v1114_v0 = vmax.f32 %v3858_v59, %v1104_v60 }
 0xe2a   :  { %v1115_v1 = vmax.f32 %v3858_v59, %v1107_v63 }
 0xe2b   :  { %v1118_v2 = vmin.f32 %v3863_v62, %v1114_v0 }
 0xe2c   :  { %v1119_v3 = vmin.f32 %v3863_v62, %v1115_v1 }
 0xe2d   :  { %v1121_v5 = vsub.f32 %v1104_v60, %v1118_v2  ;;  %v1109_v7 = vpop.f32.mrf.mxu2 }
 0xe2e   :  { %v1122_v8 = vsub.f32 %v1107_v63, %v1119_v3  ;;  %v1110_v9 = vadd.f32 %v1109_v7, %v3848_v54 }
 0xe2f   :  { %v1124_v10 = vsub.f32 %v1121_v5, %v1071_v4 }
 0xe30   :  { %v1125_v13 = vsub.f32 %v1122_v8, %v1072_v6  ;;  %v1116_v14 = vmax.f32 %v3858_v59, %v1110_v9 }
 0xe31   :  { %v1127_v18 = vmul.f32 %v1124_v10, %v1124_v10 }
 0xe32   :  { %v1120_v15 = vmin.f32 %v3863_v62, %v1116_v14  ;;  %v1128_v19 = vmul.f32 %v1125_v13, %v1125_v13 }
 0xe34   :  { %v1123_v17 = vsub.f32 %v1110_v9, %v1120_v15  ;;  %v1130_v22 = vadd.f32 %v1128_v19, %v1127_v18 }
 0xe36   :  { %v1126_v20 = vsub.f32 %v1123_v17, %v1073_v16 }
 0xe38   :  { %v1129_v21 = vmul.f32 %v1126_v20, %v1126_v20 }
 0xe3a   :  { %v1131_v23 = vadd.f32 %v1130_v22, %v1129_v21 }
 0xe3c   :  { %1132 = vadd.xlane.f32.xlu0 %v1131_v23 }
 0xeaf   :  { %v1133_v24 = vpop.xlane.xlu0 %1132 }
 0xeb0   :  { %v1134_v25 = vrot.slane %v1133_v24, 4 }
 0xeb2   :  { %v1135_v26 = vadd.f32 %v1134_v25, %v1133_v24 }
 0xeb4   :  { %v1136_v27 = vrot.slane %v1135_v26, 2 }
 0xeb6   :  { %v1137_v28 = vadd.f32 %v1136_v27, %v1135_v26 }
 0xeb8   :  { %v1138_v29 = vrot.slane %v1137_v28, 1 }
 0xeba   :  { %v1139_v30 = vadd.f32 %v1138_v29, %v1137_v28 }
 0xebc   :  { %3480 = vpush %v1139_v30 }
 0xeed   :  { %s3481_s13 = spop %3480 }
 0xeee   :  { %p1141_p4 = scmp.lt.f32.partialorder %s3481_s13, 1e-10 }
 0xef0   :  { %3531 = sst [smem:[#allocation4]] (%p1141_p4), %s3739_s14  ;;  %1148 = sbr.rel (%p1141_p4) target bundleno = 3836 (0xefc), region = 149 }
 0xef5   :  { %v1149_v31 = vmul.f32 0.7646647, %v1124_v10  ;;  %v1150_v32 = vmul.f32 0.7646647, %v1125_v13  ;;  %v1151_v33 = vmul.f32 0.7646647, %v1126_v20 }
 0xef6   :  { %1158 = vst [vmem:[#allocation2 + $0x10] sm:$0xff] %v1121_v5 }
 0xef7   :  { %v1152_v34 = vadd.f32 %v1149_v31, %v1121_v5  ;;  %v1153_v35 = vadd.f32 %v1150_v32, %v1122_v8  ;;  %v1154_v36 = vadd.f32 %v1151_v33, %v1123_v17  ;;  %1159 = vst [vmem:[#allocation2] sm:$0xff] %v1122_v8 }
 0xef8   :  { %1160 = vst [vmem:[#allocation2 + $0x8] sm:$0xff] %v1123_v17 }
 0xef9   :  { %1155 = vst [vmem:[#allocation3 + $0x8] sm:$0xff] %v1152_v34 }
 0xefa   :  { %1156 = vst [vmem:[#allocation3] sm:$0xff] %v1153_v35 }
 0xefb   :  { %1157 = vst [vmem:[#allocation3 + $0x10] sm:$0xff] %v1154_v36 }
 0xefc PF:  { %s1161_s15 = sld [smem:[#allocation4]] }
 0xf02   :  { %p3189_p5 = scmp.ne.s32.totalorder %s1161_s15, 0 }
 0xf03   :  { %s3740_s17 = smov (!%p3189_p5), 1  }
 0xf04   :  { %1165 = sbr.rel (%p3189_p5) target bundleno = 4194 (0x1062), region = 153 }
 0xf09   :  { %v1171_v37 = vld [vmem:[#allocation3 + $0x10] sm:$0xff]  ;;  %v1170_v38 = vld [vmem:[#allocation3] sm:$0xff]  ;;  %v1169_v39 = vld [vmem:[#allocation3 + $0x8] sm:$0xff] }
 0xf0a   :  { %1194 = vmatpush.msra.mxu0 %v1171_v37  ;;  %3335 = vmatpush.msra.mxu1 %v1171_v37  ;;  %v1166_v53 = vld [vmem:[#allocation2 + $0x10] sm:$0xff]  ;;  %v1167_v56 = vld [vmem:[#allocation2] sm:$0xff]  ;;  %v1168_v2 = vld [vmem:[#allocation2 + $0x8] sm:$0xff] }
 0xf0b   :  { %3336 = vmatpush.msra.mxu2 %v1171_v37 }
 0xf0c   :  { %1195 = vmatpush.msra.mxu0 %v1170_v38  ;;  %3337 = vmatpush.msra.mxu1 %v1170_v38 }
 0xf0d   :  { %3338 = vmatpush.msra.mxu2 %v1170_v38 }
 0xf0e   :  { %1196 = vmatpush.msra.mxu0 %v1169_v39  ;;  %3339 = vmatpush.msra.mxu1 %v1169_v39 }
 0xf0f   :  { %3340 = vmatpush.msra.mxu2 %v1169_v39  ;;  %3190 = vmatmul.msk.f32.vlgmr.msra.gmra.mxu0 %vm78_vm0, %v3838_v46 }
 0xf10   :  { %3191 = vmatmul.msk.f32.vlgmr.msra.gmra.mxu1 %vm78_vm0, %v3840_v47  ;;  %3192 = vmatmul.msk.f32.vlgmr.msra.gmra.mxu2 %vm78_vm0, %v3842_v48 }
 0xf8c   :  { %v1198_v40 = vpop.f32.mrf.mxu0 }
 0xf8d   :  { %v1199_v41 = vadd.f32 %v1198_v40, %v3844_v50  ;;  %v1201_v42 = vpop.f32.mrf.mxu1 }
 0xf8e   :  { %v1202_v43 = vadd.f32 %v1201_v42, %v3846_v52 }
 0xf8f   :  { %v1209_v44 = vmax.f32 %v3858_v59, %v1199_v41 }
 0xf90   :  { %v1210_v45 = vmax.f32 %v3858_v59, %v1202_v43 }
 0xf91   :  { %v1213_v49 = vmin.f32 %v3863_v62, %v1209_v44 }
 0xf92   :  { %v1214_v51 = vmin.f32 %v3863_v62, %v1210_v45 }
 0xf93   :  { %v1216_v55 = vsub.f32 %v1199_v41, %v1213_v49  ;;  %v1204_v57 = vpop.f32.mrf.mxu2 }
 0xf94   :  { %v1217_v58 = vsub.f32 %v1202_v43, %v1214_v51  ;;  %v1205_v60 = vadd.f32 %v1204_v57, %v3848_v54 }
 0xf95   :  { %v1219_v61 = vsub.f32 %v1216_v55, %v1166_v53 }
 0xf96   :  { %v1220_v63 = vsub.f32 %v1217_v58, %v1167_v56  ;;  %v1211_v0 = vmax.f32 %v3858_v59, %v1205_v60 }
 0xf97   :  { %v1222_v4 = vmul.f32 %v1219_v61, %v1219_v61 }
 0xf98   :  { %v1215_v1 = vmin.f32 %v3863_v62, %v1211_v0  ;;  %v1223_v5 = vmul.f32 %v1220_v63, %v1220_v63 }
 0xf9a   :  { %v1218_v3 = vsub.f32 %v1205_v60, %v1215_v1  ;;  %v1225_v8 = vadd.f32 %v1223_v5, %v1222_v4 }
 0xf9c   :  { %v1221_v6 = vsub.f32 %v1218_v3, %v1168_v2 }
 0xf9e   :  { %v1224_v7 = vmul.f32 %v1221_v6, %v1221_v6 }
 0xfa0   :  { %v1226_v9 = vadd.f32 %v1225_v8, %v1224_v7 }
 0xfa2   :  { %1227 = vadd.xlane.f32.xlu0 %v1226_v9 }
0x1015   :  { %v1228_v10 = vpop.xlane.xlu0 %1227 }
0x1016   :  { %v1229_v13 = vrot.slane %v1228_v10, 4 }
0x1018   :  { %v1230_v14 = vadd.f32 %v1229_v13, %v1228_v10 }
0x101a   :  { %v1231_v15 = vrot.slane %v1230_v14, 2 }
0x101c   :  { %v1232_v16 = vadd.f32 %v1231_v15, %v1230_v14 }
0x101e   :  { %v1233_v17 = vrot.slane %v1232_v16, 1 }
0x1020   :  { %v1234_v18 = vadd.f32 %v1233_v17, %v1232_v16 }
0x1022   :  { %3482 = vpush %v1234_v18 }
0x1053   :  { %s3483_s16 = spop %3482 }
0x1054   :  { %p1236_p6 = scmp.lt.f32.partialorder %s3483_s16, 1e-10 }
0x1056   :  { %3532 = sst [smem:[#allocation4]] (%p1236_p6), %s3740_s17  ;;  %1243 = sbr.rel (%p1236_p6) target bundleno = 4194 (0x1062), region = 161 }
0x105b   :  { %v1244_v19 = vmul.f32 0.78240925, %v1219_v61  ;;  %v1245_v20 = vmul.f32 0.78240925, %v1220_v63  ;;  %v1246_v21 = vmul.f32 0.78240925, %v1221_v6 }
0x105c   :  { %1253 = vst [vmem:[#allocation2 + $0x10] sm:$0xff] %v1216_v55 }
0x105d   :  { %v1247_v22 = vadd.f32 %v1244_v19, %v1216_v55  ;;  %v1248_v23 = vadd.f32 %v1245_v20, %v1217_v58  ;;  %v1249_v24 = vadd.f32 %v1246_v21, %v1218_v3  ;;  %1254 = vst [vmem:[#allocation2] sm:$0xff] %v1217_v58 }
0x105e   :  { %1255 = vst [vmem:[#allocation2 + $0x8] sm:$0xff] %v1218_v3 }
0x105f   :  { %1250 = vst [vmem:[#allocation3 + $0x8] sm:$0xff] %v1247_v22 }
0x1060   :  { %1251 = vst [vmem:[#allocation3] sm:$0xff] %v1248_v23 }
0x1061   :  { %1252 = vst [vmem:[#allocation3 + $0x10] sm:$0xff] %v1249_v24 }
0x1062 PF:  { %s1256_s18 = sld [smem:[#allocation4]] }
0x1068   :  { %p3193_p7 = scmp.ne.s32.totalorder %s1256_s18, 0 }
0x1069   :  { %s3741_s20 = smov (!%p3193_p7), 1  }
0x106a   :  { %1260 = sbr.rel (%p3193_p7) target bundleno = 4552 (0x11c8), region = 165 }
0x106f   :  { %v1266_v25 = vld [vmem:[#allocation3 + $0x10] sm:$0xff]  ;;  %v1265_v26 = vld [vmem:[#allocation3] sm:$0xff]  ;;  %v1264_v27 = vld [vmem:[#allocation3 + $0x8] sm:$0xff] }
0x1070   :  { %1289 = vmatpush.msra.mxu0 %v1266_v25  ;;  %3341 = vmatpush.msra.mxu1 %v1266_v25  ;;  %v1261_v36 = vld [vmem:[#allocation2 + $0x10] sm:$0xff]  ;;  %v1262_v38 = vld [vmem:[#allocation2] sm:$0xff]  ;;  %v1263_v49 = vld [vmem:[#allocation2 + $0x8] sm:$0xff] }
0x1071   :  { %3342 = vmatpush.msra.mxu2 %v1266_v25 }
0x1072   :  { %1290 = vmatpush.msra.mxu0 %v1265_v26  ;;  %3343 = vmatpush.msra.mxu1 %v1265_v26 }
0x1073   :  { %3344 = vmatpush.msra.mxu2 %v1265_v26 }
0x1074   :  { %1291 = vmatpush.msra.mxu0 %v1264_v27  ;;  %3345 = vmatpush.msra.mxu1 %v1264_v27 }
0x1075   :  { %3346 = vmatpush.msra.mxu2 %v1264_v27  ;;  %3194 = vmatmul.msk.f32.vlgmr.msra.gmra.mxu0 %vm78_vm0, %v3838_v46 }
0x1076   :  { %3195 = vmatmul.msk.f32.vlgmr.msra.gmra.mxu1 %vm78_vm0, %v3840_v47  ;;  %3196 = vmatmul.msk.f32.vlgmr.msra.gmra.mxu2 %vm78_vm0, %v3842_v48 }
0x10f2   :  { %v1293_v28 = vpop.f32.mrf.mxu0 }
0x10f3   :  { %v1294_v29 = vadd.f32 %v1293_v28, %v3844_v50  ;;  %v1296_v30 = vpop.f32.mrf.mxu1 }
0x10f4   :  { %v1297_v31 = vadd.f32 %v1296_v30, %v3846_v52 }
0x10f5   :  { %v1304_v32 = vmax.f32 %v3858_v59, %v1294_v29 }
0x10f6   :  { %v1305_v33 = vmax.f32 %v3858_v59, %v1297_v31 }
0x10f7   :  { %v1308_v34 = vmin.f32 %v3863_v62, %v1304_v32 }
0x10f8   :  { %v1309_v35 = vmin.f32 %v3863_v62, %v1305_v33 }
0x10f9   :  { %v1311_v37 = vsub.f32 %v1294_v29, %v1308_v34  ;;  %v1299_v39 = vpop.f32.mrf.mxu2 }
0x10fa   :  { %v1312_v40 = vsub.f32 %v1297_v31, %v1309_v35  ;;  %v1300_v41 = vadd.f32 %v1299_v39, %v3848_v54 }
0x10fb   :  { %v1314_v42 = vsub.f32 %v1311_v37, %v1261_v36 }
0x10fc   :  { %v1315_v43 = vsub.f32 %v1312_v40, %v1262_v38  ;;  %v1306_v44 = vmax.f32 %v3858_v59, %v1300_v41 }
0x10fd   :  { %v1317_v53 = vmul.f32 %v1314_v42, %v1314_v42 }
0x10fe   :  { %v1310_v45 = vmin.f32 %v3863_v62, %v1306_v44  ;;  %v1318_v55 = vmul.f32 %v1315_v43, %v1315_v43 }
0x1100   :  { %v1313_v51 = vsub.f32 %v1300_v41, %v1310_v45  ;;  %v1320_v58 = vadd.f32 %v1318_v55, %v1317_v53 }
0x1102   :  { %v1316_v56 = vsub.f32 %v1313_v51, %v1263_v49 }
0x1104   :  { %v1319_v57 = vmul.f32 %v1316_v56, %v1316_v56 }
0x1106   :  { %v1321_v60 = vadd.f32 %v1320_v58, %v1319_v57 }
0x1108   :  { %1322 = vadd.xlane.f32.xlu0 %v1321_v60 }
0x117b   :  { %v1323_v61 = vpop.xlane.xlu0 %1322 }
0x117c   :  { %v1324_v63 = vrot.slane %v1323_v61, 4 }
0x117e   :  { %v1325_v0 = vadd.f32 %v1324_v63, %v1323_v61 }
0x1180   :  { %v1326_v1 = vrot.slane %v1325_v0, 2 }
0x1182   :  { %v1327_v2 = vadd.f32 %v1326_v1, %v1325_v0 }
0x1184   :  { %v1328_v3 = vrot.slane %v1327_v2, 1 }
0x1186   :  { %v1329_v4 = vadd.f32 %v1328_v3, %v1327_v2 }
0x1188   :  { %3484 = vpush %v1329_v4 }
0x11b9   :  { %s3485_s19 = spop %3484 }
0x11ba   :  { %p1331_p8 = scmp.lt.f32.partialorder %s3485_s19, 1e-10 }
0x11bc   :  { %3533 = sst [smem:[#allocation4]] (%p1331_p8), %s3741_s20  ;;  %1338 = sbr.rel (%p1331_p8) target bundleno = 4552 (0x11c8), region = 173 }
0x11c1   :  { %v1339_v5 = vmul.f32 0.7976244, %v1314_v42  ;;  %v1340_v6 = vmul.f32 0.7976244, %v1315_v43  ;;  %v1341_v7 = vmul.f32 0.7976244, %v1316_v56 }
0x11c2   :  { %1348 = vst [vmem:[#allocation2 + $0x10] sm:$0xff] %v1311_v37 }
0x11c3   :  { %v1342_v8 = vadd.f32 %v1339_v5, %v1311_v37  ;;  %v1343_v9 = vadd.f32 %v1340_v6, %v1312_v40  ;;  %v1344_v10 = vadd.f32 %v1341_v7, %v1313_v51  ;;  %1349 = vst [vmem:[#allocation2] sm:$0xff] %v1312_v40 }
0x11c4   :  { %1350 = vst [vmem:[#allocation2 + $0x8] sm:$0xff] %v1313_v51 }
0x11c5   :  { %1345 = vst [vmem:[#allocation3 + $0x8] sm:$0xff] %v1342_v8 }
0x11c6   :  { %1346 = vst [vmem:[#allocation3] sm:$0xff] %v1343_v9 }
0x11c7   :  { %1347 = vst [vmem:[#allocation3 + $0x10] sm:$0xff] %v1344_v10 }
0x11c8 PF:  { %s1351_s21 = sld [smem:[#allocation4]] }
0x11ce   :  { %p3197_p9 = scmp.ne.s32.totalorder %s1351_s21, 0 }
0x11cf   :  { %s3742_s23 = smov (!%p3197_p9), 1  }
0x11d0   :  { %1355 = sbr.rel (%p3197_p9) target bundleno = 4910 (0x132e), region = 177 }
0x11d5   :  { %v1361_v13 = vld [vmem:[#allocation3 + $0x10] sm:$0xff]  ;;  %v1360_v14 = vld [vmem:[#allocation3] sm:$0xff]  ;;  %v1359_v15 = vld [vmem:[#allocation3 + $0x8] sm:$0xff] }
0x11d6   :  { %1384 = vmatpush.msra.mxu0 %v1361_v13  ;;  %3347 = vmatpush.msra.mxu1 %v1361_v13  ;;  %v1356_v24 = vld [vmem:[#allocation2 + $0x10] sm:$0xff]  ;;  %v1357_v26 = vld [vmem:[#allocation2] sm:$0xff]  ;;  %v1358_v34 = vld [vmem:[#allocation2 + $0x8] sm:$0xff] }
0x11d7   :  { %3348 = vmatpush.msra.mxu2 %v1361_v13 }
0x11d8   :  { %1385 = vmatpush.msra.mxu0 %v1360_v14  ;;  %3349 = vmatpush.msra.mxu1 %v1360_v14 }
0x11d9   :  { %3350 = vmatpush.msra.mxu2 %v1360_v14 }
0x11da   :  { %1386 = vmatpush.msra.mxu0 %v1359_v15  ;;  %3351 = vmatpush.msra.mxu1 %v1359_v15 }
0x11db   :  { %3352 = vmatpush.msra.mxu2 %v1359_v15  ;;  %3198 = vmatmul.msk.f32.vlgmr.msra.gmra.mxu0 %vm78_vm0, %v3838_v46 }
0x11dc   :  { %3199 = vmatmul.msk.f32.vlgmr.msra.gmra.mxu1 %vm78_vm0, %v3840_v47  ;;  %3200 = vmatmul.msk.f32.vlgmr.msra.gmra.mxu2 %vm78_vm0, %v3842_v48 }
0x1258   :  { %v1388_v16 = vpop.f32.mrf.mxu0 }
0x1259   :  { %v1389_v17 = vadd.f32 %v1388_v16, %v3844_v50  ;;  %v1391_v18 = vpop.f32.mrf.mxu1 }
0x125a   :  { %v1392_v19 = vadd.f32 %v1391_v18, %v3846_v52 }
0x125b   :  { %v1399_v20 = vmax.f32 %v3858_v59, %v1389_v17 }
0x125c   :  { %v1400_v21 = vmax.f32 %v3858_v59, %v1392_v19 }
0x125d   :  { %v1403_v22 = vmin.f32 %v3863_v62, %v1399_v20 }
0x125e   :  { %v1404_v23 = vmin.f32 %v3863_v62, %v1400_v21 }
0x125f   :  { %v1406_v25 = vsub.f32 %v1389_v17, %v1403_v22  ;;  %v1394_v27 = vpop.f32.mrf.mxu2 }
0x1260   :  { %v1407_v28 = vsub.f32 %v1392_v19, %v1404_v23  ;;  %v1395_v29 = vadd.f32 %v1394_v27, %v3848_v54 }
0x1261   :  { %v1409_v30 = vsub.f32 %v1406_v25, %v1356_v24 }
0x1262   :  { %v1410_v31 = vsub.f32 %v1407_v28, %v1357_v26  ;;  %v1401_v32 = vmax.f32 %v3858_v59, %v1395_v29 }
0x1263   :  { %v1412_v36 = vmul.f32 %v1409_v30, %v1409_v30 }
0x1264   :  { %v1405_v33 = vmin.f32 %v3863_v62, %v1401_v32  ;;  %v1413_v37 = vmul.f32 %v1410_v31, %v1410_v31 }
0x1266   :  { %v1408_v35 = vsub.f32 %v1395_v29, %v1405_v33  ;;  %v1415_v40 = vadd.f32 %v1413_v37, %v1412_v36 }
0x1268   :  { %v1411_v38 = vsub.f32 %v1408_v35, %v1358_v34 }
0x126a   :  { %v1414_v39 = vmul.f32 %v1411_v38, %v1411_v38 }
0x126c   :  { %v1416_v41 = vadd.f32 %v1415_v40, %v1414_v39 }
0x126e   :  { %1417 = vadd.xlane.f32.xlu0 %v1416_v41 }
0x12e1   :  { %v1418_v42 = vpop.xlane.xlu0 %1417 }
0x12e2   :  { %v1419_v43 = vrot.slane %v1418_v42, 4 }
0x12e4   :  { %v1420_v44 = vadd.f32 %v1419_v43, %v1418_v42 }
0x12e6   :  { %v1421_v45 = vrot.slane %v1420_v44, 2 }
0x12e8   :  { %v1422_v49 = vadd.f32 %v1421_v45, %v1420_v44 }
0x12ea   :  { %v1423_v51 = vrot.slane %v1422_v49, 1 }
0x12ec   :  { %v1424_v53 = vadd.f32 %v1423_v51, %v1422_v49 }
0x12ee   :  { %3486 = vpush %v1424_v53 }
0x131f   :  { %s3487_s22 = spop %3486 }
0x1320   :  { %p1426_p10 = scmp.lt.f32.partialorder %s3487_s22, 1e-10 }
0x1322   :  { %3534 = sst [smem:[#allocation4]] (%p1426_p10), %s3742_s23  ;;  %1433 = sbr.rel (%p1426_p10) target bundleno = 4910 (0x132e), region = 185 }
0x1327   :  { %v1434_v55 = vmul.f32 0.81082, %v1409_v30  ;;  %v1435_v56 = vmul.f32 0.81082, %v1410_v31  ;;  %v1436_v57 = vmul.f32 0.81082, %v1411_v38 }
0x1328   :  { %1443 = vst [vmem:[#allocation2 + $0x10] sm:$0xff] %v1406_v25 }
0x1329   :  { %v1437_v58 = vadd.f32 %v1434_v55, %v1406_v25  ;;  %v1438_v60 = vadd.f32 %v1435_v56, %v1407_v28  ;;  %v1439_v61 = vadd.f32 %v1436_v57, %v1408_v35  ;;  %1444 = vst [vmem:[#allocation2] sm:$0xff] %v1407_v28 }
0x132a   :  { %1445 = vst [vmem:[#allocation2 + $0x8] sm:$0xff] %v1408_v35 }
0x132b   :  { %1440 = vst [vmem:[#allocation3 + $0x8] sm:$0xff] %v1437_v58 }
0x132c   :  { %1441 = vst [vmem:[#allocation3] sm:$0xff] %v1438_v60 }
0x132d   :  { %1442 = vst [vmem:[#allocation3 + $0x10] sm:$0xff] %v1439_v61 }
0x132e PF:  { %s1446_s24 = sld [smem:[#allocation4]] }
0x1334   :  { %p3201_p11 = scmp.ne.s32.totalorder %s1446_s24, 0 }
0x1335   :  { %s3743_s28 = smov (!%p3201_p11), 1  }
0x1336   :  { %1450 = sbr.rel (%p3201_p11) target bundleno = 5268 (0x1494), region = 189 }
0x133b   :  { %v1456_v63 = vld [vmem:[#allocation3 + $0x10] sm:$0xff]  ;;  %v1455_v0 = vld [vmem:[#allocation3] sm:$0xff]  ;;  %v1454_v1 = vld [vmem:[#allocation3 + $0x8] sm:$0xff] }
0x133c   :  { %1479 = vmatpush.msra.mxu0 %v1456_v63  ;;  %3353 = vmatpush.msra.mxu1 %v1456_v63  ;;  %v1451_v10 = vld [vmem:[#allocation2 + $0x10] sm:$0xff]  ;;  %v1452_v14 = vld [vmem:[#allocation2] sm:$0xff]  ;;  %v1453_v22 = vld [vmem:[#allocation2 + $0x8] sm:$0xff] }
0x133d   :  { %3354 = vmatpush.msra.mxu2 %v1456_v63 }
0x133e   :  { %1480 = vmatpush.msra.mxu0 %v1455_v0  ;;  %3355 = vmatpush.msra.mxu1 %v1455_v0 }
0x133f   :  { %3356 = vmatpush.msra.mxu2 %v1455_v0 }
0x1340   :  { %1481 = vmatpush.msra.mxu0 %v1454_v1  ;;  %3357 = vmatpush.msra.mxu1 %v1454_v1 }
0x1341   :  { %3358 = vmatpush.msra.mxu2 %v1454_v1  ;;  %3202 = vmatmul.msk.f32.vlgmr.msra.gmra.mxu0 %vm78_vm0, %v3838_v46 }
0x1342   :  { %3203 = vmatmul.msk.f32.vlgmr.msra.gmra.mxu1 %vm78_vm0, %v3840_v47  ;;  %3204 = vmatmul.msk.f32.vlgmr.msra.gmra.mxu2 %vm78_vm0, %v3842_v48 }
0x13be   :  { %v1483_v2 = vpop.f32.mrf.mxu0 }
0x13bf   :  { %v1484_v3 = vadd.f32 %v1483_v2, %v3844_v50  ;;  %v1486_v4 = vpop.f32.mrf.mxu1 }
0x13c0   :  { %v1487_v5 = vadd.f32 %v1486_v4, %v3846_v52 }
0x13c1   :  { %v1494_v6 = vmax.f32 %v3858_v59, %v1484_v3 }
0x13c2   :  { %v1495_v7 = vmax.f32 %v3858_v59, %v1487_v5 }
0x13c3   :  { %v1498_v8 = vmin.f32 %v3863_v62, %v1494_v6 }
0x13c4   :  { %v1499_v9 = vmin.f32 %v3863_v62, %v1495_v7 }
0x13c5   :  { %v1501_v13 = vsub.f32 %v1484_v3, %v1498_v8  ;;  %v1489_v15 = vpop.f32.mrf.mxu2 }
0x13c6   :  { %v1502_v16 = vsub.f32 %v1487_v5, %v1499_v9  ;;  %v1490_v17 = vadd.f32 %v1489_v15, %v3848_v54 }
0x13c7   :  { %v1504_v18 = vsub.f32 %v1501_v13, %v1451_v10 }
0x13c8   :  { %v1505_v19 = vsub.f32 %v1502_v16, %v1452_v14  ;;  %v1496_v20 = vmax.f32 %v3858_v59, %v1490_v17 }
0x13c9   :  { %v1507_v24 = vmul.f32 %v1504_v18, %v1504_v18 }
0x13ca   :  { %v1500_v21 = vmin.f32 %v3863_v62, %v1496_v20  ;;  %v1508_v25 = vmul.f32 %v1505_v19, %v1505_v19 }
0x13cc   :  { %v1503_v23 = vsub.f32 %v1490_v17, %v1500_v21  ;;  %v1510_v28 = vadd.f32 %v1508_v25, %v1507_v24 }
0x13ce   :  { %v1506_v26 = vsub.f32 %v1503_v23, %v1453_v22 }
0x13d0   :  { %v1509_v27 = vmul.f32 %v1506_v26, %v1506_v26 }
0x13d2   :  { %v1511_v29 = vadd.f32 %v1510_v28, %v1509_v27 }
0x13d4   :  { %1512 = vadd.xlane.f32.xlu0 %v1511_v29 }
0x1447   :  { %v1513_v30 = vpop.xlane.xlu0 %1512 }
0x1448   :  { %v1514_v31 = vrot.slane %v1513_v30, 4 }
0x144a   :  { %v1515_v32 = vadd.f32 %v1514_v31, %v1513_v30 }
0x144c   :  { %v1516_v33 = vrot.slane %v1515_v32, 2 }
0x144e   :  { %v1517_v34 = vadd.f32 %v1516_v33, %v1515_v32 }
0x1450   :  { %v1518_v35 = vrot.slane %v1517_v34, 1 }
0x1452   :  { %v1519_v36 = vadd.f32 %v1518_v35, %v1517_v34 }
0x1454   :  { %3488 = vpush %v1519_v36 }
0x1485   :  { %s3489_s25 = spop %3488 }
0x1486   :  { %p1521_p12 = scmp.lt.f32.partialorder %s3489_s25, 1e-10 }
0x1488   :  { %3535 = sst [smem:[#allocation4]] (%p1521_p12), %s3743_s28  ;;  %1528 = sbr.rel (%p1521_p12) target bundleno = 5268 (0x1494), region = 197 }
0x148d   :  { %v1529_v37 = vmul.f32 0.82237667, %v1504_v18  ;;  %v1530_v38 = vmul.f32 0.82237667, %v1505_v19  ;;  %v1531_v39 = vmul.f32 0.82237667, %v1506_v26 }
0x148e   :  { %1538 = vst [vmem:[#allocation2 + $0x10] sm:$0xff] %v1501_v13 }
0x148f   :  { %v1532_v40 = vadd.f32 %v1529_v37, %v1501_v13  ;;  %v1533_v41 = vadd.f32 %v1530_v38, %v1502_v16  ;;  %v1534_v42 = vadd.f32 %v1531_v39, %v1503_v23  ;;  %1539 = vst [vmem:[#allocation2] sm:$0xff] %v1502_v16 }
0x1490   :  { %1540 = vst [vmem:[#allocation2 + $0x8] sm:$0xff] %v1503_v23 }
0x1491   :  { %1535 = vst [vmem:[#allocation3 + $0x8] sm:$0xff] %v1532_v40 }
0x1492   :  { %1536 = vst [vmem:[#allocation3] sm:$0xff] %v1533_v41 }
0x1493   :  { %1537 = vst [vmem:[#allocation3 + $0x10] sm:$0xff] %v1534_v42 }
0x1494 PF:  { %s1541_s29 = sld [smem:[#allocation4]] }
0x149a   :  { %p3205_p13 = scmp.ne.s32.totalorder %s1541_s29, 0 }
0x149b   :  { %s3744_s6 = smov (!%p3205_p13), 1  }
0x149c   :  { %1545 = sbr.rel (%p3205_p13) target bundleno = 5626 (0x15fa), region = 201 }
0x14a1   :  { %v1551_v43 = vld [vmem:[#allocation3 + $0x10] sm:$0xff]  ;;  %v1550_v44 = vld [vmem:[#allocation3] sm:$0xff]  ;;  %v1549_v45 = vld [vmem:[#allocation3 + $0x8] sm:$0xff] }
0x14a2   :  { %1574 = vmatpush.msra.mxu0 %v1551_v43  ;;  %3359 = vmatpush.msra.mxu1 %v1551_v43  ;;  %v1546_v61 = vld [vmem:[#allocation2 + $0x10] sm:$0xff]  ;;  %v1547_v0 = vld [vmem:[#allocation2] sm:$0xff]  ;;  %v1548_v8 = vld [vmem:[#allocation2 + $0x8] sm:$0xff] }
0x14a3   :  { %3360 = vmatpush.msra.mxu2 %v1551_v43 }
0x14a4   :  { %1575 = vmatpush.msra.mxu0 %v1550_v44  ;;  %3361 = vmatpush.msra.mxu1 %v1550_v44 }
0x14a5   :  { %3362 = vmatpush.msra.mxu2 %v1550_v44 }
0x14a6   :  { %1576 = vmatpush.msra.mxu0 %v1549_v45  ;;  %3363 = vmatpush.msra.mxu1 %v1549_v45 }
0x14a7   :  { %3364 = vmatpush.msra.mxu2 %v1549_v45  ;;  %3206 = vmatmul.msk.f32.vlgmr.msra.gmra.mxu0 %vm78_vm0, %v3838_v46 }
0x14a8   :  { %3207 = vmatmul.msk.f32.vlgmr.msra.gmra.mxu1 %vm78_vm0, %v3840_v47  ;;  %3208 = vmatmul.msk.f32.vlgmr.msra.gmra.mxu2 %vm78_vm0, %v3842_v48 }
0x1524   :  { %v1578_v49 = vpop.f32.mrf.mxu0 }
0x1525   :  { %v1579_v51 = vadd.f32 %v1578_v49, %v3844_v50  ;;  %v1581_v53 = vpop.f32.mrf.mxu1 }
0x1526   :  { %v1582_v55 = vadd.f32 %v1581_v53, %v3846_v52 }
0x1527   :  { %v1589_v56 = vmax.f32 %v3858_v59, %v1579_v51 }
0x1528   :  { %v1590_v57 = vmax.f32 %v3858_v59, %v1582_v55 }
0x1529   :  { %v1593_v58 = vmin.f32 %v3863_v62, %v1589_v56 }
0x152a   :  { %v1594_v60 = vmin.f32 %v3863_v62, %v1590_v57 }
0x152b   :  { %v1596_v63 = vsub.f32 %v1579_v51, %v1593_v58  ;;  %v1584_v1 = vpop.f32.mrf.mxu2 }
0x152c   :  { %v1597_v2 = vsub.f32 %v1582_v55, %v1594_v60  ;;  %v1585_v3 = vadd.f32 %v1584_v1, %v3848_v54 }
0x152d   :  { %v1599_v4 = vsub.f32 %v1596_v63, %v1546_v61 }
0x152e   :  { %v1600_v5 = vsub.f32 %v1597_v2, %v1547_v0  ;;  %v1591_v6 = vmax.f32 %v3858_v59, %v1585_v3 }
0x152f   :  { %v1602_v10 = vmul.f32 %v1599_v4, %v1599_v4 }
0x1530   :  { %v1595_v7 = vmin.f32 %v3863_v62, %v1591_v6  ;;  %v1603_v13 = vmul.f32 %v1600_v5, %v1600_v5 }
0x1532   :  { %v1598_v9 = vsub.f32 %v1585_v3, %v1595_v7  ;;  %v1605_v16 = vadd.f32 %v1603_v13, %v1602_v10 }
0x1534   :  { %v1601_v14 = vsub.f32 %v1598_v9, %v1548_v8 }
0x1536   :  { %v1604_v15 = vmul.f32 %v1601_v14, %v1601_v14 }
0x1538   :  { %v1606_v17 = vadd.f32 %v1605_v16, %v1604_v15 }
0x153a   :  { %1607 = vadd.xlane.f32.xlu0 %v1606_v17 }
0x15ad   :  { %v1608_v18 = vpop.xlane.xlu0 %1607 }
0x15ae   :  { %v1609_v19 = vrot.slane %v1608_v18, 4 }
0x15b0   :  { %v1610_v20 = vadd.f32 %v1609_v19, %v1608_v18 }
0x15b2   :  { %v1611_v21 = vrot.slane %v1610_v20, 2 }
0x15b4   :  { %v1612_v22 = vadd.f32 %v1611_v21, %v1610_v20 }
0x15b6   :  { %v1613_v23 = vrot.slane %v1612_v22, 1 }
0x15b8   :  { %v1614_v24 = vadd.f32 %v1613_v23, %v1612_v22 }
0x15ba   :  { %3490 = vpush %v1614_v24 }
0x15eb   :  { %s3491_s30 = spop %3490 }
0x15ec   :  { %p1616_p0 = scmp.lt.f32.partialorder %s3491_s30, 1e-10 }
0x15ee   :  { %3536 = sst [smem:[#allocation4]] (%p1616_p0), %s3744_s6  ;;  %1623 = sbr.rel (%p1616_p0) target bundleno = 5626 (0x15fa), region = 209 }
0x15f3   :  { %v1624_v25 = vmul.f32 0.8325844, %v1599_v4  ;;  %v1625_v26 = vmul.f32 0.8325844, %v1600_v5  ;;  %v1626_v27 = vmul.f32 0.8325844, %v1601_v14 }
0x15f4   :  { %1633 = vst [vmem:[#allocation2 + $0x10] sm:$0xff] %v1596_v63 }
0x15f5   :  { %v1627_v28 = vadd.f32 %v1624_v25, %v1596_v63  ;;  %v1628_v29 = vadd.f32 %v1625_v26, %v1597_v2  ;;  %v1629_v30 = vadd.f32 %v1626_v27, %v1598_v9  ;;  %1634 = vst [vmem:[#allocation2] sm:$0xff] %v1597_v2 }
0x15f6   :  { %1635 = vst [vmem:[#allocation2 + $0x8] sm:$0xff] %v1598_v9 }
0x15f7   :  { %1630 = vst [vmem:[#allocation3 + $0x8] sm:$0xff] %v1627_v28 }
0x15f8   :  { %1631 = vst [vmem:[#allocation3] sm:$0xff] %v1628_v29 }
0x15f9   :  { %1632 = vst [vmem:[#allocation3 + $0x10] sm:$0xff] %v1629_v30 }
0x15fa PF:  { %s1636_s1 = sld [smem:[#allocation4]] }
0x1600   :  { %p3209_p1 = scmp.ne.s32.totalorder %s1636_s1, 0 }
0x1601   :  { %s3745_s7 = smov (!%p3209_p1), 1  }
0x1602   :  { %1640 = sbr.rel (%p3209_p1) target bundleno = 5984 (0x1760), region = 213 }
0x1607   :  { %v1646_v31 = vld [vmem:[#allocation3 + $0x10] sm:$0xff]  ;;  %v1645_v32 = vld [vmem:[#allocation3] sm:$0xff]  ;;  %v1644_v33 = vld [vmem:[#allocation3 + $0x8] sm:$0xff] }
0x1608   :  { %1669 = vmatpush.msra.mxu0 %v1646_v31  ;;  %3365 = vmatpush.msra.mxu1 %v1646_v31  ;;  %v1641_v42 = vld [vmem:[#allocation2 + $0x10] sm:$0xff]  ;;  %v1642_v44 = vld [vmem:[#allocation2] sm:$0xff]  ;;  %v1643_v58 = vld [vmem:[#allocation2 + $0x8] sm:$0xff] }
0x1609   :  { %3366 = vmatpush.msra.mxu2 %v1646_v31 }
0x160a   :  { %1670 = vmatpush.msra.mxu0 %v1645_v32  ;;  %3367 = vmatpush.msra.mxu1 %v1645_v32 }
0x160b   :  { %3368 = vmatpush.msra.mxu2 %v1645_v32 }
0x160c   :  { %1671 = vmatpush.msra.mxu0 %v1644_v33  ;;  %3369 = vmatpush.msra.mxu1 %v1644_v33 }
0x160d   :  { %3370 = vmatpush.msra.mxu2 %v1644_v33  ;;  %3210 = vmatmul.msk.f32.vlgmr.msra.gmra.mxu0 %vm78_vm0, %v3838_v46 }
0x160e   :  { %3211 = vmatmul.msk.f32.vlgmr.msra.gmra.mxu1 %vm78_vm0, %v3840_v47  ;;  %3212 = vmatmul.msk.f32.vlgmr.msra.gmra.mxu2 %vm78_vm0, %v3842_v48 }
0x168a   :  { %v1673_v34 = vpop.f32.mrf.mxu0 }
0x168b   :  { %v1674_v35 = vadd.f32 %v1673_v34, %v3844_v50  ;;  %v1676_v36 = vpop.f32.mrf.mxu1 }
0x168c   :  { %v1677_v37 = vadd.f32 %v1676_v36, %v3846_v52 }
0x168d   :  { %v1684_v38 = vmax.f32 %v3858_v59, %v1674_v35 }
0x168e   :  { %v1685_v39 = vmax.f32 %v3858_v59, %v1677_v37 }
0x168f   :  { %v1688_v40 = vmin.f32 %v3863_v62, %v1684_v38 }
0x1690   :  { %v1689_v41 = vmin.f32 %v3863_v62, %v1685_v39 }
0x1691   :  { %v1691_v43 = vsub.f32 %v1674_v35, %v1688_v40  ;;  %v1679_v45 = vpop.f32.mrf.mxu2 }
0x1692   :  { %v1692_v49 = vsub.f32 %v1677_v37, %v1689_v41  ;;  %v1680_v51 = vadd.f32 %v1679_v45, %v3848_v54 }
0x1693   :  { %v1694_v53 = vsub.f32 %v1691_v43, %v1641_v42 }
0x1694   :  { %v1695_v55 = vsub.f32 %v1692_v49, %v1642_v44  ;;  %v1686_v56 = vmax.f32 %v3858_v59, %v1680_v51 }
0x1695   :  { %v1697_v61 = vmul.f32 %v1694_v53, %v1694_v53 }
0x1696   :  { %v1690_v57 = vmin.f32 %v3863_v62, %v1686_v56  ;;  %v1698_v63 = vmul.f32 %v1695_v55, %v1695_v55 }
0x1698   :  { %v1693_v60 = vsub.f32 %v1680_v51, %v1690_v57  ;;  %v1700_v2 = vadd.f32 %v1698_v63, %v1697_v61 }
0x169a   :  { %v1696_v0 = vsub.f32 %v1693_v60, %v1643_v58 }
0x169c   :  { %v1699_v1 = vmul.f32 %v1696_v0, %v1696_v0 }
0x169e   :  { %v1701_v3 = vadd.f32 %v1700_v2, %v1699_v1 }
0x16a0   :  { %1702 = vadd.xlane.f32.xlu0 %v1701_v3 }
0x1713   :  { %v1703_v4 = vpop.xlane.xlu0 %1702 }
0x1714   :  { %v1704_v5 = vrot.slane %v1703_v4, 4 }
0x1716   :  { %v1705_v6 = vadd.f32 %v1704_v5, %v1703_v4 }
0x1718   :  { %v1706_v7 = vrot.slane %v1705_v6, 2 }
0x171a   :  { %v1707_v8 = vadd.f32 %v1706_v7, %v1705_v6 }
0x171c   :  { %v1708_v9 = vrot.slane %v1707_v8, 1 }
0x171e   :  { %v1709_v10 = vadd.f32 %v1708_v9, %v1707_v8 }
0x1720   :  { %3492 = vpush %v1709_v10 }
0x1751   :  { %s3493_s0 = spop %3492 }
0x1752   :  { %p1711_p2 = scmp.lt.f32.partialorder %s3493_s0, 1e-10 }
0x1754   :  { %3537 = sst [smem:[#allocation4]] (%p1711_p2), %s3745_s7  ;;  %1718 = sbr.rel (%p1711_p2) target bundleno = 5984 (0x1760), region = 221 }
0x1759   :  { %v1719_v13 = vmul.f32 0.84166825, %v1694_v53  ;;  %v1720_v14 = vmul.f32 0.84166825, %v1695_v55  ;;  %v1721_v15 = vmul.f32 0.84166825, %v1696_v0 }
0x175a   :  { %1728 = vst [vmem:[#allocation2 + $0x10] sm:$0xff] %v1691_v43 }
0x175b   :  { %v1722_v16 = vadd.f32 %v1719_v13, %v1691_v43  ;;  %v1723_v17 = vadd.f32 %v1720_v14, %v1692_v49  ;;  %v1724_v18 = vadd.f32 %v1721_v15, %v1693_v60  ;;  %1729 = vst [vmem:[#allocation2] sm:$0xff] %v1692_v49 }
0x175c   :  { %1730 = vst [vmem:[#allocation2 + $0x8] sm:$0xff] %v1693_v60 }
0x175d   :  { %1725 = vst [vmem:[#allocation3 + $0x8] sm:$0xff] %v1722_v16 }
0x175e   :  { %1726 = vst [vmem:[#allocation3] sm:$0xff] %v1723_v17 }
0x175f   :  { %1727 = vst [vmem:[#allocation3 + $0x10] sm:$0xff] %v1724_v18 }
0x1760 PF:  { %s1731_s8 = sld [smem:[#allocation4]] }
0x1766   :  { %p3213_p3 = scmp.ne.s32.totalorder %s1731_s8, 0 }
0x1767   :  { %s3746_s9 = smov (!%p3213_p3), 1  }
0x1768   :  { %1735 = sbr.rel (%p3213_p3) target bundleno = 6342 (0x18c6), region = 225 }
0x176d   :  { %v1741_v19 = vld [vmem:[#allocation3 + $0x10] sm:$0xff]  ;;  %v1740_v20 = vld [vmem:[#allocation3] sm:$0xff]  ;;  %v1739_v21 = vld [vmem:[#allocation3 + $0x8] sm:$0xff] }
0x176e   :  { %1764 = vmatpush.msra.mxu0 %v1741_v19  ;;  %3371 = vmatpush.msra.mxu1 %v1741_v19  ;;  %v1736_v30 = vld [vmem:[#allocation2 + $0x10] sm:$0xff]  ;;  %v1737_v32 = vld [vmem:[#allocation2] sm:$0xff]  ;;  %v1738_v40 = vld [vmem:[#allocation2 + $0x8] sm:$0xff] }
0x176f   :  { %3372 = vmatpush.msra.mxu2 %v1741_v19 }
0x1770   :  { %1765 = vmatpush.msra.mxu0 %v1740_v20  ;;  %3373 = vmatpush.msra.mxu1 %v1740_v20 }
0x1771   :  { %3374 = vmatpush.msra.mxu2 %v1740_v20 }
0x1772   :  { %1766 = vmatpush.msra.mxu0 %v1739_v21  ;;  %3375 = vmatpush.msra.mxu1 %v1739_v21 }
0x1773   :  { %3376 = vmatpush.msra.mxu2 %v1739_v21  ;;  %3214 = vmatmul.msk.f32.vlgmr.msra.gmra.mxu0 %vm78_vm0, %v3838_v46 }
0x1774   :  { %3215 = vmatmul.msk.f32.vlgmr.msra.gmra.mxu1 %vm78_vm0, %v3840_v47  ;;  %3216 = vmatmul.msk.f32.vlgmr.msra.gmra.mxu2 %vm78_vm0, %v3842_v48 }
0x17f0   :  { %v1768_v22 = vpop.f32.mrf.mxu0 }
0x17f1   :  { %v1769_v23 = vadd.f32 %v1768_v22, %v3844_v50  ;;  %v1771_v24 = vpop.f32.mrf.mxu1 }
0x17f2   :  { %v1772_v25 = vadd.f32 %v1771_v24, %v3846_v52 }
0x17f3   :  { %v1779_v26 = vmax.f32 %v3858_v59, %v1769_v23 }
0x17f4   :  { %v1780_v27 = vmax.f32 %v3858_v59, %v1772_v25 }
0x17f5   :  { %v1783_v28 = vmin.f32 %v3863_v62, %v1779_v26 }
0x17f6   :  { %v1784_v29 = vmin.f32 %v3863_v62, %v1780_v27 }
0x17f7   :  { %v1786_v31 = vsub.f32 %v1769_v23, %v1783_v28  ;;  %v1774_v33 = vpop.f32.mrf.mxu2 }
0x17f8   :  { %v1787_v34 = vsub.f32 %v1772_v25, %v1784_v29  ;;  %v1775_v35 = vadd.f32 %v1774_v33, %v3848_v54 }
0x17f9   :  { %v1789_v36 = vsub.f32 %v1786_v31, %v1736_v30 }
0x17fa   :  { %v1790_v37 = vsub.f32 %v1787_v34, %v1737_v32  ;;  %v1781_v38 = vmax.f32 %v3858_v59, %v1775_v35 }
0x17fb   :  { %v1792_v42 = vmul.f32 %v1789_v36, %v1789_v36 }
0x17fc   :  { %v1785_v39 = vmin.f32 %v3863_v62, %v1781_v38  ;;  %v1793_v43 = vmul.f32 %v1790_v37, %v1790_v37 }
0x17fe   :  { %v1788_v41 = vsub.f32 %v1775_v35, %v1785_v39  ;;  %v1795_v49 = vadd.f32 %v1793_v43, %v1792_v42 }
0x1800   :  { %v1791_v44 = vsub.f32 %v1788_v41, %v1738_v40 }
0x1802   :  { %v1794_v45 = vmul.f32 %v1791_v44, %v1791_v44 }
0x1804   :  { %v1796_v51 = vadd.f32 %v1795_v49, %v1794_v45 }
0x1806   :  { %1797 = vadd.xlane.f32.xlu0 %v1796_v51 }
0x1879   :  { %v1798_v53 = vpop.xlane.xlu0 %1797 }
0x187a   :  { %v1799_v55 = vrot.slane %v1798_v53, 4 }
0x187c   :  { %v1800_v56 = vadd.f32 %v1799_v55, %v1798_v53 }
0x187e   :  { %v1801_v57 = vrot.slane %v1800_v56, 2 }
0x1880   :  { %v1802_v58 = vadd.f32 %v1801_v57, %v1800_v56 }
0x1882   :  { %v1803_v60 = vrot.slane %v1802_v58, 1 }
0x1884   :  { %v1804_v61 = vadd.f32 %v1803_v60, %v1802_v58 }
0x1886   :  { %3494 = vpush %v1804_v61 }
0x18b7   :  { %s3495_s3 = spop %3494 }
0x18b8   :  { %p1806_p4 = scmp.lt.f32.partialorder %s3495_s3, 1e-10 }
0x18ba   :  { %3538 = sst [smem:[#allocation4]] (%p1806_p4), %s3746_s9  ;;  %1813 = sbr.rel (%p1806_p4) target bundleno = 6342 (0x18c6), region = 233 }
0x18bf   :  { %v1814_v63 = vmul.f32 0.84980553, %v1789_v36  ;;  %v1815_v0 = vmul.f32 0.84980553, %v1790_v37  ;;  %v1816_v1 = vmul.f32 0.84980553, %v1791_v44 }
0x18c0   :  { %1823 = vst [vmem:[#allocation2 + $0x10] sm:$0xff] %v1786_v31 }
0x18c1   :  { %v1817_v2 = vadd.f32 %v1814_v63, %v1786_v31  ;;  %v1818_v3 = vadd.f32 %v1815_v0, %v1787_v34  ;;  %v1819_v4 = vadd.f32 %v1816_v1, %v1788_v41  ;;  %1824 = vst [vmem:[#allocation2] sm:$0xff] %v1787_v34 }
0x18c2   :  { %1825 = vst [vmem:[#allocation2 + $0x8] sm:$0xff] %v1788_v41 }
0x18c3   :  { %1820 = vst [vmem:[#allocation3 + $0x8] sm:$0xff] %v1817_v2 }
0x18c4   :  { %1821 = vst [vmem:[#allocation3] sm:$0xff] %v1818_v3 }
0x18c5   :  { %1822 = vst [vmem:[#allocation3 + $0x10] sm:$0xff] %v1819_v4 }
0x18c6 PF:  { %s1826_s10 = sld [smem:[#allocation4]] }
0x18cc   :  { %p3217_p5 = scmp.ne.s32.totalorder %s1826_s10, 0 }
0x18cd   :  { %s3747_s12 = smov (!%p3217_p5), 1  }
0x18ce   :  { %1830 = sbr.rel (%p3217_p5) target bundleno = 6700 (0x1a2c), region = 237 }
0x18d3   :  { %v1836_v5 = vld [vmem:[#allocation3 + $0x10] sm:$0xff]  ;;  %v1835_v6 = vld [vmem:[#allocation3] sm:$0xff]  ;;  %v1834_v7 = vld [vmem:[#allocation3 + $0x8] sm:$0xff] }
0x18d4   :  { %1859 = vmatpush.msra.mxu0 %v1836_v5  ;;  %3377 = vmatpush.msra.mxu1 %v1836_v5  ;;  %v1831_v18 = vld [vmem:[#allocation2 + $0x10] sm:$0xff]  ;;  %v1832_v20 = vld [vmem:[#allocation2] sm:$0xff]  ;;  %v1833_v28 = vld [vmem:[#allocation2 + $0x8] sm:$0xff] }
0x18d5   :  { %3378 = vmatpush.msra.mxu2 %v1836_v5 }
0x18d6   :  { %1860 = vmatpush.msra.mxu0 %v1835_v6  ;;  %3379 = vmatpush.msra.mxu1 %v1835_v6 }
0x18d7   :  { %3380 = vmatpush.msra.mxu2 %v1835_v6 }
0x18d8   :  { %1861 = vmatpush.msra.mxu0 %v1834_v7  ;;  %3381 = vmatpush.msra.mxu1 %v1834_v7 }
0x18d9   :  { %3382 = vmatpush.msra.mxu2 %v1834_v7  ;;  %3218 = vmatmul.msk.f32.vlgmr.msra.gmra.mxu0 %vm78_vm0, %v3838_v46 }
0x18da   :  { %3219 = vmatmul.msk.f32.vlgmr.msra.gmra.mxu1 %vm78_vm0, %v3840_v47  ;;  %3220 = vmatmul.msk.f32.vlgmr.msra.gmra.mxu2 %vm78_vm0, %v3842_v48 }
0x1956   :  { %v1863_v8 = vpop.f32.mrf.mxu0 }
0x1957   :  { %v1864_v9 = vadd.f32 %v1863_v8, %v3844_v50  ;;  %v1866_v10 = vpop.f32.mrf.mxu1 }
0x1958   :  { %v1867_v13 = vadd.f32 %v1866_v10, %v3846_v52 }
0x1959   :  { %v1874_v14 = vmax.f32 %v3858_v59, %v1864_v9 }
0x195a   :  { %v1875_v15 = vmax.f32 %v3858_v59, %v1867_v13 }
0x195b   :  { %v1878_v16 = vmin.f32 %v3863_v62, %v1874_v14 }
0x195c   :  { %v1879_v17 = vmin.f32 %v3863_v62, %v1875_v15 }
0x195d   :  { %v1881_v19 = vsub.f32 %v1864_v9, %v1878_v16  ;;  %v1869_v21 = vpop.f32.mrf.mxu2 }
0x195e   :  { %v1882_v22 = vsub.f32 %v1867_v13, %v1879_v17  ;;  %v1870_v23 = vadd.f32 %v1869_v21, %v3848_v54 }
0x195f   :  { %v1884_v24 = vsub.f32 %v1881_v19, %v1831_v18 }
0x1960   :  { %v1885_v25 = vsub.f32 %v1882_v22, %v1832_v20  ;;  %v1876_v26 = vmax.f32 %v3858_v59, %v1870_v23 }
0x1961   :  { %v1887_v30 = vmul.f32 %v1884_v24, %v1884_v24 }
0x1962   :  { %v1880_v27 = vmin.f32 %v3863_v62, %v1876_v26  ;;  %v1888_v31 = vmul.f32 %v1885_v25, %v1885_v25 }
0x1964   :  { %v1883_v29 = vsub.f32 %v1870_v23, %v1880_v27  ;;  %v1890_v34 = vadd.f32 %v1888_v31, %v1887_v30 }
0x1966   :  { %v1886_v32 = vsub.f32 %v1883_v29, %v1833_v28 }
0x1968   :  { %v1889_v33 = vmul.f32 %v1886_v32, %v1886_v32 }
0x196a   :  { %v1891_v35 = vadd.f32 %v1890_v34, %v1889_v33 }
0x196c   :  { %1892 = vadd.xlane.f32.xlu0 %v1891_v35 }
0x19df   :  { %v1893_v36 = vpop.xlane.xlu0 %1892 }
0x19e0   :  { %v1894_v37 = vrot.slane %v1893_v36, 4 }
0x19e2   :  { %v1895_v38 = vadd.f32 %v1894_v37, %v1893_v36 }
0x19e4   :  { %v1896_v39 = vrot.slane %v1895_v38, 2 }
0x19e6   :  { %v1897_v40 = vadd.f32 %v1896_v39, %v1895_v38 }
0x19e8   :  { %v1898_v41 = vrot.slane %v1897_v40, 1 }
0x19ea   :  { %v1899_v42 = vadd.f32 %v1898_v41, %v1897_v40 }
0x19ec   :  { %3496 = vpush %v1899_v42 }
0x1a1d   :  { %s3497_s11 = spop %3496 }
0x1a1e   :  { %p1901_p6 = scmp.lt.f32.partialorder %s3497_s11, 1e-10 }
0x1a20   :  { %3539 = sst [smem:[#allocation4]] (%p1901_p6), %s3747_s12  ;;  %1908 = sbr.rel (%p1901_p6) target bundleno = 6700 (0x1a2c), region = 245 }
0x1a25   :  { %v1909_v43 = vmul.f32 0.8571379, %v1884_v24  ;;  %v1910_v44 = vmul.f32 0.8571379, %v1885_v25  ;;  %v1911_v45 = vmul.f32 0.8571379, %v1886_v32 }
0x1a26   :  { %1918 = vst [vmem:[#allocation2 + $0x10] sm:$0xff] %v1881_v19 }
0x1a27   :  { %v1912_v49 = vadd.f32 %v1909_v43, %v1881_v19  ;;  %v1913_v51 = vadd.f32 %v1910_v44, %v1882_v22  ;;  %v1914_v53 = vadd.f32 %v1911_v45, %v1883_v29  ;;  %1919 = vst [vmem:[#allocation2] sm:$0xff] %v1882_v22 }
0x1a28   :  { %1920 = vst [vmem:[#allocation2 + $0x8] sm:$0xff] %v1883_v29 }
0x1a29   :  { %1915 = vst [vmem:[#allocation3 + $0x8] sm:$0xff] %v1912_v49 }
0x1a2a   :  { %1916 = vst [vmem:[#allocation3] sm:$0xff] %v1913_v51 }
0x1a2b   :  { %1917 = vst [vmem:[#allocation3 + $0x10] sm:$0xff] %v1914_v53 }
0x1a2c PF:  { %s1921_s13 = sld [smem:[#allocation4]] }
0x1a32   :  { %p3221_p7 = scmp.ne.s32.totalorder %s1921_s13, 0 }
0x1a33   :  { %s3748_s15 = smov (!%p3221_p7), 1  }
0x1a34   :  { %1925 = sbr.rel (%p3221_p7) target bundleno = 7058 (0x1b92), region = 249 }
0x1a39   :  { %v1931_v55 = vld [vmem:[#allocation3 + $0x10] sm:$0xff]  ;;  %v1930_v56 = vld [vmem:[#allocation3] sm:$0xff]  ;;  %v1929_v57 = vld [vmem:[#allocation3 + $0x8] sm:$0xff] }
0x1a3a   :  { %1954 = vmatpush.msra.mxu0 %v1931_v55  ;;  %3383 = vmatpush.msra.mxu1 %v1931_v55  ;;  %v1926_v4 = vld [vmem:[#allocation2 + $0x10] sm:$0xff]  ;;  %v1927_v6 = vld [vmem:[#allocation2] sm:$0xff]  ;;  %v1928_v16 = vld [vmem:[#allocation2 + $0x8] sm:$0xff] }
0x1a3b   :  { %3384 = vmatpush.msra.mxu2 %v1931_v55 }
0x1a3c   :  { %1955 = vmatpush.msra.mxu0 %v1930_v56  ;;  %3385 = vmatpush.msra.mxu1 %v1930_v56 }
0x1a3d   :  { %3386 = vmatpush.msra.mxu2 %v1930_v56 }
0x1a3e   :  { %1956 = vmatpush.msra.mxu0 %v1929_v57  ;;  %3387 = vmatpush.msra.mxu1 %v1929_v57 }
0x1a3f   :  { %3388 = vmatpush.msra.mxu2 %v1929_v57  ;;  %3222 = vmatmul.msk.f32.vlgmr.msra.gmra.mxu0 %vm78_vm0, %v3838_v46 }
0x1a40   :  { %3223 = vmatmul.msk.f32.vlgmr.msra.gmra.mxu1 %vm78_vm0, %v3840_v47  ;;  %3224 = vmatmul.msk.f32.vlgmr.msra.gmra.mxu2 %vm78_vm0, %v3842_v48 }
0x1abc   :  { %v1958_v58 = vpop.f32.mrf.mxu0 }
0x1abd   :  { %v1959_v60 = vadd.f32 %v1958_v58, %v3844_v50  ;;  %v1961_v61 = vpop.f32.mrf.mxu1 }
0x1abe   :  { %v1962_v63 = vadd.f32 %v1961_v61, %v3846_v52 }
0x1abf   :  { %v1969_v0 = vmax.f32 %v3858_v59, %v1959_v60 }
0x1ac0   :  { %v1970_v1 = vmax.f32 %v3858_v59, %v1962_v63 }
0x1ac1   :  { %v1973_v2 = vmin.f32 %v3863_v62, %v1969_v0 }
0x1ac2   :  { %v1974_v3 = vmin.f32 %v3863_v62, %v1970_v1 }
0x1ac3   :  { %v1976_v5 = vsub.f32 %v1959_v60, %v1973_v2  ;;  %v1964_v7 = vpop.f32.mrf.mxu2 }
0x1ac4   :  { %v1977_v8 = vsub.f32 %v1962_v63, %v1974_v3  ;;  %v1965_v9 = vadd.f32 %v1964_v7, %v3848_v54 }
0x1ac5   :  { %v1979_v10 = vsub.f32 %v1976_v5, %v1926_v4 }
0x1ac6   :  { %v1980_v13 = vsub.f32 %v1977_v8, %v1927_v6  ;;  %v1971_v14 = vmax.f32 %v3858_v59, %v1965_v9 }
0x1ac7   :  { %v1982_v18 = vmul.f32 %v1979_v10, %v1979_v10 }
0x1ac8   :  { %v1975_v15 = vmin.f32 %v3863_v62, %v1971_v14  ;;  %v1983_v19 = vmul.f32 %v1980_v13, %v1980_v13 }
0x1aca   :  { %v1978_v17 = vsub.f32 %v1965_v9, %v1975_v15  ;;  %v1985_v22 = vadd.f32 %v1983_v19, %v1982_v18 }
0x1acc   :  { %v1981_v20 = vsub.f32 %v1978_v17, %v1928_v16 }
0x1ace   :  { %v1984_v21 = vmul.f32 %v1981_v20, %v1981_v20 }
0x1ad0   :  { %v1986_v23 = vadd.f32 %v1985_v22, %v1984_v21 }
0x1ad2   :  { %1987 = vadd.xlane.f32.xlu0 %v1986_v23 }
0x1b45   :  { %v1988_v24 = vpop.xlane.xlu0 %1987 }
0x1b46   :  { %v1989_v25 = vrot.slane %v1988_v24, 4 }
0x1b48   :  { %v1990_v26 = vadd.f32 %v1989_v25, %v1988_v24 }
0x1b4a   :  { %v1991_v27 = vrot.slane %v1990_v26, 2 }
0x1b4c   :  { %v1992_v28 = vadd.f32 %v1991_v27, %v1990_v26 }
0x1b4e   :  { %v1993_v29 = vrot.slane %v1992_v28, 1 }
0x1b50   :  { %v1994_v30 = vadd.f32 %v1993_v29, %v1992_v28 }
0x1b52   :  { %3498 = vpush %v1994_v30 }
0x1b83   :  { %s3499_s14 = spop %3498 }
0x1b84   :  { %p1996_p8 = scmp.lt.f32.partialorder %s3499_s14, 1e-10 }
0x1b86   :  { %3540 = sst [smem:[#allocation4]] (%p1996_p8), %s3748_s15  ;;  %2003 = sbr.rel (%p1996_p8) target bundleno = 7058 (0x1b92), region = 257 }
0x1b8b   :  { %v2004_v31 = vmul.f32 0.86378014, %v1979_v10  ;;  %v2005_v32 = vmul.f32 0.86378014, %v1980_v13  ;;  %v2006_v33 = vmul.f32 0.86378014, %v1981_v20 }
0x1b8c   :  { %2013 = vst [vmem:[#allocation2 + $0x10] sm:$0xff] %v1976_v5 }
0x1b8d   :  { %v2007_v34 = vadd.f32 %v2004_v31, %v1976_v5  ;;  %v2008_v35 = vadd.f32 %v2005_v32, %v1977_v8  ;;  %v2009_v36 = vadd.f32 %v2006_v33, %v1978_v17  ;;  %2014 = vst [vmem:[#allocation2] sm:$0xff] %v1977_v8 }
0x1b8e   :  { %2015 = vst [vmem:[#allocation2 + $0x8] sm:$0xff] %v1978_v17 }
0x1b8f   :  { %2010 = vst [vmem:[#allocation3 + $0x8] sm:$0xff] %v2007_v34 }
0x1b90   :  { %2011 = vst [vmem:[#allocation3] sm:$0xff] %v2008_v35 }
0x1b91   :  { %2012 = vst [vmem:[#allocation3 + $0x10] sm:$0xff] %v2009_v36 }
0x1b92 PF:  { %s2016_s16 = sld [smem:[#allocation4]] }
0x1b98   :  { %p3225_p9 = scmp.ne.s32.totalorder %s2016_s16, 0 }
0x1b99   :  { %s3749_s18 = smov (!%p3225_p9), 1  }
0x1b9a   :  { %2020 = sbr.rel (%p3225_p9) target bundleno = 7416 (0x1cf8), region = 261 }
0x1b9f   :  { %v2026_v37 = vld [vmem:[#allocation3 + $0x10] sm:$0xff]  ;;  %v2025_v38 = vld [vmem:[#allocation3] sm:$0xff]  ;;  %v2024_v39 = vld [vmem:[#allocation3 + $0x8] sm:$0xff] }
0x1ba0   :  { %2049 = vmatpush.msra.mxu0 %v2026_v37  ;;  %3389 = vmatpush.msra.mxu1 %v2026_v37  ;;  %v2021_v53 = vld [vmem:[#allocation2 + $0x10] sm:$0xff]  ;;  %v2022_v56 = vld [vmem:[#allocation2] sm:$0xff]  ;;  %v2023_v2 = vld [vmem:[#allocation2 + $0x8] sm:$0xff] }
0x1ba1   :  { %3390 = vmatpush.msra.mxu2 %v2026_v37 }
0x1ba2   :  { %2050 = vmatpush.msra.mxu0 %v2025_v38  ;;  %3391 = vmatpush.msra.mxu1 %v2025_v38 }
0x1ba3   :  { %3392 = vmatpush.msra.mxu2 %v2025_v38 }
0x1ba4   :  { %2051 = vmatpush.msra.mxu0 %v2024_v39  ;;  %3393 = vmatpush.msra.mxu1 %v2024_v39 }
0x1ba5   :  { %3394 = vmatpush.msra.mxu2 %v2024_v39  ;;  %3226 = vmatmul.msk.f32.vlgmr.msra.gmra.mxu0 %vm78_vm0, %v3838_v46 }
0x1ba6   :  { %3227 = vmatmul.msk.f32.vlgmr.msra.gmra.mxu1 %vm78_vm0, %v3840_v47  ;;  %3228 = vmatmul.msk.f32.vlgmr.msra.gmra.mxu2 %vm78_vm0, %v3842_v48 }
0x1c22   :  { %v2053_v40 = vpop.f32.mrf.mxu0 }
0x1c23   :  { %v2054_v41 = vadd.f32 %v2053_v40, %v3844_v50  ;;  %v2056_v42 = vpop.f32.mrf.mxu1 }
0x1c24   :  { %v2057_v43 = vadd.f32 %v2056_v42, %v3846_v52 }
0x1c25   :  { %v2064_v44 = vmax.f32 %v3858_v59, %v2054_v41 }
0x1c26   :  { %v2065_v45 = vmax.f32 %v3858_v59, %v2057_v43 }
0x1c27   :  { %v2068_v49 = vmin.f32 %v3863_v62, %v2064_v44 }
0x1c28   :  { %v2069_v51 = vmin.f32 %v3863_v62, %v2065_v45 }
0x1c29   :  { %v2071_v55 = vsub.f32 %v2054_v41, %v2068_v49  ;;  %v2059_v57 = vpop.f32.mrf.mxu2 }
0x1c2a   :  { %v2072_v58 = vsub.f32 %v2057_v43, %v2069_v51  ;;  %v2060_v60 = vadd.f32 %v2059_v57, %v3848_v54 }
0x1c2b   :  { %v2074_v61 = vsub.f32 %v2071_v55, %v2021_v53 }
0x1c2c   :  { %v2075_v63 = vsub.f32 %v2072_v58, %v2022_v56  ;;  %v2066_v0 = vmax.f32 %v3858_v59, %v2060_v60 }
0x1c2d   :  { %v2077_v4 = vmul.f32 %v2074_v61, %v2074_v61 }
0x1c2e   :  { %v2070_v1 = vmin.f32 %v3863_v62, %v2066_v0  ;;  %v2078_v5 = vmul.f32 %v2075_v63, %v2075_v63 }
0x1c30   :  { %v2073_v3 = vsub.f32 %v2060_v60, %v2070_v1  ;;  %v2080_v8 = vadd.f32 %v2078_v5, %v2077_v4 }
0x1c32   :  { %v2076_v6 = vsub.f32 %v2073_v3, %v2023_v2 }
0x1c34   :  { %v2079_v7 = vmul.f32 %v2076_v6, %v2076_v6 }
0x1c36   :  { %v2081_v9 = vadd.f32 %v2080_v8, %v2079_v7 }
0x1c38   :  { %2082 = vadd.xlane.f32.xlu0 %v2081_v9 }
0x1cab   :  { %v2083_v10 = vpop.xlane.xlu0 %2082 }
0x1cac   :  { %v2084_v13 = vrot.slane %v2083_v10, 4 }
0x1cae   :  { %v2085_v14 = vadd.f32 %v2084_v13, %v2083_v10 }
0x1cb0   :  { %v2086_v15 = vrot.slane %v2085_v14, 2 }
0x1cb2   :  { %v2087_v16 = vadd.f32 %v2086_v15, %v2085_v14 }
0x1cb4   :  { %v2088_v17 = vrot.slane %v2087_v16, 1 }
0x1cb6   :  { %v2089_v18 = vadd.f32 %v2088_v17, %v2087_v16 }
0x1cb8   :  { %3500 = vpush %v2089_v18 }
0x1ce9   :  { %s3501_s17 = spop %3500 }
0x1cea   :  { %p2091_p10 = scmp.lt.f32.partialorder %s3501_s17, 1e-10 }
0x1cec   :  { %3541 = sst [smem:[#allocation4]] (%p2091_p10), %s3749_s18  ;;  %2098 = sbr.rel (%p2091_p10) target bundleno = 7416 (0x1cf8), region = 269 }
0x1cf1   :  { %v2099_v19 = vmul.f32 0.8698258, %v2074_v61  ;;  %v2100_v20 = vmul.f32 0.8698258, %v2075_v63  ;;  %v2101_v21 = vmul.f32 0.8698258, %v2076_v6 }
0x1cf2   :  { %2108 = vst [vmem:[#allocation2 + $0x10] sm:$0xff] %v2071_v55 }
0x1cf3   :  { %v2102_v22 = vadd.f32 %v2099_v19, %v2071_v55  ;;  %v2103_v23 = vadd.f32 %v2100_v20, %v2072_v58  ;;  %v2104_v24 = vadd.f32 %v2101_v21, %v2073_v3  ;;  %2109 = vst [vmem:[#allocation2] sm:$0xff] %v2072_v58 }
0x1cf4   :  { %2110 = vst [vmem:[#allocation2 + $0x8] sm:$0xff] %v2073_v3 }
0x1cf5   :  { %2105 = vst [vmem:[#allocation3 + $0x8] sm:$0xff] %v2102_v22 }
0x1cf6   :  { %2106 = vst [vmem:[#allocation3] sm:$0xff] %v2103_v23 }
0x1cf7   :  { %2107 = vst [vmem:[#allocation3 + $0x10] sm:$0xff] %v2104_v24 }
0x1cf8 PF:  { %s2111_s19 = sld [smem:[#allocation4]] }
0x1cfe   :  { %p3229_p11 = scmp.ne.s32.totalorder %s2111_s19, 0 }
0x1cff   :  { %s3750_s21 = smov (!%p3229_p11), 1  }
0x1d00   :  { %2115 = sbr.rel (%p3229_p11) target bundleno = 7774 (0x1e5e), region = 273 }
0x1d05   :  { %v2121_v25 = vld [vmem:[#allocation3 + $0x10] sm:$0xff]  ;;  %v2120_v26 = vld [vmem:[#allocation3] sm:$0xff]  ;;  %v2119_v27 = vld [vmem:[#allocation3 + $0x8] sm:$0xff] }
0x1d06   :  { %2144 = vmatpush.msra.mxu0 %v2121_v25  ;;  %3395 = vmatpush.msra.mxu1 %v2121_v25  ;;  %v2116_v36 = vld [vmem:[#allocation2 + $0x10] sm:$0xff]  ;;  %v2117_v38 = vld [vmem:[#allocation2] sm:$0xff]  ;;  %v2118_v49 = vld [vmem:[#allocation2 + $0x8] sm:$0xff] }
0x1d07   :  { %3396 = vmatpush.msra.mxu2 %v2121_v25 }
0x1d08   :  { %2145 = vmatpush.msra.mxu0 %v2120_v26  ;;  %3397 = vmatpush.msra.mxu1 %v2120_v26 }
0x1d09   :  { %3398 = vmatpush.msra.mxu2 %v2120_v26 }
0x1d0a   :  { %2146 = vmatpush.msra.mxu0 %v2119_v27  ;;  %3399 = vmatpush.msra.mxu1 %v2119_v27 }
0x1d0b   :  { %3400 = vmatpush.msra.mxu2 %v2119_v27  ;;  %3230 = vmatmul.msk.f32.vlgmr.msra.gmra.mxu0 %vm78_vm0, %v3838_v46 }
0x1d0c   :  { %3231 = vmatmul.msk.f32.vlgmr.msra.gmra.mxu1 %vm78_vm0, %v3840_v47  ;;  %3232 = vmatmul.msk.f32.vlgmr.msra.gmra.mxu2 %vm78_vm0, %v3842_v48 }
0x1d88   :  { %v2148_v28 = vpop.f32.mrf.mxu0 }
0x1d89   :  { %v2149_v29 = vadd.f32 %v2148_v28, %v3844_v50  ;;  %v2151_v30 = vpop.f32.mrf.mxu1 }
0x1d8a   :  { %v2152_v31 = vadd.f32 %v2151_v30, %v3846_v52 }
0x1d8b   :  { %v2159_v32 = vmax.f32 %v3858_v59, %v2149_v29 }
0x1d8c   :  { %v2160_v33 = vmax.f32 %v3858_v59, %v2152_v31 }
0x1d8d   :  { %v2163_v34 = vmin.f32 %v3863_v62, %v2159_v32 }
0x1d8e   :  { %v2164_v35 = vmin.f32 %v3863_v62, %v2160_v33 }
0x1d8f   :  { %v2166_v37 = vsub.f32 %v2149_v29, %v2163_v34  ;;  %v2154_v39 = vpop.f32.mrf.mxu2 }
0x1d90   :  { %v2167_v40 = vsub.f32 %v2152_v31, %v2164_v35  ;;  %v2155_v41 = vadd.f32 %v2154_v39, %v3848_v54 }
0x1d91   :  { %v2169_v42 = vsub.f32 %v2166_v37, %v2116_v36 }
0x1d92   :  { %v2170_v43 = vsub.f32 %v2167_v40, %v2117_v38  ;;  %v2161_v44 = vmax.f32 %v3858_v59, %v2155_v41 }
0x1d93   :  { %v2172_v53 = vmul.f32 %v2169_v42, %v2169_v42 }
0x1d94   :  { %v2165_v45 = vmin.f32 %v3863_v62, %v2161_v44  ;;  %v2173_v55 = vmul.f32 %v2170_v43, %v2170_v43 }
0x1d96   :  { %v2168_v51 = vsub.f32 %v2155_v41, %v2165_v45  ;;  %v2175_v58 = vadd.f32 %v2173_v55, %v2172_v53 }
0x1d98   :  { %v2171_v56 = vsub.f32 %v2168_v51, %v2118_v49 }
0x1d9a   :  { %v2174_v57 = vmul.f32 %v2171_v56, %v2171_v56 }
0x1d9c   :  { %v2176_v60 = vadd.f32 %v2175_v58, %v2174_v57 }
0x1d9e   :  { %2177 = vadd.xlane.f32.xlu0 %v2176_v60 }
0x1e11   :  { %v2178_v61 = vpop.xlane.xlu0 %2177 }
0x1e12   :  { %v2179_v63 = vrot.slane %v2178_v61, 4 }
0x1e14   :  { %v2180_v0 = vadd.f32 %v2179_v63, %v2178_v61 }
0x1e16   :  { %v2181_v1 = vrot.slane %v2180_v0, 2 }
0x1e18   :  { %v2182_v2 = vadd.f32 %v2181_v1, %v2180_v0 }
0x1e1a   :  { %v2183_v3 = vrot.slane %v2182_v2, 1 }
0x1e1c   :  { %v2184_v4 = vadd.f32 %v2183_v3, %v2182_v2 }
0x1e1e   :  { %3502 = vpush %v2184_v4 }
0x1e4f   :  { %s3503_s20 = spop %3502 }
0x1e50   :  { %p2186_p12 = scmp.lt.f32.partialorder %s3503_s20, 1e-10 }
0x1e52   :  { %3542 = sst [smem:[#allocation4]] (%p2186_p12), %s3750_s21  ;;  %2193 = sbr.rel (%p2186_p12) target bundleno = 7774 (0x1e5e), region = 281 }
0x1e57   :  { %v2194_v5 = vmul.f32 0.8753523, %v2169_v42  ;;  %v2195_v6 = vmul.f32 0.8753523, %v2170_v43  ;;  %v2196_v7 = vmul.f32 0.8753523, %v2171_v56 }
0x1e58   :  { %2203 = vst [vmem:[#allocation2 + $0x10] sm:$0xff] %v2166_v37 }
0x1e59   :  { %v2197_v8 = vadd.f32 %v2194_v5, %v2166_v37  ;;  %v2198_v9 = vadd.f32 %v2195_v6, %v2167_v40  ;;  %v2199_v10 = vadd.f32 %v2196_v7, %v2168_v51  ;;  %2204 = vst [vmem:[#allocation2] sm:$0xff] %v2167_v40 }
0x1e5a   :  { %2205 = vst [vmem:[#allocation2 + $0x8] sm:$0xff] %v2168_v51 }
0x1e5b   :  { %2200 = vst [vmem:[#allocation3 + $0x8] sm:$0xff] %v2197_v8 }
0x1e5c   :  { %2201 = vst [vmem:[#allocation3] sm:$0xff] %v2198_v9 }
0x1e5d   :  { %2202 = vst [vmem:[#allocation3 + $0x10] sm:$0xff] %v2199_v10 }
0x1e5e PF:  { %s2206_s22 = sld [smem:[#allocation4]] }
0x1e64   :  { %p3233_p13 = scmp.ne.s32.totalorder %s2206_s22, 0 }
0x1e65   :  { %s3751_s24 = smov (!%p3233_p13), 1  }
0x1e66   :  { %2210 = sbr.rel (%p3233_p13) target bundleno = 8132 (0x1fc4), region = 285 }
0x1e6b   :  { %v2216_v13 = vld [vmem:[#allocation3 + $0x10] sm:$0xff]  ;;  %v2215_v14 = vld [vmem:[#allocation3] sm:$0xff]  ;;  %v2214_v15 = vld [vmem:[#allocation3 + $0x8] sm:$0xff] }
0x1e6c   :  { %2239 = vmatpush.msra.mxu0 %v2216_v13  ;;  %3401 = vmatpush.msra.mxu1 %v2216_v13  ;;  %v2211_v24 = vld [vmem:[#allocation2 + $0x10] sm:$0xff]  ;;  %v2212_v26 = vld [vmem:[#allocation2] sm:$0xff]  ;;  %v2213_v34 = vld [vmem:[#allocation2 + $0x8] sm:$0xff] }
0x1e6d   :  { %3402 = vmatpush.msra.mxu2 %v2216_v13 }
0x1e6e   :  { %2240 = vmatpush.msra.mxu0 %v2215_v14  ;;  %3403 = vmatpush.msra.mxu1 %v2215_v14 }
0x1e6f   :  { %3404 = vmatpush.msra.mxu2 %v2215_v14 }
0x1e70   :  { %2241 = vmatpush.msra.mxu0 %v2214_v15  ;;  %3405 = vmatpush.msra.mxu1 %v2214_v15 }
0x1e71   :  { %3406 = vmatpush.msra.mxu2 %v2214_v15  ;;  %3234 = vmatmul.msk.f32.vlgmr.msra.gmra.mxu0 %vm78_vm0, %v3838_v46 }
0x1e72   :  { %3235 = vmatmul.msk.f32.vlgmr.msra.gmra.mxu1 %vm78_vm0, %v3840_v47  ;;  %3236 = vmatmul.msk.f32.vlgmr.msra.gmra.mxu2 %vm78_vm0, %v3842_v48 }
0x1eee   :  { %v2243_v16 = vpop.f32.mrf.mxu0 }
0x1eef   :  { %v2244_v17 = vadd.f32 %v2243_v16, %v3844_v50  ;;  %v2246_v18 = vpop.f32.mrf.mxu1 }
0x1ef0   :  { %v2247_v19 = vadd.f32 %v2246_v18, %v3846_v52 }
0x1ef1   :  { %v2254_v20 = vmax.f32 %v3858_v59, %v2244_v17 }
0x1ef2   :  { %v2255_v21 = vmax.f32 %v3858_v59, %v2247_v19 }
0x1ef3   :  { %v2258_v22 = vmin.f32 %v3863_v62, %v2254_v20 }
0x1ef4   :  { %v2259_v23 = vmin.f32 %v3863_v62, %v2255_v21 }
0x1ef5   :  { %v2261_v25 = vsub.f32 %v2244_v17, %v2258_v22  ;;  %v2249_v27 = vpop.f32.mrf.mxu2 }
0x1ef6   :  { %v2262_v28 = vsub.f32 %v2247_v19, %v2259_v23  ;;  %v2250_v29 = vadd.f32 %v2249_v27, %v3848_v54 }
0x1ef7   :  { %v2264_v30 = vsub.f32 %v2261_v25, %v2211_v24 }
0x1ef8   :  { %v2265_v31 = vsub.f32 %v2262_v28, %v2212_v26  ;;  %v2256_v32 = vmax.f32 %v3858_v59, %v2250_v29 }
0x1ef9   :  { %v2267_v36 = vmul.f32 %v2264_v30, %v2264_v30 }
0x1efa   :  { %v2260_v33 = vmin.f32 %v3863_v62, %v2256_v32  ;;  %v2268_v37 = vmul.f32 %v2265_v31, %v2265_v31 }
0x1efc   :  { %v2263_v35 = vsub.f32 %v2250_v29, %v2260_v33  ;;  %v2270_v40 = vadd.f32 %v2268_v37, %v2267_v36 }
0x1efe   :  { %v2266_v38 = vsub.f32 %v2263_v35, %v2213_v34 }
0x1f00   :  { %v2269_v39 = vmul.f32 %v2266_v38, %v2266_v38 }
0x1f02   :  { %v2271_v41 = vadd.f32 %v2270_v40, %v2269_v39 }
0x1f04   :  { %2272 = vadd.xlane.f32.xlu0 %v2271_v41 }
0x1f77   :  { %v2273_v42 = vpop.xlane.xlu0 %2272 }
0x1f78   :  { %v2274_v43 = vrot.slane %v2273_v42, 4 }
0x1f7a   :  { %v2275_v44 = vadd.f32 %v2274_v43, %v2273_v42 }
0x1f7c   :  { %v2276_v45 = vrot.slane %v2275_v44, 2 }
0x1f7e   :  { %v2277_v49 = vadd.f32 %v2276_v45, %v2275_v44 }
0x1f80   :  { %v2278_v51 = vrot.slane %v2277_v49, 1 }
0x1f82   :  { %v2279_v53 = vadd.f32 %v2278_v51, %v2277_v49 }
0x1f84   :  { %3504 = vpush %v2279_v53 }
0x1fb5   :  { %s3505_s23 = spop %3504 }
0x1fb6   :  { %p2281_p0 = scmp.lt.f32.partialorder %s3505_s23, 1e-10 }
0x1fb8   :  { %3543 = sst [smem:[#allocation4]] (%p2281_p0), %s3751_s24  ;;  %2288 = sbr.rel (%p2281_p0) target bundleno = 8132 (0x1fc4), region = 293 }
0x1fbd   :  { %v2289_v55 = vmul.f32 0.8804243, %v2264_v30  ;;  %v2290_v56 = vmul.f32 0.8804243, %v2265_v31  ;;  %v2291_v57 = vmul.f32 0.8804243, %v2266_v38 }
0x1fbe   :  { %2298 = vst [vmem:[#allocation2 + $0x10] sm:$0xff] %v2261_v25 }
0x1fbf   :  { %v2292_v58 = vadd.f32 %v2289_v55, %v2261_v25  ;;  %v2293_v60 = vadd.f32 %v2290_v56, %v2262_v28  ;;  %v2294_v61 = vadd.f32 %v2291_v57, %v2263_v35  ;;  %2299 = vst [vmem:[#allocation2] sm:$0xff] %v2262_v28 }
0x1fc0   :  { %2300 = vst [vmem:[#allocation2 + $0x8] sm:$0xff] %v2263_v35 }
0x1fc1   :  { %2295 = vst [vmem:[#allocation3 + $0x8] sm:$0xff] %v2292_v58 }
0x1fc2   :  { %2296 = vst [vmem:[#allocation3] sm:$0xff] %v2293_v60 }
0x1fc3   :  { %2297 = vst [vmem:[#allocation3 + $0x10] sm:$0xff] %v2294_v61 }
0x1fc4 PF:  { %s2301_s25 = sld [smem:[#allocation4]] }
0x1fca   :  { %p3237_p1 = scmp.ne.s32.totalorder %s2301_s25, 0 }
0x1fcb   :  { %s3752_s29 = smov (!%p3237_p1), 1  }
0x1fcc   :  { %2305 = sbr.rel (%p3237_p1) target bundleno = 8490 (0x212a), region = 297 }
0x1fd1   :  { %v2311_v63 = vld [vmem:[#allocation3 + $0x10] sm:$0xff]  ;;  %v2310_v0 = vld [vmem:[#allocation3] sm:$0xff]  ;;  %v2309_v1 = vld [vmem:[#allocation3 + $0x8] sm:$0xff] }
0x1fd2   :  { %2334 = vmatpush.msra.mxu0 %v2311_v63  ;;  %3407 = vmatpush.msra.mxu1 %v2311_v63  ;;  %v2306_v10 = vld [vmem:[#allocation2 + $0x10] sm:$0xff]  ;;  %v2307_v14 = vld [vmem:[#allocation2] sm:$0xff]  ;;  %v2308_v22 = vld [vmem:[#allocation2 + $0x8] sm:$0xff] }
0x1fd3   :  { %3408 = vmatpush.msra.mxu2 %v2311_v63 }
0x1fd4   :  { %2335 = vmatpush.msra.mxu0 %v2310_v0  ;;  %3409 = vmatpush.msra.mxu1 %v2310_v0 }
0x1fd5   :  { %3410 = vmatpush.msra.mxu2 %v2310_v0 }
0x1fd6   :  { %2336 = vmatpush.msra.mxu0 %v2309_v1  ;;  %3411 = vmatpush.msra.mxu1 %v2309_v1 }
0x1fd7   :  { %3412 = vmatpush.msra.mxu2 %v2309_v1  ;;  %3238 = vmatmul.msk.f32.vlgmr.msra.gmra.mxu0 %vm78_vm0, %v3838_v46 }
0x1fd8   :  { %3239 = vmatmul.msk.f32.vlgmr.msra.gmra.mxu1 %vm78_vm0, %v3840_v47  ;;  %3240 = vmatmul.msk.f32.vlgmr.msra.gmra.mxu2 %vm78_vm0, %v3842_v48 }
0x2054   :  { %v2338_v2 = vpop.f32.mrf.mxu0 }
0x2055   :  { %v2339_v3 = vadd.f32 %v2338_v2, %v3844_v50  ;;  %v2341_v4 = vpop.f32.mrf.mxu1 }
0x2056   :  { %v2342_v5 = vadd.f32 %v2341_v4, %v3846_v52 }
0x2057   :  { %v2349_v6 = vmax.f32 %v3858_v59, %v2339_v3 }
0x2058   :  { %v2350_v7 = vmax.f32 %v3858_v59, %v2342_v5 }
0x2059   :  { %v2353_v8 = vmin.f32 %v3863_v62, %v2349_v6 }
0x205a   :  { %v2354_v9 = vmin.f32 %v3863_v62, %v2350_v7 }
0x205b   :  { %v2356_v13 = vsub.f32 %v2339_v3, %v2353_v8  ;;  %v2344_v15 = vpop.f32.mrf.mxu2 }
0x205c   :  { %v2357_v16 = vsub.f32 %v2342_v5, %v2354_v9  ;;  %v2345_v17 = vadd.f32 %v2344_v15, %v3848_v54 }
0x205d   :  { %v2359_v18 = vsub.f32 %v2356_v13, %v2306_v10 }
0x205e   :  { %v2360_v19 = vsub.f32 %v2357_v16, %v2307_v14  ;;  %v2351_v20 = vmax.f32 %v3858_v59, %v2345_v17 }
0x205f   :  { %v2362_v24 = vmul.f32 %v2359_v18, %v2359_v18 }
0x2060   :  { %v2355_v21 = vmin.f32 %v3863_v62, %v2351_v20  ;;  %v2363_v25 = vmul.f32 %v2360_v19, %v2360_v19 }
0x2062   :  { %v2358_v23 = vsub.f32 %v2345_v17, %v2355_v21  ;;  %v2365_v28 = vadd.f32 %v2363_v25, %v2362_v24 }
0x2064   :  { %v2361_v26 = vsub.f32 %v2358_v23, %v2308_v22 }
0x2066   :  { %v2364_v27 = vmul.f32 %v2361_v26, %v2361_v26 }
0x2068   :  { %v2366_v29 = vadd.f32 %v2365_v28, %v2364_v27 }
0x206a   :  { %2367 = vadd.xlane.f32.xlu0 %v2366_v29 }
0x20dd   :  { %v2368_v30 = vpop.xlane.xlu0 %2367 }
0x20de   :  { %v2369_v31 = vrot.slane %v2368_v30, 4 }
0x20e0   :  { %v2370_v32 = vadd.f32 %v2369_v31, %v2368_v30 }
0x20e2   :  { %v2371_v33 = vrot.slane %v2370_v32, 2 }
0x20e4   :  { %v2372_v34 = vadd.f32 %v2371_v33, %v2370_v32 }
0x20e6   :  { %v2373_v35 = vrot.slane %v2372_v34, 1 }
0x20e8   :  { %v2374_v36 = vadd.f32 %v2373_v35, %v2372_v34 }
0x20ea   :  { %3506 = vpush %v2374_v36 }
0x211b   :  { %s3507_s28 = spop %3506 }
0x211c   :  { %p2376_p2 = scmp.lt.f32.partialorder %s3507_s28, 1e-10 }
0x211e   :  { %3544 = sst [smem:[#allocation4]] (%p2376_p2), %s3752_s29  ;;  %2383 = sbr.rel (%p2376_p2) target bundleno = 8490 (0x212a), region = 305 }
0x2123   :  { %v2384_v37 = vmul.f32 0.8850959, %v2359_v18  ;;  %v2385_v38 = vmul.f32 0.8850959, %v2360_v19  ;;  %v2386_v39 = vmul.f32 0.8850959, %v2361_v26 }
0x2124   :  { %2393 = vst [vmem:[#allocation2 + $0x10] sm:$0xff] %v2356_v13 }
0x2125   :  { %v2387_v40 = vadd.f32 %v2384_v37, %v2356_v13  ;;  %v2388_v41 = vadd.f32 %v2385_v38, %v2357_v16  ;;  %v2389_v42 = vadd.f32 %v2386_v39, %v2358_v23  ;;  %2394 = vst [vmem:[#allocation2] sm:$0xff] %v2357_v16 }
0x2126   :  { %2395 = vst [vmem:[#allocation2 + $0x8] sm:$0xff] %v2358_v23 }
0x2127   :  { %2390 = vst [vmem:[#allocation3 + $0x8] sm:$0xff] %v2387_v40 }
0x2128   :  { %2391 = vst [vmem:[#allocation3] sm:$0xff] %v2388_v41 }
0x2129   :  { %2392 = vst [vmem:[#allocation3 + $0x10] sm:$0xff] %v2389_v42 }
0x212a PF:  { %s2396_s30 = sld [smem:[#allocation4]] }
0x2130   :  { %p3241_p3 = scmp.ne.s32.totalorder %s2396_s30, 0 }
0x2131   :  { %s3753_s1 = smov (!%p3241_p3), 1  }
0x2132   :  { %2400 = sbr.rel (%p3241_p3) target bundleno = 8848 (0x2290), region = 309 }
0x2137   :  { %v2406_v43 = vld [vmem:[#allocation3 + $0x10] sm:$0xff]  ;;  %v2405_v44 = vld [vmem:[#allocation3] sm:$0xff]  ;;  %v2404_v45 = vld [vmem:[#allocation3 + $0x8] sm:$0xff] }
0x2138   :  { %2429 = vmatpush.msra.mxu0 %v2406_v43  ;;  %3413 = vmatpush.msra.mxu1 %v2406_v43  ;;  %v2401_v61 = vld [vmem:[#allocation2 + $0x10] sm:$0xff]  ;;  %v2402_v0 = vld [vmem:[#allocation2] sm:$0xff]  ;;  %v2403_v8 = vld [vmem:[#allocation2 + $0x8] sm:$0xff] }
0x2139   :  { %3414 = vmatpush.msra.mxu2 %v2406_v43 }
0x213a   :  { %2430 = vmatpush.msra.mxu0 %v2405_v44  ;;  %3415 = vmatpush.msra.mxu1 %v2405_v44 }
0x213b   :  { %3416 = vmatpush.msra.mxu2 %v2405_v44 }
0x213c   :  { %2431 = vmatpush.msra.mxu0 %v2404_v45  ;;  %3417 = vmatpush.msra.mxu1 %v2404_v45 }
0x213d   :  { %3418 = vmatpush.msra.mxu2 %v2404_v45  ;;  %3242 = vmatmul.msk.f32.vlgmr.msra.gmra.mxu0 %vm78_vm0, %v3838_v46 }
0x213e   :  { %3243 = vmatmul.msk.f32.vlgmr.msra.gmra.mxu1 %vm78_vm0, %v3840_v47  ;;  %3244 = vmatmul.msk.f32.vlgmr.msra.gmra.mxu2 %vm78_vm0, %v3842_v48 }
0x21ba   :  { %v2433_v49 = vpop.f32.mrf.mxu0 }
0x21bb   :  { %v2434_v51 = vadd.f32 %v2433_v49, %v3844_v50  ;;  %v2436_v53 = vpop.f32.mrf.mxu1 }
0x21bc   :  { %v2437_v55 = vadd.f32 %v2436_v53, %v3846_v52 }
0x21bd   :  { %v2444_v56 = vmax.f32 %v3858_v59, %v2434_v51 }
0x21be   :  { %v2445_v57 = vmax.f32 %v3858_v59, %v2437_v55 }
0x21bf   :  { %v2448_v58 = vmin.f32 %v3863_v62, %v2444_v56 }
0x21c0   :  { %v2449_v60 = vmin.f32 %v3863_v62, %v2445_v57 }
0x21c1   :  { %v2451_v63 = vsub.f32 %v2434_v51, %v2448_v58  ;;  %v2439_v1 = vpop.f32.mrf.mxu2 }
0x21c2   :  { %v2452_v2 = vsub.f32 %v2437_v55, %v2449_v60  ;;  %v2440_v3 = vadd.f32 %v2439_v1, %v3848_v54 }
0x21c3   :  { %v2454_v4 = vsub.f32 %v2451_v63, %v2401_v61 }
0x21c4   :  { %v2455_v5 = vsub.f32 %v2452_v2, %v2402_v0  ;;  %v2446_v6 = vmax.f32 %v3858_v59, %v2440_v3 }
0x21c5   :  { %v2457_v10 = vmul.f32 %v2454_v4, %v2454_v4 }
0x21c6   :  { %v2450_v7 = vmin.f32 %v3863_v62, %v2446_v6  ;;  %v2458_v13 = vmul.f32 %v2455_v5, %v2455_v5 }
0x21c8   :  { %v2453_v9 = vsub.f32 %v2440_v3, %v2450_v7  ;;  %v2460_v16 = vadd.f32 %v2458_v13, %v2457_v10 }
0x21ca   :  { %v2456_v14 = vsub.f32 %v2453_v9, %v2403_v8 }
0x21cc   :  { %v2459_v15 = vmul.f32 %v2456_v14, %v2456_v14 }
0x21ce   :  { %v2461_v17 = vadd.f32 %v2460_v16, %v2459_v15 }
0x21d0   :  { %2462 = vadd.xlane.f32.xlu0 %v2461_v17 }
0x2243   :  { %v2463_v18 = vpop.xlane.xlu0 %2462 }
0x2244   :  { %v2464_v19 = vrot.slane %v2463_v18, 4 }
0x2246   :  { %v2465_v20 = vadd.f32 %v2464_v19, %v2463_v18 }
0x2248   :  { %v2466_v21 = vrot.slane %v2465_v20, 2 }
0x224a   :  { %v2467_v22 = vadd.f32 %v2466_v21, %v2465_v20 }
0x224c   :  { %v2468_v23 = vrot.slane %v2467_v22, 1 }
0x224e   :  { %v2469_v24 = vadd.f32 %v2468_v23, %v2467_v22 }
0x2250   :  { %3508 = vpush %v2469_v24 }
0x2281   :  { %s3509_s6 = spop %3508 }
0x2282   :  { %p2471_p4 = scmp.lt.f32.partialorder %s3509_s6, 1e-10 }
0x2284   :  { %3545 = sst [smem:[#allocation4]] (%p2471_p4), %s3753_s1  ;;  %2478 = sbr.rel (%p2471_p4) target bundleno = 8848 (0x2290), region = 317 }
0x2289   :  { %v2479_v25 = vmul.f32 0.889413, %v2454_v4  ;;  %v2480_v26 = vmul.f32 0.889413, %v2455_v5  ;;  %v2481_v27 = vmul.f32 0.889413, %v2456_v14 }
0x228a   :  { %2488 = vst [vmem:[#allocation2 + $0x10] sm:$0xff] %v2451_v63 }
0x228b   :  { %v2482_v28 = vadd.f32 %v2479_v25, %v2451_v63  ;;  %v2483_v29 = vadd.f32 %v2480_v26, %v2452_v2  ;;  %v2484_v30 = vadd.f32 %v2481_v27, %v2453_v9  ;;  %2489 = vst [vmem:[#allocation2] sm:$0xff] %v2452_v2 }
0x228c   :  { %2490 = vst [vmem:[#allocation2 + $0x8] sm:$0xff] %v2453_v9 }
0x228d   :  { %2485 = vst [vmem:[#allocation3 + $0x8] sm:$0xff] %v2482_v28 }
0x228e   :  { %2486 = vst [vmem:[#allocation3] sm:$0xff] %v2483_v29 }
0x228f   :  { %2487 = vst [vmem:[#allocation3 + $0x10] sm:$0xff] %v2484_v30 }
0x2290 PF:  { %s2491_s0 = sld [smem:[#allocation4]] }
0x2296   :  { %p3245_p5 = scmp.ne.s32.totalorder %s2491_s0, 0 }
0x2297   :  { %s3754_s8 = smov (!%p3245_p5), 1  }
0x2298   :  { %2495 = sbr.rel (%p3245_p5) target bundleno = 9206 (0x23f6), region = 321 }
0x229d   :  { %v2501_v31 = vld [vmem:[#allocation3 + $0x10] sm:$0xff]  ;;  %v2500_v32 = vld [vmem:[#allocation3] sm:$0xff]  ;;  %v2499_v33 = vld [vmem:[#allocation3 + $0x8] sm:$0xff] }
0x229e   :  { %2524 = vmatpush.msra.mxu0 %v2501_v31  ;;  %3419 = vmatpush.msra.mxu1 %v2501_v31  ;;  %v2496_v42 = vld [vmem:[#allocation2 + $0x10] sm:$0xff]  ;;  %v2497_v44 = vld [vmem:[#allocation2] sm:$0xff]  ;;  %v2498_v58 = vld [vmem:[#allocation2 + $0x8] sm:$0xff] }
0x229f   :  { %3420 = vmatpush.msra.mxu2 %v2501_v31 }
0x22a0   :  { %2525 = vmatpush.msra.mxu0 %v2500_v32  ;;  %3421 = vmatpush.msra.mxu1 %v2500_v32 }
0x22a1   :  { %3422 = vmatpush.msra.mxu2 %v2500_v32 }
0x22a2   :  { %2526 = vmatpush.msra.mxu0 %v2499_v33  ;;  %3423 = vmatpush.msra.mxu1 %v2499_v33 }
0x22a3   :  { %3424 = vmatpush.msra.mxu2 %v2499_v33  ;;  %3246 = vmatmul.msk.f32.vlgmr.msra.gmra.mxu0 %vm78_vm0, %v3838_v46 }
0x22a4   :  { %3247 = vmatmul.msk.f32.vlgmr.msra.gmra.mxu1 %vm78_vm0, %v3840_v47  ;;  %3248 = vmatmul.msk.f32.vlgmr.msra.gmra.mxu2 %vm78_vm0, %v3842_v48 }
0x2320   :  { %v2528_v34 = vpop.f32.mrf.mxu0 }
0x2321   :  { %v2529_v35 = vadd.f32 %v2528_v34, %v3844_v50  ;;  %v2531_v36 = vpop.f32.mrf.mxu1 }
0x2322   :  { %v2532_v37 = vadd.f32 %v2531_v36, %v3846_v52 }
0x2323   :  { %v2539_v38 = vmax.f32 %v3858_v59, %v2529_v35 }
0x2324   :  { %v2540_v39 = vmax.f32 %v3858_v59, %v2532_v37 }
0x2325   :  { %v2543_v40 = vmin.f32 %v3863_v62, %v2539_v38 }
0x2326   :  { %v2544_v41 = vmin.f32 %v3863_v62, %v2540_v39 }
0x2327   :  { %v2546_v43 = vsub.f32 %v2529_v35, %v2543_v40  ;;  %v2534_v45 = vpop.f32.mrf.mxu2 }
0x2328   :  { %v2547_v49 = vsub.f32 %v2532_v37, %v2544_v41  ;;  %v2535_v51 = vadd.f32 %v2534_v45, %v3848_v54 }
0x2329   :  { %v2549_v53 = vsub.f32 %v2546_v43, %v2496_v42 }
0x232a   :  { %v2550_v55 = vsub.f32 %v2547_v49, %v2497_v44  ;;  %v2541_v56 = vmax.f32 %v3858_v59, %v2535_v51 }
0x232b   :  { %v2552_v61 = vmul.f32 %v2549_v53, %v2549_v53 }
0x232c   :  { %v2545_v57 = vmin.f32 %v3863_v62, %v2541_v56  ;;  %v2553_v63 = vmul.f32 %v2550_v55, %v2550_v55 }
0x232e   :  { %v2548_v60 = vsub.f32 %v2535_v51, %v2545_v57  ;;  %v2555_v2 = vadd.f32 %v2553_v63, %v2552_v61 }
0x2330   :  { %v2551_v0 = vsub.f32 %v2548_v60, %v2498_v58 }
0x2332   :  { %v2554_v1 = vmul.f32 %v2551_v0, %v2551_v0 }
0x2334   :  { %v2556_v3 = vadd.f32 %v2555_v2, %v2554_v1 }
0x2336   :  { %2557 = vadd.xlane.f32.xlu0 %v2556_v3 }
0x23a9   :  { %v2558_v4 = vpop.xlane.xlu0 %2557 }
0x23aa   :  { %v2559_v5 = vrot.slane %v2558_v4, 4 }
0x23ac   :  { %v2560_v6 = vadd.f32 %v2559_v5, %v2558_v4 }
0x23ae   :  { %v2561_v7 = vrot.slane %v2560_v6, 2 }
0x23b0   :  { %v2562_v8 = vadd.f32 %v2561_v7, %v2560_v6 }
0x23b2   :  { %v2563_v9 = vrot.slane %v2562_v8, 1 }
0x23b4   :  { %v2564_v10 = vadd.f32 %v2563_v9, %v2562_v8 }
0x23b6   :  { %3510 = vpush %v2564_v10 }
0x23e7   :  { %s3511_s7 = spop %3510 }
0x23e8   :  { %p2566_p6 = scmp.lt.f32.partialorder %s3511_s7, 1e-10 }
0x23ea   :  { %3546 = sst [smem:[#allocation4]] (%p2566_p6), %s3754_s8  ;;  %2573 = sbr.rel (%p2566_p6) target bundleno = 9206 (0x23f6), region = 329 }
0x23ef   :  { %v2574_v13 = vmul.f32 0.89341474, %v2549_v53  ;;  %v2575_v14 = vmul.f32 0.89341474, %v2550_v55  ;;  %v2576_v15 = vmul.f32 0.89341474, %v2551_v0 }
0x23f0   :  { %2583 = vst [vmem:[#allocation2 + $0x10] sm:$0xff] %v2546_v43 }
0x23f1   :  { %v2577_v16 = vadd.f32 %v2574_v13, %v2546_v43  ;;  %v2578_v17 = vadd.f32 %v2575_v14, %v2547_v49  ;;  %v2579_v18 = vadd.f32 %v2576_v15, %v2548_v60  ;;  %2584 = vst [vmem:[#allocation2] sm:$0xff] %v2547_v49 }
0x23f2   :  { %2585 = vst [vmem:[#allocation2 + $0x8] sm:$0xff] %v2548_v60 }
0x23f3   :  { %2580 = vst [vmem:[#allocation3 + $0x8] sm:$0xff] %v2577_v16 }
0x23f4   :  { %2581 = vst [vmem:[#allocation3] sm:$0xff] %v2578_v17 }
0x23f5   :  { %2582 = vst [vmem:[#allocation3 + $0x10] sm:$0xff] %v2579_v18 }
0x23f6 PF:  { %s2586_s3 = sld [smem:[#allocation4]] }
0x23fc   :  { %p3249_p7 = scmp.ne.s32.totalorder %s2586_s3, 0 }
0x23fd   :  { %s3755_s10 = smov (!%p3249_p7), 1  }
0x23fe   :  { %2590 = sbr.rel (%p3249_p7) target bundleno = 9564 (0x255c), region = 333 }
0x2403   :  { %v2596_v19 = vld [vmem:[#allocation3 + $0x10] sm:$0xff]  ;;  %v2595_v20 = vld [vmem:[#allocation3] sm:$0xff]  ;;  %v2594_v21 = vld [vmem:[#allocation3 + $0x8] sm:$0xff] }
0x2404   :  { %2619 = vmatpush.msra.mxu0 %v2596_v19  ;;  %3425 = vmatpush.msra.mxu1 %v2596_v19  ;;  %v2591_v30 = vld [vmem:[#allocation2 + $0x10] sm:$0xff]  ;;  %v2592_v32 = vld [vmem:[#allocation2] sm:$0xff]  ;;  %v2593_v40 = vld [vmem:[#allocation2 + $0x8] sm:$0xff] }
0x2405   :  { %3426 = vmatpush.msra.mxu2 %v2596_v19 }
0x2406   :  { %2620 = vmatpush.msra.mxu0 %v2595_v20  ;;  %3427 = vmatpush.msra.mxu1 %v2595_v20 }
0x2407   :  { %3428 = vmatpush.msra.mxu2 %v2595_v20 }
0x2408   :  { %2621 = vmatpush.msra.mxu0 %v2594_v21  ;;  %3429 = vmatpush.msra.mxu1 %v2594_v21 }
0x2409   :  { %3430 = vmatpush.msra.mxu2 %v2594_v21  ;;  %3250 = vmatmul.msk.f32.vlgmr.msra.gmra.mxu0 %vm78_vm0, %v3838_v46 }
0x240a   :  { %3251 = vmatmul.msk.f32.vlgmr.msra.gmra.mxu1 %vm78_vm0, %v3840_v47  ;;  %3252 = vmatmul.msk.f32.vlgmr.msra.gmra.mxu2 %vm78_vm0, %v3842_v48 }
0x2486   :  { %v2623_v22 = vpop.f32.mrf.mxu0 }
0x2487   :  { %v2624_v23 = vadd.f32 %v2623_v22, %v3844_v50  ;;  %v2626_v24 = vpop.f32.mrf.mxu1 }
0x2488   :  { %v2627_v25 = vadd.f32 %v2626_v24, %v3846_v52 }
0x2489   :  { %v2634_v26 = vmax.f32 %v3858_v59, %v2624_v23 }
0x248a   :  { %v2635_v27 = vmax.f32 %v3858_v59, %v2627_v25 }
0x248b   :  { %v2638_v28 = vmin.f32 %v3863_v62, %v2634_v26 }
0x248c   :  { %v2639_v29 = vmin.f32 %v3863_v62, %v2635_v27 }
0x248d   :  { %v2641_v31 = vsub.f32 %v2624_v23, %v2638_v28  ;;  %v2629_v33 = vpop.f32.mrf.mxu2 }
0x248e   :  { %v2642_v34 = vsub.f32 %v2627_v25, %v2639_v29  ;;  %v2630_v35 = vadd.f32 %v2629_v33, %v3848_v54 }
0x248f   :  { %v2644_v36 = vsub.f32 %v2641_v31, %v2591_v30 }
0x2490   :  { %v2645_v37 = vsub.f32 %v2642_v34, %v2592_v32  ;;  %v2636_v38 = vmax.f32 %v3858_v59, %v2630_v35 }
0x2491   :  { %v2647_v42 = vmul.f32 %v2644_v36, %v2644_v36 }
0x2492   :  { %v2640_v39 = vmin.f32 %v3863_v62, %v2636_v38  ;;  %v2648_v43 = vmul.f32 %v2645_v37, %v2645_v37 }
0x2494   :  { %v2643_v41 = vsub.f32 %v2630_v35, %v2640_v39  ;;  %v2650_v49 = vadd.f32 %v2648_v43, %v2647_v42 }
0x2496   :  { %v2646_v44 = vsub.f32 %v2643_v41, %v2593_v40 }
0x2498   :  { %v2649_v45 = vmul.f32 %v2646_v44, %v2646_v44 }
0x249a   :  { %v2651_v51 = vadd.f32 %v2650_v49, %v2649_v45 }
0x249c   :  { %2652 = vadd.xlane.f32.xlu0 %v2651_v51 }
0x250f   :  { %v2653_v53 = vpop.xlane.xlu0 %2652 }
0x2510   :  { %v2654_v55 = vrot.slane %v2653_v53, 4 }
0x2512   :  { %v2655_v56 = vadd.f32 %v2654_v55, %v2653_v53 }
0x2514   :  { %v2656_v57 = vrot.slane %v2655_v56, 2 }
0x2516   :  { %v2657_v58 = vadd.f32 %v2656_v57, %v2655_v56 }
0x2518   :  { %v2658_v60 = vrot.slane %v2657_v58, 1 }
0x251a   :  { %v2659_v61 = vadd.f32 %v2658_v60, %v2657_v58 }
0x251c   :  { %3512 = vpush %v2659_v61 }
0x254d   :  { %s3513_s9 = spop %3512 }
0x254e   :  { %p2661_p8 = scmp.lt.f32.partialorder %s3513_s9, 1e-10 }
0x2550   :  { %3547 = sst [smem:[#allocation4]] (%p2661_p8), %s3755_s10  ;;  %2668 = sbr.rel (%p2661_p8) target bundleno = 9564 (0x255c), region = 341 }
0x2555   :  { %v2669_v63 = vmul.f32 0.89713454, %v2644_v36  ;;  %v2670_v0 = vmul.f32 0.89713454, %v2645_v37  ;;  %v2671_v1 = vmul.f32 0.89713454, %v2646_v44 }
0x2556   :  { %2678 = vst [vmem:[#allocation2 + $0x10] sm:$0xff] %v2641_v31 }
0x2557   :  { %v2672_v2 = vadd.f32 %v2669_v63, %v2641_v31  ;;  %v2673_v3 = vadd.f32 %v2670_v0, %v2642_v34  ;;  %v2674_v4 = vadd.f32 %v2671_v1, %v2643_v41  ;;  %2679 = vst [vmem:[#allocation2] sm:$0xff] %v2642_v34 }
0x2558   :  { %2680 = vst [vmem:[#allocation2 + $0x8] sm:$0xff] %v2643_v41 }
0x2559   :  { %2675 = vst [vmem:[#allocation3 + $0x8] sm:$0xff] %v2672_v2 }
0x255a   :  { %2676 = vst [vmem:[#allocation3] sm:$0xff] %v2673_v3 }
0x255b   :  { %2677 = vst [vmem:[#allocation3 + $0x10] sm:$0xff] %v2674_v4 }
0x255c PF:  { %s2681_s11 = sld [smem:[#allocation4]] }
0x2562   :  { %p3253_p9 = scmp.ne.s32.totalorder %s2681_s11, 0 }
0x2563   :  { %s3756_s13 = smov (!%p3253_p9), 1  }
0x2564   :  { %2685 = sbr.rel (%p3253_p9) target bundleno = 9922 (0x26c2), region = 345 }
0x2569   :  { %v2691_v5 = vld [vmem:[#allocation3 + $0x10] sm:$0xff]  ;;  %v2690_v6 = vld [vmem:[#allocation3] sm:$0xff]  ;;  %v2689_v7 = vld [vmem:[#allocation3 + $0x8] sm:$0xff] }
0x256a   :  { %2714 = vmatpush.msra.mxu0 %v2691_v5  ;;  %3431 = vmatpush.msra.mxu1 %v2691_v5  ;;  %v2686_v18 = vld [vmem:[#allocation2 + $0x10] sm:$0xff]  ;;  %v2687_v20 = vld [vmem:[#allocation2] sm:$0xff]  ;;  %v2688_v28 = vld [vmem:[#allocation2 + $0x8] sm:$0xff] }
0x256b   :  { %3432 = vmatpush.msra.mxu2 %v2691_v5 }
0x256c   :  { %2715 = vmatpush.msra.mxu0 %v2690_v6  ;;  %3433 = vmatpush.msra.mxu1 %v2690_v6 }
0x256d   :  { %3434 = vmatpush.msra.mxu2 %v2690_v6 }
0x256e   :  { %2716 = vmatpush.msra.mxu0 %v2689_v7  ;;  %3435 = vmatpush.msra.mxu1 %v2689_v7 }
0x256f   :  { %3436 = vmatpush.msra.mxu2 %v2689_v7  ;;  %3254 = vmatmul.msk.f32.vlgmr.msra.gmra.mxu0 %vm78_vm0, %v3838_v46 }
0x2570   :  { %3255 = vmatmul.msk.f32.vlgmr.msra.gmra.mxu1 %vm78_vm0, %v3840_v47  ;;  %3256 = vmatmul.msk.f32.vlgmr.msra.gmra.mxu2 %vm78_vm0, %v3842_v48 }
0x25ec   :  { %v2718_v8 = vpop.f32.mrf.mxu0 }
0x25ed   :  { %v2719_v9 = vadd.f32 %v2718_v8, %v3844_v50  ;;  %v2721_v10 = vpop.f32.mrf.mxu1 }
0x25ee   :  { %v2722_v13 = vadd.f32 %v2721_v10, %v3846_v52 }
0x25ef   :  { %v2729_v14 = vmax.f32 %v3858_v59, %v2719_v9 }
0x25f0   :  { %v2730_v15 = vmax.f32 %v3858_v59, %v2722_v13 }
0x25f1   :  { %v2733_v16 = vmin.f32 %v3863_v62, %v2729_v14 }
0x25f2   :  { %v2734_v17 = vmin.f32 %v3863_v62, %v2730_v15 }
0x25f3   :  { %v2736_v19 = vsub.f32 %v2719_v9, %v2733_v16  ;;  %v2724_v21 = vpop.f32.mrf.mxu2 }
0x25f4   :  { %v2737_v22 = vsub.f32 %v2722_v13, %v2734_v17  ;;  %v2725_v23 = vadd.f32 %v2724_v21, %v3848_v54 }
0x25f5   :  { %v2739_v24 = vsub.f32 %v2736_v19, %v2686_v18 }
0x25f6   :  { %v2740_v25 = vsub.f32 %v2737_v22, %v2687_v20  ;;  %v2731_v26 = vmax.f32 %v3858_v59, %v2725_v23 }
0x25f7   :  { %v2742_v30 = vmul.f32 %v2739_v24, %v2739_v24 }
0x25f8   :  { %v2735_v27 = vmin.f32 %v3863_v62, %v2731_v26  ;;  %v2743_v31 = vmul.f32 %v2740_v25, %v2740_v25 }
0x25fa   :  { %v2738_v29 = vsub.f32 %v2725_v23, %v2735_v27  ;;  %v2745_v34 = vadd.f32 %v2743_v31, %v2742_v30 }
0x25fc   :  { %v2741_v32 = vsub.f32 %v2738_v29, %v2688_v28 }
0x25fe   :  { %v2744_v33 = vmul.f32 %v2741_v32, %v2741_v32 }
0x2600   :  { %v2746_v35 = vadd.f32 %v2745_v34, %v2744_v33 }
0x2602   :  { %2747 = vadd.xlane.f32.xlu0 %v2746_v35 }
0x2675   :  { %v2748_v36 = vpop.xlane.xlu0 %2747 }
0x2676   :  { %v2749_v37 = vrot.slane %v2748_v36, 4 }
0x2678   :  { %v2750_v38 = vadd.f32 %v2749_v37, %v2748_v36 }
0x267a   :  { %v2751_v39 = vrot.slane %v2750_v38, 2 }
0x267c   :  { %v2752_v40 = vadd.f32 %v2751_v39, %v2750_v38 }
0x267e   :  { %v2753_v41 = vrot.slane %v2752_v40, 1 }
0x2680   :  { %v2754_v42 = vadd.f32 %v2753_v41, %v2752_v40 }
0x2682   :  { %3514 = vpush %v2754_v42 }
0x26b3   :  { %s3515_s12 = spop %3514 }
0x26b4   :  { %p2756_p10 = scmp.lt.f32.partialorder %s3515_s12, 1e-10 }
0x26b6   :  { %3548 = sst [smem:[#allocation4]] (%p2756_p10), %s3756_s13  ;;  %2763 = sbr.rel (%p2756_p10) target bundleno = 9922 (0x26c2), region = 353 }
0x26bb   :  { %v2764_v43 = vmul.f32 0.90060145, %v2739_v24  ;;  %v2765_v44 = vmul.f32 0.90060145, %v2740_v25  ;;  %v2766_v45 = vmul.f32 0.90060145, %v2741_v32 }
0x26bc   :  { %2773 = vst [vmem:[#allocation2 + $0x10] sm:$0xff] %v2736_v19 }
0x26bd   :  { %v2767_v49 = vadd.f32 %v2764_v43, %v2736_v19  ;;  %v2768_v51 = vadd.f32 %v2765_v44, %v2737_v22  ;;  %v2769_v53 = vadd.f32 %v2766_v45, %v2738_v29  ;;  %2774 = vst [vmem:[#allocation2] sm:$0xff] %v2737_v22 }
0x26be   :  { %2775 = vst [vmem:[#allocation2 + $0x8] sm:$0xff] %v2738_v29 }
0x26bf   :  { %2770 = vst [vmem:[#allocation3 + $0x8] sm:$0xff] %v2767_v49 }
0x26c0   :  { %2771 = vst [vmem:[#allocation3] sm:$0xff] %v2768_v51 }
0x26c1   :  { %2772 = vst [vmem:[#allocation3 + $0x10] sm:$0xff] %v2769_v53 }
0x26c2 PF:  { %s2776_s14 = sld [smem:[#allocation4]] }
0x26c8   :  { %p3257_p11 = scmp.ne.s32.totalorder %s2776_s14, 0 }
0x26c9   :  { %s3757_s16 = smov (!%p3257_p11), 1  }
0x26ca   :  { %2780 = sbr.rel (%p3257_p11) target bundleno = 10280 (0x2828), region = 357 }
0x26cf   :  { %v2786_v55 = vld [vmem:[#allocation3 + $0x10] sm:$0xff]  ;;  %v2785_v56 = vld [vmem:[#allocation3] sm:$0xff]  ;;  %v2784_v57 = vld [vmem:[#allocation3 + $0x8] sm:$0xff] }
0x26d0   :  { %2809 = vmatpush.msra.mxu0 %v2786_v55  ;;  %3437 = vmatpush.msra.mxu1 %v2786_v55  ;;  %v2781_v4 = vld [vmem:[#allocation2 + $0x10] sm:$0xff]  ;;  %v2782_v6 = vld [vmem:[#allocation2] sm:$0xff]  ;;  %v2783_v16 = vld [vmem:[#allocation2 + $0x8] sm:$0xff] }
0x26d1   :  { %3438 = vmatpush.msra.mxu2 %v2786_v55 }
0x26d2   :  { %2810 = vmatpush.msra.mxu0 %v2785_v56  ;;  %3439 = vmatpush.msra.mxu1 %v2785_v56 }
0x26d3   :  { %3440 = vmatpush.msra.mxu2 %v2785_v56 }
0x26d4   :  { %2811 = vmatpush.msra.mxu0 %v2784_v57  ;;  %3441 = vmatpush.msra.mxu1 %v2784_v57 }
0x26d5   :  { %3442 = vmatpush.msra.mxu2 %v2784_v57  ;;  %3258 = vmatmul.msk.f32.vlgmr.msra.gmra.mxu0 %vm78_vm0, %v3838_v46 }
0x26d6   :  { %3259 = vmatmul.msk.f32.vlgmr.msra.gmra.mxu1 %vm78_vm0, %v3840_v47  ;;  %3260 = vmatmul.msk.f32.vlgmr.msra.gmra.mxu2 %vm78_vm0, %v3842_v48 }
0x2752   :  { %v2813_v58 = vpop.f32.mrf.mxu0 }
0x2753   :  { %v2814_v60 = vadd.f32 %v2813_v58, %v3844_v50  ;;  %v2816_v61 = vpop.f32.mrf.mxu1 }
0x2754   :  { %v2817_v63 = vadd.f32 %v2816_v61, %v3846_v52 }
0x2755   :  { %v2824_v0 = vmax.f32 %v3858_v59, %v2814_v60 }
0x2756   :  { %v2825_v1 = vmax.f32 %v3858_v59, %v2817_v63 }
0x2757   :  { %v2828_v2 = vmin.f32 %v3863_v62, %v2824_v0 }
0x2758   :  { %v2829_v3 = vmin.f32 %v3863_v62, %v2825_v1 }
0x2759   :  { %v2831_v5 = vsub.f32 %v2814_v60, %v2828_v2  ;;  %v2819_v7 = vpop.f32.mrf.mxu2 }
0x275a   :  { %v2832_v8 = vsub.f32 %v2817_v63, %v2829_v3  ;;  %v2820_v9 = vadd.f32 %v2819_v7, %v3848_v54 }
0x275b   :  { %v2834_v10 = vsub.f32 %v2831_v5, %v2781_v4 }
0x275c   :  { %v2835_v13 = vsub.f32 %v2832_v8, %v2782_v6  ;;  %v2826_v14 = vmax.f32 %v3858_v59, %v2820_v9 }
0x275d   :  { %v2837_v18 = vmul.f32 %v2834_v10, %v2834_v10 }
0x275e   :  { %v2830_v15 = vmin.f32 %v3863_v62, %v2826_v14  ;;  %v2838_v19 = vmul.f32 %v2835_v13, %v2835_v13 }
0x2760   :  { %v2833_v17 = vsub.f32 %v2820_v9, %v2830_v15  ;;  %v2840_v22 = vadd.f32 %v2838_v19, %v2837_v18 }
0x2762   :  { %v2836_v20 = vsub.f32 %v2833_v17, %v2783_v16 }
0x2764   :  { %v2839_v21 = vmul.f32 %v2836_v20, %v2836_v20 }
0x2766   :  { %v2841_v23 = vadd.f32 %v2840_v22, %v2839_v21 }
0x2768   :  { %2842 = vadd.xlane.f32.xlu0 %v2841_v23 }
0x27db   :  { %v2843_v24 = vpop.xlane.xlu0 %2842 }
0x27dc   :  { %v2844_v25 = vrot.slane %v2843_v24, 4 }
0x27de   :  { %v2845_v26 = vadd.f32 %v2844_v25, %v2843_v24 }
0x27e0   :  { %v2846_v27 = vrot.slane %v2845_v26, 2 }
0x27e2   :  { %v2847_v28 = vadd.f32 %v2846_v27, %v2845_v26 }
0x27e4   :  { %v2848_v29 = vrot.slane %v2847_v28, 1 }
0x27e6   :  { %v2849_v30 = vadd.f32 %v2848_v29, %v2847_v28 }
0x27e8   :  { %3516 = vpush %v2849_v30 }
0x2819   :  { %s3517_s15 = spop %3516 }
0x281a   :  { %p2851_p12 = scmp.lt.f32.partialorder %s3517_s15, 1e-10 }
0x281c   :  { %3549 = sst [smem:[#allocation4]] (%p2851_p12), %s3757_s16  ;;  %2858 = sbr.rel (%p2851_p12) target bundleno = 10280 (0x2828), region = 365 }
0x2821   :  { %v2859_v31 = vmul.f32 0.9038404, %v2834_v10  ;;  %v2860_v32 = vmul.f32 0.9038404, %v2835_v13  ;;  %v2861_v33 = vmul.f32 0.9038404, %v2836_v20 }
0x2822   :  { %2868 = vst [vmem:[#allocation2 + $0x10] sm:$0xff] %v2831_v5 }
0x2823   :  { %v2862_v34 = vadd.f32 %v2859_v31, %v2831_v5  ;;  %v2863_v35 = vadd.f32 %v2860_v32, %v2832_v8  ;;  %v2864_v36 = vadd.f32 %v2861_v33, %v2833_v17  ;;  %2869 = vst [vmem:[#allocation2] sm:$0xff] %v2832_v8 }
0x2824   :  { %2870 = vst [vmem:[#allocation2 + $0x8] sm:$0xff] %v2833_v17 }
0x2825   :  { %2865 = vst [vmem:[#allocation3 + $0x8] sm:$0xff] %v2862_v34 }
0x2826   :  { %2866 = vst [vmem:[#allocation3] sm:$0xff] %v2863_v35 }
0x2827   :  { %2867 = vst [vmem:[#allocation3 + $0x10] sm:$0xff] %v2864_v36 }
0x2828 PF:  { %s2871_s17 = sld [smem:[#allocation4]] }
0x282e   :  { %p3261_p13 = scmp.ne.s32.totalorder %s2871_s17, 0 }
0x282f   :  { %s3758_s19 = smov (!%p3261_p13), 1  }
0x2830   :  { %2875 = sbr.rel (%p3261_p13) target bundleno = 10638 (0x298e), region = 369 }
0x2835   :  { %v2881_v37 = vld [vmem:[#allocation3 + $0x10] sm:$0xff]  ;;  %v2880_v38 = vld [vmem:[#allocation3] sm:$0xff]  ;;  %v2879_v39 = vld [vmem:[#allocation3 + $0x8] sm:$0xff] }
0x2836   :  { %2904 = vmatpush.msra.mxu0 %v2881_v37  ;;  %3443 = vmatpush.msra.mxu1 %v2881_v37  ;;  %v2876_v53 = vld [vmem:[#allocation2 + $0x10] sm:$0xff]  ;;  %v2877_v56 = vld [vmem:[#allocation2] sm:$0xff]  ;;  %v2878_v2 = vld [vmem:[#allocation2 + $0x8] sm:$0xff] }
0x2837   :  { %3444 = vmatpush.msra.mxu2 %v2881_v37 }
0x2838   :  { %2905 = vmatpush.msra.mxu0 %v2880_v38  ;;  %3445 = vmatpush.msra.mxu1 %v2880_v38 }
0x2839   :  { %3446 = vmatpush.msra.mxu2 %v2880_v38 }
0x283a   :  { %2906 = vmatpush.msra.mxu0 %v2879_v39  ;;  %3447 = vmatpush.msra.mxu1 %v2879_v39 }
0x283b   :  { %3448 = vmatpush.msra.mxu2 %v2879_v39  ;;  %3262 = vmatmul.msk.f32.vlgmr.msra.gmra.mxu0 %vm78_vm0, %v3838_v46 }
0x283c   :  { %3263 = vmatmul.msk.f32.vlgmr.msra.gmra.mxu1 %vm78_vm0, %v3840_v47  ;;  %3264 = vmatmul.msk.f32.vlgmr.msra.gmra.mxu2 %vm78_vm0, %v3842_v48 }
0x28b8   :  { %v2908_v40 = vpop.f32.mrf.mxu0 }
0x28b9   :  { %v2909_v41 = vadd.f32 %v2908_v40, %v3844_v50  ;;  %v2911_v42 = vpop.f32.mrf.mxu1 }
0x28ba   :  { %v2912_v43 = vadd.f32 %v2911_v42, %v3846_v52 }
0x28bb   :  { %v2919_v44 = vmax.f32 %v3858_v59, %v2909_v41 }
0x28bc   :  { %v2920_v45 = vmax.f32 %v3858_v59, %v2912_v43 }
0x28bd   :  { %v2923_v49 = vmin.f32 %v3863_v62, %v2919_v44 }
0x28be   :  { %v2924_v51 = vmin.f32 %v3863_v62, %v2920_v45 }
0x28bf   :  { %v2926_v55 = vsub.f32 %v2909_v41, %v2923_v49  ;;  %v2914_v57 = vpop.f32.mrf.mxu2 }
0x28c0   :  { %v2927_v58 = vsub.f32 %v2912_v43, %v2924_v51  ;;  %v2915_v60 = vadd.f32 %v2914_v57, %v3848_v54 }
0x28c1   :  { %v2929_v61 = vsub.f32 %v2926_v55, %v2876_v53 }
0x28c2   :  { %v2930_v63 = vsub.f32 %v2927_v58, %v2877_v56  ;;  %v2921_v0 = vmax.f32 %v3858_v59, %v2915_v60 }
0x28c3   :  { %v2932_v4 = vmul.f32 %v2929_v61, %v2929_v61 }
0x28c4   :  { %v2925_v1 = vmin.f32 %v3863_v62, %v2921_v0  ;;  %v2933_v5 = vmul.f32 %v2930_v63, %v2930_v63 }
0x28c6   :  { %v2928_v3 = vsub.f32 %v2915_v60, %v2925_v1  ;;  %v2935_v8 = vadd.f32 %v2933_v5, %v2932_v4 }
0x28c8   :  { %v2931_v6 = vsub.f32 %v2928_v3, %v2878_v2 }
0x28ca   :  { %v2934_v7 = vmul.f32 %v2931_v6, %v2931_v6 }
0x28cc   :  { %v2936_v9 = vadd.f32 %v2935_v8, %v2934_v7 }
0x28ce   :  { %2937 = vadd.xlane.f32.xlu0 %v2936_v9 }
0x2941   :  { %v2938_v10 = vpop.xlane.xlu0 %2937 }
0x2942   :  { %v2939_v13 = vrot.slane %v2938_v10, 4 }
0x2944   :  { %v2940_v14 = vadd.f32 %v2939_v13, %v2938_v10 }
0x2946   :  { %v2941_v15 = vrot.slane %v2940_v14, 2 }
0x2948   :  { %v2942_v16 = vadd.f32 %v2941_v15, %v2940_v14 }
0x294a   :  { %v2943_v17 = vrot.slane %v2942_v16, 1 }
0x294c   :  { %v2944_v18 = vadd.f32 %v2943_v17, %v2942_v16 }
0x294e   :  { %3518 = vpush %v2944_v18 }
0x297f   :  { %s3519_s18 = spop %3518 }
0x2980   :  { %p2946_p0 = scmp.lt.f32.partialorder %s3519_s18, 1e-10 }
0x2982   :  { %3550 = sst [smem:[#allocation4]] (%p2946_p0), %s3758_s19  ;;  %2953 = sbr.rel (%p2946_p0) target bundleno = 10638 (0x298e), region = 377 }
0x2987   :  { %v2954_v19 = vmul.f32 0.90687346, %v2929_v61  ;;  %v2955_v20 = vmul.f32 0.90687346, %v2930_v63  ;;  %v2956_v21 = vmul.f32 0.90687346, %v2931_v6 }
0x2988   :  { %2963 = vst [vmem:[#allocation2 + $0x10] sm:$0xff] %v2926_v55 }
0x2989   :  { %v2957_v22 = vadd.f32 %v2954_v19, %v2926_v55  ;;  %v2958_v23 = vadd.f32 %v2955_v20, %v2927_v58  ;;  %v2959_v24 = vadd.f32 %v2956_v21, %v2928_v3  ;;  %2964 = vst [vmem:[#allocation2] sm:$0xff] %v2927_v58 }
0x298a   :  { %2965 = vst [vmem:[#allocation2 + $0x8] sm:$0xff] %v2928_v3 }
0x298b   :  { %2960 = vst [vmem:[#allocation3 + $0x8] sm:$0xff] %v2957_v22 }
0x298c   :  { %2961 = vst [vmem:[#allocation3] sm:$0xff] %v2958_v23 }
0x298d   :  { %2962 = vst [vmem:[#allocation3 + $0x10] sm:$0xff] %v2959_v24 }
0x298e PF:  { %s2966_s20 = sld [smem:[#allocation4]] }
0x2994   :  { %p3265_p1 = scmp.ne.s32.totalorder %s2966_s20, 0 }
0x2995   :  { %s3759_s22 = smov (!%p3265_p1), 1  }
0x2996   :  { %2970 = sbr.rel (%p3265_p1) target bundleno = 10996 (0x2af4), region = 381 }
0x299b   :  { %v2976_v25 = vld [vmem:[#allocation3 + $0x10] sm:$0xff]  ;;  %v2975_v26 = vld [vmem:[#allocation3] sm:$0xff]  ;;  %v2974_v27 = vld [vmem:[#allocation3 + $0x8] sm:$0xff] }
0x299c   :  { %2999 = vmatpush.msra.mxu0 %v2976_v25  ;;  %3449 = vmatpush.msra.mxu1 %v2976_v25  ;;  %v2971_v35 = vld [vmem:[#allocation2 + $0x10] sm:$0xff]  ;;  %v2973_v41 = vld [vmem:[#allocation2 + $0x8] sm:$0xff] }
0x299d   :  { %3450 = vmatpush.msra.mxu2 %v2976_v25 }
0x299e   :  { %3000 = vmatpush.msra.mxu0 %v2975_v26  ;;  %3451 = vmatpush.msra.mxu1 %v2975_v26 }
0x299f   :  { %3452 = vmatpush.msra.mxu2 %v2975_v26 }
0x29a0   :  { %3001 = vmatpush.msra.mxu0 %v2974_v27  ;;  %3453 = vmatpush.msra.mxu1 %v2974_v27 }
0x29a1   :  { %3454 = vmatpush.msra.mxu2 %v2974_v27  ;;  %3266 = vmatmul.msk.f32.vlgmr.msra.gmra.mxu0 %vm78_vm0, %v3838_v46 }
0x29a2   :  { %3267 = vmatmul.msk.f32.vlgmr.msra.gmra.mxu1 %vm78_vm0, %v3840_v47  ;;  %3268 = vmatmul.msk.f32.vlgmr.msra.gmra.mxu2 %vm78_vm0, %v3842_v48  ;;  %v2972_v47 = vld [vmem:[#allocation2] sm:$0xff] }
0x2a1e   :  { %v3003_v28 = vpop.f32.mrf.mxu0 }
0x2a1f   :  { %v3004_v29 = vadd.f32 %v3003_v28, %v3844_v50  ;;  %v3006_v30 = vpop.f32.mrf.mxu1 }
0x2a20   :  { %v3007_v31 = vadd.f32 %v3006_v30, %v3846_v52 }
0x2a21   :  { %v3014_v32 = vmax.f32 %v3858_v59, %v3004_v29 }
0x2a22   :  { %v3015_v33 = vmax.f32 %v3858_v59, %v3007_v31 }
0x2a23   :  { %v3018_v34 = vmin.f32 %v3863_v62, %v3014_v32 }
0x2a24   :  { %v3019_v46 = vmin.f32 %v3863_v62, %v3015_v33 }
0x2a25   :  { %v3021_v36 = vsub.f32 %v3004_v29, %v3018_v34  ;;  %v3009_v37 = vpop.f32.mrf.mxu2 }
0x2a26   :  { %v3022_v38 = vsub.f32 %v3007_v31, %v3019_v46  ;;  %v3010_v48 = vadd.f32 %v3009_v37, %v3848_v54 }
0x2a27   :  { %v3024_v39 = vsub.f32 %v3021_v36, %v2971_v35 }
0x2a28   :  { %v3025_v50 = vsub.f32 %v3022_v38, %v2972_v47  ;;  %v3016_v40 = vmax.f32 %v3858_v59, %v3010_v48 }
0x2a29   :  { %v3027_v43 = vmul.f32 %v3024_v39, %v3024_v39 }
0x2a2a   :  { %v3020_v52 = vmin.f32 %v3863_v62, %v3016_v40  ;;  %v3028_v44 = vmul.f32 %v3025_v50, %v3025_v50 }
0x2a2c   :  { %v3023_v42 = vsub.f32 %v3010_v48, %v3020_v52  ;;  %v3030_v51 = vadd.f32 %v3028_v44, %v3027_v43 }
0x2a2e   :  { %v3026_v45 = vsub.f32 %v3023_v42, %v2973_v41 }
0x2a30   :  { %v3029_v49 = vmul.f32 %v3026_v45, %v3026_v45 }
0x2a32   :  { %v3031_v53 = vadd.f32 %v3030_v51, %v3029_v49 }
0x2a34   :  { %3032 = vadd.xlane.f32.xlu0 %v3031_v53 }
0x2aa7   :  { %v3033_v55 = vpop.xlane.xlu0 %3032 }
0x2aa8   :  { %v3034_v56 = vrot.slane %v3033_v55, 4 }
0x2aaa   :  { %v3035_v57 = vadd.f32 %v3034_v56, %v3033_v55 }
0x2aac   :  { %v3036_v58 = vrot.slane %v3035_v57, 2 }
0x2aae   :  { %v3037_v54 = vadd.f32 %v3036_v58, %v3035_v57 }
0x2ab0   :  { %v3038_v60 = vrot.slane %v3037_v54, 1 }
0x2ab2   :  { %v3039_v61 = vadd.f32 %v3038_v60, %v3037_v54 }
0x2ab4   :  { %3520 = vpush %v3039_v61 }
0x2ae5   :  { %s3521_s21 = spop %3520 }
0x2ae6   :  { %p3041_p2 = scmp.lt.f32.partialorder %s3521_s21, 1e-10 }
0x2ae8   :  { %3551 = sst [smem:[#allocation4]] (%p3041_p2), %s3759_s22  ;;  %3048 = sbr.rel (%p3041_p2) target bundleno = 10996 (0x2af4), region = 389 }
0x2aed   :  { %v3049_v59 = vmul.f32 0.9097196, %v3024_v39  ;;  %v3050_v62 = vmul.f32 0.9097196, %v3025_v50  ;;  %v3051_v63 = vmul.f32 0.9097196, %v3026_v45 }
0x2aee   :  { %3058 = vst [vmem:[#allocation2 + $0x10] sm:$0xff] %v3021_v36 }
0x2aef   :  { %v3052_v0 = vadd.f32 %v3049_v59, %v3021_v36  ;;  %v3053_v1 = vadd.f32 %v3050_v62, %v3022_v38  ;;  %v3054_v2 = vadd.f32 %v3051_v63, %v3023_v42  ;;  %3059 = vst [vmem:[#allocation2] sm:$0xff] %v3022_v38 }
0x2af0   :  { %3060 = vst [vmem:[#allocation2 + $0x8] sm:$0xff] %v3023_v42 }
0x2af1   :  { %3055 = vst [vmem:[#allocation3 + $0x8] sm:$0xff] %v3052_v0 }
0x2af2   :  { %3056 = vst [vmem:[#allocation3] sm:$0xff] %v3053_v1 }
0x2af3   :  { %3057 = vst [vmem:[#allocation3 + $0x10] sm:$0xff] %v3054_v2 }
0x2af4 PF:  { %v3593_v5 = vld [vmem:[%s4329_s2] ss:$0 sm:$0xff]  ;;  %s3760_s25 = smov [#allocation12]   ;;  %s3123_s2 = sshll.u32 %s4332_s5, 4  ;;  %s3124_s2 = int_to_ptr.hbm [resolvable:$true] %s3123_s2 }
0x2af5   :  { %v3061_v6 = vld [vmem:[#allocation2 + $0x10] sm:$0xff]  ;;  %v3071_v7 = vmul.f32 %v3593_v5, %v3825_v11  ;;  %v3072_v8 = vmul.f32 %v3593_v5, %v3828_v12  ;;  %s3121_s28 = sshll.u32 %s3760_s25, 4  ;;  %s3761_s6 = smov [#allocation11]   ;;  %s3122_s28 = int_to_ptr.vmem [resolvable:$true] %s3121_s28 }
0x2af6   :  { %v3062_v4 = vld [vmem:[#allocation2] sm:$0xff]  ;;  %3064 = vst [vmem:[#allocation12] sm:$0xff] %v3061_v6  ;;  %s3108_s1 = sshll.u32 %s3761_s6, 4  ;;  %s3110_s8 = sshll.u32 %s4331_s4, 4  ;;  %s3109_s1 = int_to_ptr.vmem [resolvable:$true] %s3108_s1  ;;  %s3111_s8 = int_to_ptr.hbm [resolvable:$true] %s3110_s8 }
0x2af7   :  { %v3063_v3 = vld [vmem:[#allocation2 + $0x8] sm:$0xff]  ;;  %3065 = vst [vmem:[#allocation12 + $0x8] sm:$0xff] %v3062_v4 }
0x2af8   :  { %3066 = vst [vmem:[#allocation12 + $0x10] sm:$0xff] %v3063_v3  ;;  %3092 = vmatpush.msra.mxu0 %v3063_v3  ;;  %3455 = vmatpush.msra.mxu1 %v3063_v3 }
0x2af9   :  { %3129 = dma.vmem_to_hbm [thread:$0]  %s3122_s28, 384, %s3124_s2, [#allocation13], %s3724_s26, %s3724_s26, %s3725_s27  }
0x2afa   :  { %3093 = vmatpush.msra.mxu0 %v3062_v4  ;;  %3456 = vmatpush.msra.mxu1 %v3062_v4 }
0x2afc   :  { %3094 = vmatpush.msra.mxu0 %v3061_v6  ;;  %3457 = vmatpush.msra.mxu1 %v3061_v6 }
0x2afd   :  { %3269 = vmatmul.msk.f32.vlgmr.msra.gmra.mxu0 %vm78_vm0, %v3071_v7  ;;  %3270 = vmatmul.msk.f32.vlgmr.msra.gmra.mxu1 %vm78_vm0, %v3072_v8 }
0x2b7a   :  { %v3096_v11 = vpop.f32.mrf.mxu0  ;;  %v3099_v12 = vpop.f32.mrf.mxu1 }
0x2b7b   :  { %3102 = vst [vmem:[#allocation11] sm:$0xff] %v3096_v11 }
0x2b7c   :  { %3103 = vst [vmem:[#allocation11 + $0x8] sm:$0xf] %v3099_v12 }
0x2b7d   :  { %3116 = dma.vmem_to_hbm [thread:$0]  %s3109_s1, 256, %s3111_s8, [#allocation7], %s3724_s26, %s3724_s26, %s3725_s27  }
0x2b7e   :  { %3719 = dma.done.wait [#allocation7], 256  }
0x2b7f   :  { %3720 = vsyncadd [#allocation7], 4294967040 }
0x2b80   :  { %3721 = dma.done.wait [#allocation13], 384  }
0x2b81   :  { %3722 = vsyncadd [#allocation13], 4294966912 }
0x2b82   :  { %3138 = vsyncpa [#allocation6], 1 }
0x2b83   :  { %3139 = vsyncpa [#allocation9], 1 }
0x2b84   :  { %3140 = vsyncpa [#allocation7], 1 }
0x2b85   :  { %3141 = vsyncpa [#allocation13], 1 }

</bundles_post_ra>
